<compile_context>
chip_gen: v7x
topology: tpu7x:2x2x1
jax: 0.10.0
libtpu: 0.0.40
codegen_flags: <defaults>
</compile_context>

<pallas_src>
import functools

import jax
import jax.numpy as jnp
from jax import lax
from jax.experimental import pallas as pl
from jax.experimental.pallas import tpu as pltpu

_LANES = 128  # lane-dense padded width for the decoder output slab


# ----------------------------------------------------------------------------
# Fused Pallas kernel
# ----------------------------------------------------------------------------
def _truecaser_kernel(x_ref, wih0_ref, whh0_ref, b0_ref,
                      wih1_ref, whh1_ref, b1_ref,
                      decw_ref, decb_ref,
                      out_ref, hn_ref, cn_ref,
                      zf_ref, zb_ref, yf_ref, yb_ref,
                      *, T, B, H):
    """Whole TrueCaser forward on VMEM-resident data (no grid)."""
    f32 = jnp.float32

    def run_layer(layer, feats, wih_ref, whh_ref, b_ref):
        # Hoisted input projection (both directions): one (T*B, Din) @ (Din, 4H)
        # MXU matmul each.  Gate column order is (i, f, o, g).
        zf_ref[...] = jnp.dot(feats, wih_ref[0], preferred_element_type=f32) + b_ref[0]
        zb_ref[...] = jnp.dot(feats, wih_ref[1], preferred_element_type=f32) + b_ref[1]
        whh_f = whh_ref[0]   # (H, 4H), loaded once per layer
        whh_b = whh_ref[1]

        def step(s, carry):
            h, c = carry                               # (2B, H): [fwd ; bwd]
            row_f = s * B                              # forward reads time s
            row_b = (T - 1 - s) * B                    # backward reads time T-1-s
            z_f = zf_ref[pl.ds(row_f, B), :] + jnp.dot(
                h[:B], whh_f, preferred_element_type=f32)
            z_b = zb_ref[pl.ds(row_b, B), :] + jnp.dot(
                h[B:], whh_b, preferred_element_type=f32)
            z = jnp.concatenate([z_f, z_b], axis=0)    # (2B, 4H)
            sg = jax.nn.sigmoid(z[:, :3 * H])          # i | f | o in one EUP pass
            g = jnp.tanh(z[:, 3 * H:])
            c_new = sg[:, H:2 * H] * c + sg[:, :H] * g
            h_new = sg[:, 2 * H:3 * H] * jnp.tanh(c_new)
            # Per-step outputs go straight into VMEM (no HBM traffic).
            yf_ref[pl.ds(row_f, B), :] = h_new[:B]
            yb_ref[pl.ds(row_b, B), :] = h_new[B:]
            return h_new, c_new

        init = (jnp.zeros((2 * B, H), f32), jnp.zeros((2 * B, H), f32))
        h_fin, c_fin = lax.fori_loop(0, T, step, init, unroll=True)

        # PyTorch h_n/c_n ordering: [l0_fwd, l0_bwd, l1_fwd, l1_bwd].
        hn_ref[2 * layer] = h_fin[:B]
        hn_ref[2 * layer + 1] = h_fin[B:]
        cn_ref[2 * layer] = c_fin[:B]
        cn_ref[2 * layer + 1] = c_fin[B:]

    # Layer 0 consumes the embedded input.
    run_layer(0, x_ref[...], wih0_ref, whh0_ref, b0_ref)
    # Layer 1 input (fwd||bwd concat) is loaded *before* its loop reuses yf/yb.
    feats1 = jnp.concatenate([yf_ref[...], yb_ref[...]], axis=-1)   # (T*B, 2H)
    run_layer(1, feats1, wih1_ref, whh1_ref, b1_ref)

    # Fused decoder epilogue; output slab is lane-dense (cols 2: are zero pad).
    feats2 = jnp.concatenate([yf_ref[...], yb_ref[...]], axis=-1)   # (T*B, 2H)
    out_ref[...] = (jnp.dot(feats2, decw_ref[...], preferred_element_type=f32)
                    + decb_ref[...]).astype(out_ref.dtype)


# ----------------------------------------------------------------------------
# Wrapper
# ----------------------------------------------------------------------------
def truecaser_forward(tokens, packed):
    """tokens: (B, S) int32 -> (logits (B, S, 2), (h_n, c_n) each (4, B, H))."""
    B, S = tokens.shape
    H = packed["embedding"].shape[1]

    emb = packed["embedding"][tokens.T]          # (S, B, H) gather, time-major
    x2d = emb.reshape(S * B, H)                  # free view change

    kernel = functools.partial(_truecaser_kernel, T=S, B=B, H=H)
    logits_pad, h_n, c_n = pl.pallas_call(
        kernel,
        out_shape=(jax.ShapeDtypeStruct((S * B, _LANES), jnp.float32),
                   jax.ShapeDtypeStruct((4, B, H), jnp.float32),
                   jax.ShapeDtypeStruct((4, B, H), jnp.float32)),
        scratch_shapes=[pltpu.VMEM((S * B, 4 * H), jnp.float32),   # Z fwd
                        pltpu.VMEM((S * B, 4 * H), jnp.float32),   # Z bwd
                        pltpu.VMEM((S * B, H), jnp.float32),       # y fwd
                        pltpu.VMEM((S * B, H), jnp.float32)],      # y bwd
    )(x2d,
      packed["wih0"], packed["whh0"], packed["b0"],
      packed["wih1"], packed["whh1"], packed["b1"],
      packed["dec_w"], packed["dec_b"])

    logits = logits_pad[:, :2].reshape(S, B, 2).transpose(1, 0, 2)  # (B, S, 2)
    return logits, (h_n, c_n)


# ----------------------------------------------------------------------------
# Deterministic parameter construction + one-time repacking
# ----------------------------------------------------------------------------
def make_params(num_tokens, size_features, key):
    """Synthetic params, PyTorch-style (already transposed for x @ W; gates i,f,g,o)."""
    H = size_features
    k = 1.0 / jnp.sqrt(jnp.float32(H))
    keys = iter(jax.random.split(key, 32))

    def u(shape):
        return jax.random.uniform(next(keys), shape, jnp.float32, -k, k)

    params = {"embedding": u((num_tokens, H)), "lstm": {}}
    for layer in range(2):
        d_in = H if layer == 0 else 2 * H
        for direction in range(2):
            w_ih = u((d_in, 4 * H))     # transposed vs PyTorch (4H, d_in)
            w_hh = u((H, 4 * H))        # transposed vs PyTorch (4H, H)
            bias = u((1, 4 * H)) + u((1, 4 * H))   # b_ih + b_hh
            params["lstm"][(layer, direction)] = (w_ih, w_hh, bias)
    params["dec_w"] = u((2 * H, 2))     # transposed vs PyTorch (2, 2H)
    params["dec_b"] = u((1, 2))
    return params


def prepare_params(params):
    """One-time repack into the fused kernel layout (gate reorder, dir stacking, padding)."""
    H = params["embedding"].shape[1]

    def to_ifog(w):   # gate columns (i, f, g, o) -> (i, f, o, g)
        i, f, g, o = jnp.split(w, 4, axis=-1)
        return jnp.concatenate([i, f, o, g], axis=-1)

    packed = {"embedding": params["embedding"]}
    for layer in range(2):
        wih, whh, bias = zip(*(params["lstm"][(layer, d)] for d in range(2)))
        packed[f"wih{layer}"] = jnp.stack([to_ifog(w) for w in wih])   # (2, Din, 4H)
        packed[f"whh{layer}"] = jnp.stack([to_ifog(w) for w in whh])   # (2, H, 4H)
        packed[f"b{layer}"] = jnp.stack([to_ifog(b) for b in bias])    # (2, 1, 4H)
    # Lane-dense padded decoder (output dim 2 -> 128 lanes, zero padded).
    packed["dec_w"] = jnp.zeros((2 * H, _LANES), jnp.float32).at[:, :2].set(
        params["dec_w"])
    packed["dec_b"] = jnp.zeros((1, _LANES), jnp.float32).at[:, :2].set(
        params["dec_b"])
    return packed


# ----------------------------------------------------------------------------
if __name__ == "__main__":
    num_tokens = 50
    size_features = 32     # hidden size H
    batch, seq = 2, 8

    key = jax.random.PRNGKey(0)
    k_params, k_tok = jax.random.split(key)
    params = make_params(num_tokens, size_features, k_params)
    packed = prepare_params(params)
    tokens = jax.random.randint(k_tok, (batch, seq), 0, num_tokens,
                                dtype=jnp.int32)

    fwd = jax.jit(truecaser_forward)
    logits, (h_n, c_n) = fwd(tokens, packed)
    jax.block_until_ready((logits, h_n, c_n))

    assert logits.shape == (batch, seq, 2)
    assert h_n.shape == (4, batch, size_features)
    assert c_n.shape == (4, batch, size_features)
    assert bool(jnp.all(jnp.isfinite(logits)))
    print("KERNEL_OK")
</pallas_src>

<mosaic_0001>
module attributes {stable_mosaic.version = 11 : i64} {
  func.func @_truecaser_kernel(%arg0: memref<16x32xf32, #tpu.memory_space<vmem>>, %arg1: memref<2x32x128xf32, #tpu.memory_space<vmem>>, %arg2: memref<2x32x128xf32, #tpu.memory_space<vmem>>, %arg3: memref<2x1x128xf32, #tpu.memory_space<vmem>>, %arg4: memref<2x64x128xf32, #tpu.memory_space<vmem>>, %arg5: memref<2x32x128xf32, #tpu.memory_space<vmem>>, %arg6: memref<2x1x128xf32, #tpu.memory_space<vmem>>, %arg7: memref<64x128xf32, #tpu.memory_space<vmem>>, %arg8: memref<1x128xf32, #tpu.memory_space<vmem>>, %arg9: memref<16x128xf32, #tpu.memory_space<vmem>>, %arg10: memref<4x2x32xf32, #tpu.memory_space<vmem>>, %arg11: memref<4x2x32xf32, #tpu.memory_space<vmem>>, %arg12: memref<16x128xf32, #tpu.memory_space<vmem>>, %arg13: memref<16x128xf32, #tpu.memory_space<vmem>>, %arg14: memref<16x32xf32, #tpu.memory_space<vmem>>, %arg15: memref<16x32xf32, #tpu.memory_space<vmem>>) attributes {dimension_semantics = [], scalar_prefetch = 0 : i64, scratch_operands = 4 : i64, tpu.core_type = #tpu.core_type<tc>} {
    %c0 = arith.constant 0 : index
    %c0_0 = arith.constant 0 : index
    %0 = vector.load %arg0[%c0, %c0_0] : memref<16x32xf32, #tpu.memory_space<vmem>>, vector<16x32xf32>
    %c0_1 = arith.constant 0 : index
    %c0_2 = arith.constant 0 : index
    %c0_3 = arith.constant 0 : index
    %1 = vector.load %arg1[%c0_1, %c0_2, %c0_3] : memref<2x32x128xf32, #tpu.memory_space<vmem>>, vector<1x32x128xf32>
    %2 = vector.shape_cast %1 : vector<1x32x128xf32> to vector<32x128xf32>
    %cst = arith.constant dense<0.000000e+00> : vector<16x128xf32>
    %3 = tpu.matmul %0, %2, %cst {dimension_numbers = #tpu.dot_dimension_numbers<[1], [0], [0], [1], [0, 0, 1, 1], [], []>} : vector<16x32xf32>, vector<32x128xf32>, vector<16x128xf32> -> vector<16x128xf32>
    %c0_4 = arith.constant 0 : index
    %c0_5 = arith.constant 0 : index
    %c0_6 = arith.constant 0 : index
    %4 = vector.load %arg3[%c0_4, %c0_5, %c0_6] : memref<2x1x128xf32, #tpu.memory_space<vmem>>, vector<1x1x128xf32>
    %5 = vector.shape_cast %4 : vector<1x1x128xf32> to vector<1x128xf32>
    %6 = vector.broadcast %5 : vector<1x128xf32> to vector<16x128xf32>
    %7 = arith.addf %3, %6 : vector<16x128xf32>
    %c0_7 = arith.constant 0 : index
    %c0_8 = arith.constant 0 : index
    %8 = vector.load %arg12[%c0_7, %c0_8] : memref<16x128xf32, #tpu.memory_space<vmem>>, vector<16x128xf32>
    tpu.vector_store %arg12[%c0_7, %c0_8], %7 {strides = array<i32>} : memref<16x128xf32, #tpu.memory_space<vmem>>, vector<16x128xf32>,
    %c1 = arith.constant 1 : index
    %c0_9 = arith.constant 0 : index
    %c0_10 = arith.constant 0 : index
    %9 = vector.load %arg1[%c1, %c0_9, %c0_10] : memref<2x32x128xf32, #tpu.memory_space<vmem>>, vector<1x32x128xf32>
    %10 = vector.shape_cast %9 : vector<1x32x128xf32> to vector<32x128xf32>
    %cst_11 = arith.constant dense<0.000000e+00> : vector<16x128xf32>
    %11 = tpu.matmul %0, %10, %cst_11 {dimension_numbers = #tpu.dot_dimension_numbers<[1], [0], [0], [1], [0, 0, 1, 1], [], []>} : vector<16x32xf32>, vector<32x128xf32>, vector<16x128xf32> -> vector<16x128xf32>
    %c1_12 = arith.constant 1 : index
    %c0_13 = arith.constant 0 : index
    %c0_14 = arith.constant 0 : index
    %12 = vector.load %arg3[%c1_12, %c0_13, %c0_14] : memref<2x1x128xf32, #tpu.memory_space<vmem>>, vector<1x1x128xf32>
    %13 = vector.shape_cast %12 : vector<1x1x128xf32> to vector<1x128xf32>
    %14 = vector.broadcast %13 : vector<1x128xf32> to vector<16x128xf32>
    %15 = arith.addf %11, %14 : vector<16x128xf32>
    %c0_15 = arith.constant 0 : index
    %c0_16 = arith.constant 0 : index
    %16 = vector.load %arg13[%c0_15, %c0_16] : memref<16x128xf32, #tpu.memory_space<vmem>>, vector<16x128xf32>
    tpu.vector_store %arg13[%c0_15, %c0_16], %15 {strides = array<i32>} : memref<16x128xf32, #tpu.memory_space<vmem>>, vector<16x128xf32>,
    %c0_17 = arith.constant 0 : index
    %c0_18 = arith.constant 0 : index
    %c0_19 = arith.constant 0 : index
    %17 = vector.load %arg2[%c0_17, %c0_18, %c0_19] : memref<2x32x128xf32, #tpu.memory_space<vmem>>, vector<1x32x128xf32>
    %18 = vector.shape_cast %17 : vector<1x32x128xf32> to vector<32x128xf32>
    %c1_20 = arith.constant 1 : index
    %c0_21 = arith.constant 0 : index
    %c0_22 = arith.constant 0 : index
    %19 = vector.load %arg2[%c1_20, %c0_21, %c0_22] : memref<2x32x128xf32, #tpu.memory_space<vmem>>, vector<1x32x128xf32>
    %20 = vector.shape_cast %19 : vector<1x32x128xf32> to vector<32x128xf32>
    %cst_23 = arith.constant 0.000000e+00 : f32
    %21 = vector.broadcast %cst_23 : f32 to vector<4x32xf32>
    %cst_24 = arith.constant 0.000000e+00 : f32
    %22 = vector.broadcast %cst_24 : f32 to vector<4x32xf32>
    %c0_i32 = arith.constant 0 : i32
    %c2_i32 = arith.constant 2 : i32
    %23 = arith.muli %c0_i32, %c2_i32 : i32
    %c7_i32 = arith.constant 7 : i32
    %24 = arith.subi %c7_i32, %c0_i32 : i32
    %c2_i32_25 = arith.constant 2 : i32
    %25 = arith.muli %24, %c2_i32_25 : i32
    %26 = arith.index_cast %23 : i32 to index
    %c0_26 = arith.constant 0 : index
    %27 = vector.load %arg12[%26, %c0_26] : memref<16x128xf32, #tpu.memory_space<vmem>>, vector<2x128xf32>
    %28 = vector.extract_strided_slice %21 {offsets = [0, 0], sizes = [2, 32], strides = [1, 1]} : vector<4x32xf32> to vector<2x32xf32>
    %cst_27 = arith.constant dense<0.000000e+00> : vector<2x128xf32>
    %29 = tpu.matmul %28, %18, %cst_27 {dimension_numbers = #tpu.dot_dimension_numbers<[1], [0], [0], [1], [0, 0, 1, 1], [], []>} : vector<2x32xf32>, vector<32x128xf32>, vector<2x128xf32> -> vector<2x128xf32>
    %30 = arith.addf %27, %29 : vector<2x128xf32>
    %31 = arith.index_cast %25 : i32 to index
    %c0_28 = arith.constant 0 : index
    %32 = vector.load %arg13[%31, %c0_28] : memref<16x128xf32, #tpu.memory_space<vmem>>, vector<2x128xf32>
    %33 = vector.extract_strided_slice %21 {offsets = [2, 0], sizes = [2, 32], strides = [1, 1]} : vector<4x32xf32> to vector<2x32xf32>
    %cst_29 = arith.constant dense<0.000000e+00> : vector<2x128xf32>
    %34 = tpu.matmul %33, %20, %cst_29 {dimension_numbers = #tpu.dot_dimension_numbers<[1], [0], [0], [1], [0, 0, 1, 1], [], []>} : vector<2x32xf32>, vector<32x128xf32>, vector<2x128xf32> -> vector<2x128xf32>
    %35 = arith.addf %32, %34 : vector<2x128xf32>
    %36 = tpu.concatenate %30, %35 in 0 : vector<2x128xf32>, vector<2x128xf32> -> vector<4x128xf32>
    %37 = vector.extract_strided_slice %36 {offsets = [0, 0], sizes = [4, 96], strides = [1, 1]} : vector<4x128xf32> to vector<4x96xf32>
    %38 = arith.negf %37 : vector<4x96xf32>
    %39 = math.exp %38 : vector<4x96xf32>
    %cst_30 = arith.constant 1.000000e+00 : f32
    %40 = vector.broadcast %cst_30 : f32 to vector<4x96xf32>
    %41 = arith.addf %40, %39 : vector<4x96xf32>
    %42 = arith.divf %40, %41 : vector<4x96xf32>
    %43 = vector.extract_strided_slice %36 {offsets = [0, 96], sizes = [4, 32], strides = [1, 1]} : vector<4x128xf32> to vector<4x32xf32>
    %44 = math.tanh %43 : vector<4x32xf32>
    %45 = vector.extract_strided_slice %42 {offsets = [0, 32], sizes = [4, 32], strides = [1, 1]} : vector<4x96xf32> to vector<4x32xf32>
    %46 = arith.mulf %45, %22 : vector<4x32xf32>
    %47 = vector.extract_strided_slice %42 {offsets = [0, 0], sizes = [4, 32], strides = [1, 1]} : vector<4x96xf32> to vector<4x32xf32>
    %48 = arith.mulf %47, %44 : vector<4x32xf32>
    %49 = arith.addf %46, %48 : vector<4x32xf32>
    %50 = vector.extract_strided_slice %42 {offsets = [0, 64], sizes = [4, 32], strides = [1, 1]} : vector<4x96xf32> to vector<4x32xf32>
    %51 = math.tanh %49 : vector<4x32xf32>
    %52 = arith.mulf %50, %51 : vector<4x32xf32>
    %53 = vector.extract_strided_slice %52 {offsets = [0, 0], sizes = [2, 32], strides = [1, 1]} : vector<4x32xf32> to vector<2x32xf32>
    %54 = arith.index_cast %23 : i32 to index
    %c0_31 = arith.constant 0 : index
    %55 = vector.load %arg14[%54, %c0_31] : memref<16x32xf32, #tpu.memory_space<vmem>>, vector<2x32xf32>
    tpu.vector_store %arg14[%54, %c0_31], %53 {strides = array<i32>} : memref<16x32xf32, #tpu.memory_space<vmem>>, vector<2x32xf32>,
    %56 = vector.extract_strided_slice %52 {offsets = [2, 0], sizes = [2, 32], strides = [1, 1]} : vector<4x32xf32> to vector<2x32xf32>
    %57 = arith.index_cast %25 : i32 to index
    %c0_32 = arith.constant 0 : index
    %58 = vector.load %arg15[%57, %c0_32] : memref<16x32xf32, #tpu.memory_space<vmem>>, vector<2x32xf32>
    tpu.vector_store %arg15[%57, %c0_32], %56 {strides = array<i32>} : memref<16x32xf32, #tpu.memory_space<vmem>>, vector<2x32xf32>,
    %c1_i32 = arith.constant 1 : i32
    %c2_i32_33 = arith.constant 2 : i32
    %59 = arith.muli %c1_i32, %c2_i32_33 : i32
    %c7_i32_34 = arith.constant 7 : i32
    %60 = arith.subi %c7_i32_34, %c1_i32 : i32
    %c2_i32_35 = arith.constant 2 : i32
    %61 = arith.muli %60, %c2_i32_35 : i32
    %62 = arith.index_cast %59 : i32 to index
    %c0_36 = arith.constant 0 : index
    %63 = vector.load %arg12[%62, %c0_36] : memref<16x128xf32, #tpu.memory_space<vmem>>, vector<2x128xf32>
    %64 = vector.extract_strided_slice %52 {offsets = [0, 0], sizes = [2, 32], strides = [1, 1]} : vector<4x32xf32> to vector<2x32xf32>
    %cst_37 = arith.constant dense<0.000000e+00> : vector<2x128xf32>
    %65 = tpu.matmul %64, %18, %cst_37 {dimension_numbers = #tpu.dot_dimension_numbers<[1], [0], [0], [1], [0, 0, 1, 1], [], []>} : vector<2x32xf32>, vector<32x128xf32>, vector<2x128xf32> -> vector<2x128xf32>
    %66 = arith.addf %63, %65 : vector<2x128xf32>
    %67 = arith.index_cast %61 : i32 to index
    %c0_38 = arith.constant 0 : index
    %68 = vector.load %arg13[%67, %c0_38] : memref<16x128xf32, #tpu.memory_space<vmem>>, vector<2x128xf32>
    %69 = vector.extract_strided_slice %52 {offsets = [2, 0], sizes = [2, 32], strides = [1, 1]} : vector<4x32xf32> to vector<2x32xf32>
    %cst_39 = arith.constant dense<0.000000e+00> : vector<2x128xf32>
    %70 = tpu.matmul %69, %20, %cst_39 {dimension_numbers = #tpu.dot_dimension_numbers<[1], [0], [0], [1], [0, 0, 1, 1], [], []>} : vector<2x32xf32>, vector<32x128xf32>, vector<2x128xf32> -> vector<2x128xf32>
    %71 = arith.addf %68, %70 : vector<2x128xf32>
    %72 = tpu.concatenate %66, %71 in 0 : vector<2x128xf32>, vector<2x128xf32> -> vector<4x128xf32>
    %73 = vector.extract_strided_slice %72 {offsets = [0, 0], sizes = [4, 96], strides = [1, 1]} : vector<4x128xf32> to vector<4x96xf32>
    %74 = arith.negf %73 : vector<4x96xf32>
    %75 = math.exp %74 : vector<4x96xf32>
    %cst_40 = arith.constant 1.000000e+00 : f32
    %76 = vector.broadcast %cst_40 : f32 to vector<4x96xf32>
    %77 = arith.addf %76, %75 : vector<4x96xf32>
    %78 = arith.divf %76, %77 : vector<4x96xf32>
    %79 = vector.extract_strided_slice %72 {offsets = [0, 96], sizes = [4, 32], strides = [1, 1]} : vector<4x128xf32> to vector<4x32xf32>
    %80 = math.tanh %79 : vector<4x32xf32>
    %81 = vector.extract_strided_slice %78 {offsets = [0, 32], sizes = [4, 32], strides = [1, 1]} : vector<4x96xf32> to vector<4x32xf32>
    %82 = arith.mulf %81, %49 : vector<4x32xf32>
    %83 = vector.extract_strided_slice %78 {offsets = [0, 0], sizes = [4, 32], strides = [1, 1]} : vector<4x96xf32> to vector<4x32xf32>
    %84 = arith.mulf %83, %80 : vector<4x32xf32>
    %85 = arith.addf %82, %84 : vector<4x32xf32>
    %86 = vector.extract_strided_slice %78 {offsets = [0, 64], sizes = [4, 32], strides = [1, 1]} : vector<4x96xf32> to vector<4x32xf32>
    %87 = math.tanh %85 : vector<4x32xf32>
    %88 = arith.mulf %86, %87 : vector<4x32xf32>
    %89 = vector.extract_strided_slice %88 {offsets = [0, 0], sizes = [2, 32], strides = [1, 1]} : vector<4x32xf32> to vector<2x32xf32>
    %90 = arith.index_cast %59 : i32 to index
    %c0_41 = arith.constant 0 : index
    %91 = vector.load %arg14[%90, %c0_41] : memref<16x32xf32, #tpu.memory_space<vmem>>, vector<2x32xf32>
    tpu.vector_store %arg14[%90, %c0_41], %89 {strides = array<i32>} : memref<16x32xf32, #tpu.memory_space<vmem>>, vector<2x32xf32>,
    %92 = vector.extract_strided_slice %88 {offsets = [2, 0], sizes = [2, 32], strides = [1, 1]} : vector<4x32xf32> to vector<2x32xf32>
    %93 = arith.index_cast %61 : i32 to index
    %c0_42 = arith.constant 0 : index
    %94 = vector.load %arg15[%93, %c0_42] : memref<16x32xf32, #tpu.memory_space<vmem>>, vector<2x32xf32>
    tpu.vector_store %arg15[%93, %c0_42], %92 {strides = array<i32>} : memref<16x32xf32, #tpu.memory_space<vmem>>, vector<2x32xf32>,
    %c2_i32_43 = arith.constant 2 : i32
    %c2_i32_44 = arith.constant 2 : i32
    %95 = arith.muli %c2_i32_43, %c2_i32_44 : i32
    %c7_i32_45 = arith.constant 7 : i32
    %96 = arith.subi %c7_i32_45, %c2_i32_43 : i32
    %c2_i32_46 = arith.constant 2 : i32
    %97 = arith.muli %96, %c2_i32_46 : i32
    %98 = arith.index_cast %95 : i32 to index
    %c0_47 = arith.constant 0 : index
    %99 = vector.load %arg12[%98, %c0_47] : memref<16x128xf32, #tpu.memory_space<vmem>>, vector<2x128xf32>
    %100 = vector.extract_strided_slice %88 {offsets = [0, 0], sizes = [2, 32], strides = [1, 1]} : vector<4x32xf32> to vector<2x32xf32>
    %cst_48 = arith.constant dense<0.000000e+00> : vector<2x128xf32>
    %101 = tpu.matmul %100, %18, %cst_48 {dimension_numbers = #tpu.dot_dimension_numbers<[1], [0], [0], [1], [0, 0, 1, 1], [], []>} : vector<2x32xf32>, vector<32x128xf32>, vector<2x128xf32> -> vector<2x128xf32>
    %102 = arith.addf %99, %101 : vector<2x128xf32>
    %103 = arith.index_cast %97 : i32 to index
    %c0_49 = arith.constant 0 : index
    %104 = vector.load %arg13[%103, %c0_49] : memref<16x128xf32, #tpu.memory_space<vmem>>, vector<2x128xf32>
    %105 = vector.extract_strided_slice %88 {offsets = [2, 0], sizes = [2, 32], strides = [1, 1]} : vector<4x32xf32> to vector<2x32xf32>
    %cst_50 = arith.constant dense<0.000000e+00> : vector<2x128xf32>
    %106 = tpu.matmul %105, %20, %cst_50 {dimension_numbers = #tpu.dot_dimension_numbers<[1], [0], [0], [1], [0, 0, 1, 1], [], []>} : vector<2x32xf32>, vector<32x128xf32>, vector<2x128xf32> -> vector<2x128xf32>
    %107 = arith.addf %104, %106 : vector<2x128xf32>
    %108 = tpu.concatenate %102, %107 in 0 : vector<2x128xf32>, vector<2x128xf32> -> vector<4x128xf32>
    %109 = vector.extract_strided_slice %108 {offsets = [0, 0], sizes = [4, 96], strides = [1, 1]} : vector<4x128xf32> to vector<4x96xf32>
    %110 = arith.negf %109 : vector<4x96xf32>
    %111 = math.exp %110 : vector<4x96xf32>
    %cst_51 = arith.constant 1.000000e+00 : f32
    %112 = vector.broadcast %cst_51 : f32 to vector<4x96xf32>
    %113 = arith.addf %112, %111 : vector<4x96xf32>
    %114 = arith.divf %112, %113 : vector<4x96xf32>
    %115 = vector.extract_strided_slice %108 {offsets = [0, 96], sizes = [4, 32], strides = [1, 1]} : vector<4x128xf32> to vector<4x32xf32>
    %116 = math.tanh %115 : vector<4x32xf32>
    %117 = vector.extract_strided_slice %114 {offsets = [0, 32], sizes = [4, 32], strides = [1, 1]} : vector<4x96xf32> to vector<4x32xf32>
    %118 = arith.mulf %117, %85 : vector<4x32xf32>
    %119 = vector.extract_strided_slice %114 {offsets = [0, 0], sizes = [4, 32], strides = [1, 1]} : vector<4x96xf32> to vector<4x32xf32>
    %120 = arith.mulf %119, %116 : vector<4x32xf32>
    %121 = arith.addf %118, %120 : vector<4x32xf32>
    %122 = vector.extract_strided_slice %114 {offsets = [0, 64], sizes = [4, 32], strides = [1, 1]} : vector<4x96xf32> to vector<4x32xf32>
    %123 = math.tanh %121 : vector<4x32xf32>
    %124 = arith.mulf %122, %123 : vector<4x32xf32>
    %125 = vector.extract_strided_slice %124 {offsets = [0, 0], sizes = [2, 32], strides = [1, 1]} : vector<4x32xf32> to vector<2x32xf32>
    %126 = arith.index_cast %95 : i32 to index
    %c0_52 = arith.constant 0 : index
    %127 = vector.load %arg14[%126, %c0_52] : memref<16x32xf32, #tpu.memory_space<vmem>>, vector<2x32xf32>
    tpu.vector_store %arg14[%126, %c0_52], %125 {strides = array<i32>} : memref<16x32xf32, #tpu.memory_space<vmem>>, vector<2x32xf32>,
    %128 = vector.extract_strided_slice %124 {offsets = [2, 0], sizes = [2, 32], strides = [1, 1]} : vector<4x32xf32> to vector<2x32xf32>
    %129 = arith.index_cast %97 : i32 to index
    %c0_53 = arith.constant 0 : index
    %130 = vector.load %arg15[%129, %c0_53] : memref<16x32xf32, #tpu.memory_space<vmem>>, vector<2x32xf32>
    tpu.vector_store %arg15[%129, %c0_53], %128 {strides = array<i32>} : memref<16x32xf32, #tpu.memory_space<vmem>>, vector<2x32xf32>,
    %c3_i32 = arith.constant 3 : i32
    %c2_i32_54 = arith.constant 2 : i32
    %131 = arith.muli %c3_i32, %c2_i32_54 : i32
    %c7_i32_55 = arith.constant 7 : i32
    %132 = arith.subi %c7_i32_55, %c3_i32 : i32
    %c2_i32_56 = arith.constant 2 : i32
    %133 = arith.muli %132, %c2_i32_56 : i32
    %134 = arith.index_cast %131 : i32 to index
    %c0_57 = arith.constant 0 : index
    %135 = vector.load %arg12[%134, %c0_57] : memref<16x128xf32, #tpu.memory_space<vmem>>, vector<2x128xf32>
    %136 = vector.extract_strided_slice %124 {offsets = [0, 0], sizes = [2, 32], strides = [1, 1]} : vector<4x32xf32> to vector<2x32xf32>
    %cst_58 = arith.constant dense<0.000000e+00> : vector<2x128xf32>
    %137 = tpu.matmul %136, %18, %cst_58 {dimension_numbers = #tpu.dot_dimension_numbers<[1], [0], [0], [1], [0, 0, 1, 1], [], []>} : vector<2x32xf32>, vector<32x128xf32>, vector<2x128xf32> -> vector<2x128xf32>
    %138 = arith.addf %135, %137 : vector<2x128xf32>
    %139 = arith.index_cast %133 : i32 to index
    %c0_59 = arith.constant 0 : index
    %140 = vector.load %arg13[%139, %c0_59] : memref<16x128xf32, #tpu.memory_space<vmem>>, vector<2x128xf32>
    %141 = vector.extract_strided_slice %124 {offsets = [2, 0], sizes = [2, 32], strides = [1, 1]} : vector<4x32xf32> to vector<2x32xf32>
    %cst_60 = arith.constant dense<0.000000e+00> : vector<2x128xf32>
    %142 = tpu.matmul %141, %20, %cst_60 {dimension_numbers = #tpu.dot_dimension_numbers<[1], [0], [0], [1], [0, 0, 1, 1], [], []>} : vector<2x32xf32>, vector<32x128xf32>, vector<2x128xf32> -> vector<2x128xf32>
    %143 = arith.addf %140, %142 : vector<2x128xf32>
    %144 = tpu.concatenate %138, %143 in 0 : vector<2x128xf32>, vector<2x128xf32> -> vector<4x128xf32>
    %145 = vector.extract_strided_slice %144 {offsets = [0, 0], sizes = [4, 96], strides = [1, 1]} : vector<4x128xf32> to vector<4x96xf32>
    %146 = arith.negf %145 : vector<4x96xf32>
    %147 = math.exp %146 : vector<4x96xf32>
    %cst_61 = arith.constant 1.000000e+00 : f32
    %148 = vector.broadcast %cst_61 : f32 to vector<4x96xf32>
    %149 = arith.addf %148, %147 : vector<4x96xf32>
    %150 = arith.divf %148, %149 : vector<4x96xf32>
    %151 = vector.extract_strided_slice %144 {offsets = [0, 96], sizes = [4, 32], strides = [1, 1]} : vector<4x128xf32> to vector<4x32xf32>
    %152 = math.tanh %151 : vector<4x32xf32>
    %153 = vector.extract_strided_slice %150 {offsets = [0, 32], sizes = [4, 32], strides = [1, 1]} : vector<4x96xf32> to vector<4x32xf32>
    %154 = arith.mulf %153, %121 : vector<4x32xf32>
    %155 = vector.extract_strided_slice %150 {offsets = [0, 0], sizes = [4, 32], strides = [1, 1]} : vector<4x96xf32> to vector<4x32xf32>
    %156 = arith.mulf %155, %152 : vector<4x32xf32>
    %157 = arith.addf %154, %156 : vector<4x32xf32>
    %158 = vector.extract_strided_slice %150 {offsets = [0, 64], sizes = [4, 32], strides = [1, 1]} : vector<4x96xf32> to vector<4x32xf32>
    %159 = math.tanh %157 : vector<4x32xf32>
    %160 = arith.mulf %158, %159 : vector<4x32xf32>
    %161 = vector.extract_strided_slice %160 {offsets = [0, 0], sizes = [2, 32], strides = [1, 1]} : vector<4x32xf32> to vector<2x32xf32>
    %162 = arith.index_cast %131 : i32 to index
    %c0_62 = arith.constant 0 : index
    %163 = vector.load %arg14[%162, %c0_62] : memref<16x32xf32, #tpu.memory_space<vmem>>, vector<2x32xf32>
    tpu.vector_store %arg14[%162, %c0_62], %161 {strides = array<i32>} : memref<16x32xf32, #tpu.memory_space<vmem>>, vector<2x32xf32>,
    %164 = vector.extract_strided_slice %160 {offsets = [2, 0], sizes = [2, 32], strides = [1, 1]} : vector<4x32xf32> to vector<2x32xf32>
    %165 = arith.index_cast %133 : i32 to index
    %c0_63 = arith.constant 0 : index
    %166 = vector.load %arg15[%165, %c0_63] : memref<16x32xf32, #tpu.memory_space<vmem>>, vector<2x32xf32>
    tpu.vector_store %arg15[%165, %c0_63], %164 {strides = array<i32>} : memref<16x32xf32, #tpu.memory_space<vmem>>, vector<2x32xf32>,
    %c4_i32 = arith.constant 4 : i32
    %c2_i32_64 = arith.constant 2 : i32
    %167 = arith.muli %c4_i32, %c2_i32_64 : i32
    %c7_i32_65 = arith.constant 7 : i32
    %168 = arith.subi %c7_i32_65, %c4_i32 : i32
    %c2_i32_66 = arith.constant 2 : i32
    %169 = arith.muli %168, %c2_i32_66 : i32
    %170 = arith.index_cast %167 : i32 to index
    %c0_67 = arith.constant 0 : index
    %171 = vector.load %arg12[%170, %c0_67] : memref<16x128xf32, #tpu.memory_space<vmem>>, vector<2x128xf32>
    %172 = vector.extract_strided_slice %160 {offsets = [0, 0], sizes = [2, 32], strides = [1, 1]} : vector<4x32xf32> to vector<2x32xf32>
    %cst_68 = arith.constant dense<0.000000e+00> : vector<2x128xf32>
    %173 = tpu.matmul %172, %18, %cst_68 {dimension_numbers = #tpu.dot_dimension_numbers<[1], [0], [0], [1], [0, 0, 1, 1], [], []>} : vector<2x32xf32>, vector<32x128xf32>, vector<2x128xf32> -> vector<2x128xf32>
    %174 = arith.addf %171, %173 : vector<2x128xf32>
    %175 = arith.index_cast %169 : i32 to index
    %c0_69 = arith.constant 0 : index
    %176 = vector.load %arg13[%175, %c0_69] : memref<16x128xf32, #tpu.memory_space<vmem>>, vector<2x128xf32>
    %177 = vector.extract_strided_slice %160 {offsets = [2, 0], sizes = [2, 32], strides = [1, 1]} : vector<4x32xf32> to vector<2x32xf32>
    %cst_70 = arith.constant dense<0.000000e+00> : vector<2x128xf32>
    %178 = tpu.matmul %177, %20, %cst_70 {dimension_numbers = #tpu.dot_dimension_numbers<[1], [0], [0], [1], [0, 0, 1, 1], [], []>} : vector<2x32xf32>, vector<32x128xf32>, vector<2x128xf32> -> vector<2x128xf32>
    %179 = arith.addf %176, %178 : vector<2x128xf32>
    %180 = tpu.concatenate %174, %179 in 0 : vector<2x128xf32>, vector<2x128xf32> -> vector<4x128xf32>
    %181 = vector.extract_strided_slice %180 {offsets = [0, 0], sizes = [4, 96], strides = [1, 1]} : vector<4x128xf32> to vector<4x96xf32>
    %182 = arith.negf %181 : vector<4x96xf32>
    %183 = math.exp %182 : vector<4x96xf32>
    %cst_71 = arith.constant 1.000000e+00 : f32
    %184 = vector.broadcast %cst_71 : f32 to vector<4x96xf32>
    %185 = arith.addf %184, %183 : vector<4x96xf32>
    %186 = arith.divf %184, %185 : vector<4x96xf32>
    %187 = vector.extract_strided_slice %180 {offsets = [0, 96], sizes = [4, 32], strides = [1, 1]} : vector<4x128xf32> to vector<4x32xf32>
    %188 = math.tanh %187 : vector<4x32xf32>
    %189 = vector.extract_strided_slice %186 {offsets = [0, 32], sizes = [4, 32], strides = [1, 1]} : vector<4x96xf32> to vector<4x32xf32>
    %190 = arith.mulf %189, %157 : vector<4x32xf32>
    %191 = vector.extract_strided_slice %186 {offsets = [0, 0], sizes = [4, 32], strides = [1, 1]} : vector<4x96xf32> to vector<4x32xf32>
    %192 = arith.mulf %191, %188 : vector<4x32xf32>
    %193 = arith.addf %190, %192 : vector<4x32xf32>
    %194 = vector.extract_strided_slice %186 {offsets = [0, 64], sizes = [4, 32], strides = [1, 1]} : vector<4x96xf32> to vector<4x32xf32>
    %195 = math.tanh %193 : vector<4x32xf32>
    %196 = arith.mulf %194, %195 : vector<4x32xf32>
    %197 = vector.extract_strided_slice %196 {offsets = [0, 0], sizes = [2, 32], strides = [1, 1]} : vector<4x32xf32> to vector<2x32xf32>
    %198 = arith.index_cast %167 : i32 to index
    %c0_72 = arith.constant 0 : index
    %199 = vector.load %arg14[%198, %c0_72] : memref<16x32xf32, #tpu.memory_space<vmem>>, vector<2x32xf32>
    tpu.vector_store %arg14[%198, %c0_72], %197 {strides = array<i32>} : memref<16x32xf32, #tpu.memory_space<vmem>>, vector<2x32xf32>,
    %200 = vector.extract_strided_slice %196 {offsets = [2, 0], sizes = [2, 32], strides = [1, 1]} : vector<4x32xf32> to vector<2x32xf32>
    %201 = arith.index_cast %169 : i32 to index
    %c0_73 = arith.constant 0 : index
    %202 = vector.load %arg15[%201, %c0_73] : memref<16x32xf32, #tpu.memory_space<vmem>>, vector<2x32xf32>
    tpu.vector_store %arg15[%201, %c0_73], %200 {strides = array<i32>} : memref<16x32xf32, #tpu.memory_space<vmem>>, vector<2x32xf32>,
    %c5_i32 = arith.constant 5 : i32
    %c2_i32_74 = arith.constant 2 : i32
    %203 = arith.muli %c5_i32, %c2_i32_74 : i32
    %c7_i32_75 = arith.constant 7 : i32
    %204 = arith.subi %c7_i32_75, %c5_i32 : i32
    %c2_i32_76 = arith.constant 2 : i32
    %205 = arith.muli %204, %c2_i32_76 : i32
    %206 = arith.index_cast %203 : i32 to index
    %c0_77 = arith.constant 0 : index
    %207 = vector.load %arg12[%206, %c0_77] : memref<16x128xf32, #tpu.memory_space<vmem>>, vector<2x128xf32>
    %208 = vector.extract_strided_slice %196 {offsets = [0, 0], sizes = [2, 32], strides = [1, 1]} : vector<4x32xf32> to vector<2x32xf32>
    %cst_78 = arith.constant dense<0.000000e+00> : vector<2x128xf32>
    %209 = tpu.matmul %208, %18, %cst_78 {dimension_numbers = #tpu.dot_dimension_numbers<[1], [0], [0], [1], [0, 0, 1, 1], [], []>} : vector<2x32xf32>, vector<32x128xf32>, vector<2x128xf32> -> vector<2x128xf32>
    %210 = arith.addf %207, %209 : vector<2x128xf32>
    %211 = arith.index_cast %205 : i32 to index
    %c0_79 = arith.constant 0 : index
    %212 = vector.load %arg13[%211, %c0_79] : memref<16x128xf32, #tpu.memory_space<vmem>>, vector<2x128xf32>
    %213 = vector.extract_strided_slice %196 {offsets = [2, 0], sizes = [2, 32], strides = [1, 1]} : vector<4x32xf32> to vector<2x32xf32>
    %cst_80 = arith.constant dense<0.000000e+00> : vector<2x128xf32>
    %214 = tpu.matmul %213, %20, %cst_80 {dimension_numbers = #tpu.dot_dimension_numbers<[1], [0], [0], [1], [0, 0, 1, 1], [], []>} : vector<2x32xf32>, vector<32x128xf32>, vector<2x128xf32> -> vector<2x128xf32>
    %215 = arith.addf %212, %214 : vector<2x128xf32>
    %216 = tpu.concatenate %210, %215 in 0 : vector<2x128xf32>, vector<2x128xf32> -> vector<4x128xf32>
    %217 = vector.extract_strided_slice %216 {offsets = [0, 0], sizes = [4, 96], strides = [1, 1]} : vector<4x128xf32> to vector<4x96xf32>
    %218 = arith.negf %217 : vector<4x96xf32>
    %219 = math.exp %218 : vector<4x96xf32>
    %cst_81 = arith.constant 1.000000e+00 : f32
    %220 = vector.broadcast %cst_81 : f32 to vector<4x96xf32>
    %221 = arith.addf %220, %219 : vector<4x96xf32>
    %222 = arith.divf %220, %221 : vector<4x96xf32>
    %223 = vector.extract_strided_slice %216 {offsets = [0, 96], sizes = [4, 32], strides = [1, 1]} : vector<4x128xf32> to vector<4x32xf32>
    %224 = math.tanh %223 : vector<4x32xf32>
    %225 = vector.extract_strided_slice %222 {offsets = [0, 32], sizes = [4, 32], strides = [1, 1]} : vector<4x96xf32> to vector<4x32xf32>
    %226 = arith.mulf %225, %193 : vector<4x32xf32>
    %227 = vector.extract_strided_slice %222 {offsets = [0, 0], sizes = [4, 32], strides = [1, 1]} : vector<4x96xf32> to vector<4x32xf32>
    %228 = arith.mulf %227, %224 : vector<4x32xf32>
    %229 = arith.addf %226, %228 : vector<4x32xf32>
    %230 = vector.extract_strided_slice %222 {offsets = [0, 64], sizes = [4, 32], strides = [1, 1]} : vector<4x96xf32> to vector<4x32xf32>
    %231 = math.tanh %229 : vector<4x32xf32>
    %232 = arith.mulf %230, %231 : vector<4x32xf32>
    %233 = vector.extract_strided_slice %232 {offsets = [0, 0], sizes = [2, 32], strides = [1, 1]} : vector<4x32xf32> to vector<2x32xf32>
    %234 = arith.index_cast %203 : i32 to index
    %c0_82 = arith.constant 0 : index
    %235 = vector.load %arg14[%234, %c0_82] : memref<16x32xf32, #tpu.memory_space<vmem>>, vector<2x32xf32>
    tpu.vector_store %arg14[%234, %c0_82], %233 {strides = array<i32>} : memref<16x32xf32, #tpu.memory_space<vmem>>, vector<2x32xf32>,
    %236 = vector.extract_strided_slice %232 {offsets = [2, 0], sizes = [2, 32], strides = [1, 1]} : vector<4x32xf32> to vector<2x32xf32>
    %237 = arith.index_cast %205 : i32 to index
    %c0_83 = arith.constant 0 : index
    %238 = vector.load %arg15[%237, %c0_83] : memref<16x32xf32, #tpu.memory_space<vmem>>, vector<2x32xf32>
    tpu.vector_store %arg15[%237, %c0_83], %236 {strides = array<i32>} : memref<16x32xf32, #tpu.memory_space<vmem>>, vector<2x32xf32>,
    %c6_i32 = arith.constant 6 : i32
    %c2_i32_84 = arith.constant 2 : i32
    %239 = arith.muli %c6_i32, %c2_i32_84 : i32
    %c7_i32_85 = arith.constant 7 : i32
    %240 = arith.subi %c7_i32_85, %c6_i32 : i32
    %c2_i32_86 = arith.constant 2 : i32
    %241 = arith.muli %240, %c2_i32_86 : i32
    %242 = arith.index_cast %239 : i32 to index
    %c0_87 = arith.constant 0 : index
    %243 = vector.load %arg12[%242, %c0_87] : memref<16x128xf32, #tpu.memory_space<vmem>>, vector<2x128xf32>
    %244 = vector.extract_strided_slice %232 {offsets = [0, 0], sizes = [2, 32], strides = [1, 1]} : vector<4x32xf32> to vector<2x32xf32>
    %cst_88 = arith.constant dense<0.000000e+00> : vector<2x128xf32>
    %245 = tpu.matmul %244, %18, %cst_88 {dimension_numbers = #tpu.dot_dimension_numbers<[1], [0], [0], [1], [0, 0, 1, 1], [], []>} : vector<2x32xf32>, vector<32x128xf32>, vector<2x128xf32> -> vector<2x128xf32>
    %246 = arith.addf %243, %245 : vector<2x128xf32>
    %247 = arith.index_cast %241 : i32 to index
    %c0_89 = arith.constant 0 : index
    %248 = vector.load %arg13[%247, %c0_89] : memref<16x128xf32, #tpu.memory_space<vmem>>, vector<2x128xf32>
    %249 = vector.extract_strided_slice %232 {offsets = [2, 0], sizes = [2, 32], strides = [1, 1]} : vector<4x32xf32> to vector<2x32xf32>
    %cst_90 = arith.constant dense<0.000000e+00> : vector<2x128xf32>
    %250 = tpu.matmul %249, %20, %cst_90 {dimension_numbers = #tpu.dot_dimension_numbers<[1], [0], [0], [1], [0, 0, 1, 1], [], []>} : vector<2x32xf32>, vector<32x128xf32>, vector<2x128xf32> -> vector<2x128xf32>
    %251 = arith.addf %248, %250 : vector<2x128xf32>
    %252 = tpu.concatenate %246, %251 in 0 : vector<2x128xf32>, vector<2x128xf32> -> vector<4x128xf32>
    %253 = vector.extract_strided_slice %252 {offsets = [0, 0], sizes = [4, 96], strides = [1, 1]} : vector<4x128xf32> to vector<4x96xf32>
    %254 = arith.negf %253 : vector<4x96xf32>
    %255 = math.exp %254 : vector<4x96xf32>
    %cst_91 = arith.constant 1.000000e+00 : f32
    %256 = vector.broadcast %cst_91 : f32 to vector<4x96xf32>
    %257 = arith.addf %256, %255 : vector<4x96xf32>
    %258 = arith.divf %256, %257 : vector<4x96xf32>
    %259 = vector.extract_strided_slice %252 {offsets = [0, 96], sizes = [4, 32], strides = [1, 1]} : vector<4x128xf32> to vector<4x32xf32>
    %260 = math.tanh %259 : vector<4x32xf32>
    %261 = vector.extract_strided_slice %258 {offsets = [0, 32], sizes = [4, 32], strides = [1, 1]} : vector<4x96xf32> to vector<4x32xf32>
    %262 = arith.mulf %261, %229 : vector<4x32xf32>
    %263 = vector.extract_strided_slice %258 {offsets = [0, 0], sizes = [4, 32], strides = [1, 1]} : vector<4x96xf32> to vector<4x32xf32>
    %264 = arith.mulf %263, %260 : vector<4x32xf32>
    %265 = arith.addf %262, %264 : vector<4x32xf32>
    %266 = vector.extract_strided_slice %258 {offsets = [0, 64], sizes = [4, 32], strides = [1, 1]} : vector<4x96xf32> to vector<4x32xf32>
    %267 = math.tanh %265 : vector<4x32xf32>
    %268 = arith.mulf %266, %267 : vector<4x32xf32>
    %269 = vector.extract_strided_slice %268 {offsets = [0, 0], sizes = [2, 32], strides = [1, 1]} : vector<4x32xf32> to vector<2x32xf32>
    %270 = arith.index_cast %239 : i32 to index
    %c0_92 = arith.constant 0 : index
    %271 = vector.load %arg14[%270, %c0_92] : memref<16x32xf32, #tpu.memory_space<vmem>>, vector<2x32xf32>
    tpu.vector_store %arg14[%270, %c0_92], %269 {strides = array<i32>} : memref<16x32xf32, #tpu.memory_space<vmem>>, vector<2x32xf32>,
    %272 = vector.extract_strided_slice %268 {offsets = [2, 0], sizes = [2, 32], strides = [1, 1]} : vector<4x32xf32> to vector<2x32xf32>
    %273 = arith.index_cast %241 : i32 to index
    %c0_93 = arith.constant 0 : index
    %274 = vector.load %arg15[%273, %c0_93] : memref<16x32xf32, #tpu.memory_space<vmem>>, vector<2x32xf32>
    tpu.vector_store %arg15[%273, %c0_93], %272 {strides = array<i32>} : memref<16x32xf32, #tpu.memory_space<vmem>>, vector<2x32xf32>,
    %c7_i32_94 = arith.constant 7 : i32
    %c2_i32_95 = arith.constant 2 : i32
    %275 = arith.muli %c7_i32_94, %c2_i32_95 : i32
    %c7_i32_96 = arith.constant 7 : i32
    %276 = arith.subi %c7_i32_96, %c7_i32_94 : i32
    %c2_i32_97 = arith.constant 2 : i32
    %277 = arith.muli %276, %c2_i32_97 : i32
    %278 = arith.index_cast %275 : i32 to index
    %c0_98 = arith.constant 0 : index
    %279 = vector.load %arg12[%278, %c0_98] : memref<16x128xf32, #tpu.memory_space<vmem>>, vector<2x128xf32>
    %280 = vector.extract_strided_slice %268 {offsets = [0, 0], sizes = [2, 32], strides = [1, 1]} : vector<4x32xf32> to vector<2x32xf32>
    %cst_99 = arith.constant dense<0.000000e+00> : vector<2x128xf32>
    %281 = tpu.matmul %280, %18, %cst_99 {dimension_numbers = #tpu.dot_dimension_numbers<[1], [0], [0], [1], [0, 0, 1, 1], [], []>} : vector<2x32xf32>, vector<32x128xf32>, vector<2x128xf32> -> vector<2x128xf32>
    %282 = arith.addf %279, %281 : vector<2x128xf32>
    %283 = arith.index_cast %277 : i32 to index
    %c0_100 = arith.constant 0 : index
    %284 = vector.load %arg13[%283, %c0_100] : memref<16x128xf32, #tpu.memory_space<vmem>>, vector<2x128xf32>
    %285 = vector.extract_strided_slice %268 {offsets = [2, 0], sizes = [2, 32], strides = [1, 1]} : vector<4x32xf32> to vector<2x32xf32>
    %cst_101 = arith.constant dense<0.000000e+00> : vector<2x128xf32>
    %286 = tpu.matmul %285, %20, %cst_101 {dimension_numbers = #tpu.dot_dimension_numbers<[1], [0], [0], [1], [0, 0, 1, 1], [], []>} : vector<2x32xf32>, vector<32x128xf32>, vector<2x128xf32> -> vector<2x128xf32>
    %287 = arith.addf %284, %286 : vector<2x128xf32>
    %288 = tpu.concatenate %282, %287 in 0 : vector<2x128xf32>, vector<2x128xf32> -> vector<4x128xf32>
    %289 = vector.extract_strided_slice %288 {offsets = [0, 0], sizes = [4, 96], strides = [1, 1]} : vector<4x128xf32> to vector<4x96xf32>
    %290 = arith.negf %289 : vector<4x96xf32>
    %291 = math.exp %290 : vector<4x96xf32>
    %cst_102 = arith.constant 1.000000e+00 : f32
    %292 = vector.broadcast %cst_102 : f32 to vector<4x96xf32>
    %293 = arith.addf %292, %291 : vector<4x96xf32>
    %294 = arith.divf %292, %293 : vector<4x96xf32>
    %295 = vector.extract_strided_slice %288 {offsets = [0, 96], sizes = [4, 32], strides = [1, 1]} : vector<4x128xf32> to vector<4x32xf32>
    %296 = math.tanh %295 : vector<4x32xf32>
    %297 = vector.extract_strided_slice %294 {offsets = [0, 32], sizes = [4, 32], strides = [1, 1]} : vector<4x96xf32> to vector<4x32xf32>
    %298 = arith.mulf %297, %265 : vector<4x32xf32>
    %299 = vector.extract_strided_slice %294 {offsets = [0, 0], sizes = [4, 32], strides = [1, 1]} : vector<4x96xf32> to vector<4x32xf32>
    %300 = arith.mulf %299, %296 : vector<4x32xf32>
    %301 = arith.addf %298, %300 : vector<4x32xf32>
    %302 = vector.extract_strided_slice %294 {offsets = [0, 64], sizes = [4, 32], strides = [1, 1]} : vector<4x96xf32> to vector<4x32xf32>
    %303 = math.tanh %301 : vector<4x32xf32>
    %304 = arith.mulf %302, %303 : vector<4x32xf32>
    %305 = vector.extract_strided_slice %304 {offsets = [0, 0], sizes = [2, 32], strides = [1, 1]} : vector<4x32xf32> to vector<2x32xf32>
    %306 = arith.index_cast %275 : i32 to index
    %c0_103 = arith.constant 0 : index
    %307 = vector.load %arg14[%306, %c0_103] : memref<16x32xf32, #tpu.memory_space<vmem>>, vector<2x32xf32>
    tpu.vector_store %arg14[%306, %c0_103], %305 {strides = array<i32>} : memref<16x32xf32, #tpu.memory_space<vmem>>, vector<2x32xf32>,
    %308 = vector.extract_strided_slice %304 {offsets = [2, 0], sizes = [2, 32], strides = [1, 1]} : vector<4x32xf32> to vector<2x32xf32>
    %309 = arith.index_cast %277 : i32 to index
    %c0_104 = arith.constant 0 : index
    %310 = vector.load %arg15[%309, %c0_104] : memref<16x32xf32, #tpu.memory_space<vmem>>, vector<2x32xf32>
    tpu.vector_store %arg15[%309, %c0_104], %308 {strides = array<i32>} : memref<16x32xf32, #tpu.memory_space<vmem>>, vector<2x32xf32>,
    %c8_i32 = arith.constant 8 : i32
    %311 = vector.extract_strided_slice %304 {offsets = [0, 0], sizes = [2, 32], strides = [1, 1]} : vector<4x32xf32> to vector<2x32xf32>
    %c0_105 = arith.constant 0 : index
    %c0_106 = arith.constant 0 : index
    %c0_107 = arith.constant 0 : index
    %312 = vector.load %arg10[%c0_105, %c0_106, %c0_107] : memref<4x2x32xf32, #tpu.memory_space<vmem>>, vector<1x2x32xf32>
    %313 = vector.shape_cast %312 : vector<1x2x32xf32> to vector<2x32xf32>
    %314 = vector.shape_cast %311 : vector<2x32xf32> to vector<1x2x32xf32>
    tpu.vector_store %arg10[%c0_105, %c0_106, %c0_107], %314 {strides = array<i32>} : memref<4x2x32xf32, #tpu.memory_space<vmem>>, vector<1x2x32xf32>,
    %315 = vector.extract_strided_slice %304 {offsets = [2, 0], sizes = [2, 32], strides = [1, 1]} : vector<4x32xf32> to vector<2x32xf32>
    %c1_108 = arith.constant 1 : index
    %c0_109 = arith.constant 0 : index
    %c0_110 = arith.constant 0 : index
    %316 = vector.load %arg10[%c1_108, %c0_109, %c0_110] : memref<4x2x32xf32, #tpu.memory_space<vmem>>, vector<1x2x32xf32>
    %317 = vector.shape_cast %316 : vector<1x2x32xf32> to vector<2x32xf32>
    %318 = vector.shape_cast %315 : vector<2x32xf32> to vector<1x2x32xf32>
    tpu.vector_store %arg10[%c1_108, %c0_109, %c0_110], %318 {strides = array<i32>} : memref<4x2x32xf32, #tpu.memory_space<vmem>>, vector<1x2x32xf32>,
    %319 = vector.extract_strided_slice %301 {offsets = [0, 0], sizes = [2, 32], strides = [1, 1]} : vector<4x32xf32> to vector<2x32xf32>
    %c0_111 = arith.constant 0 : index
    %c0_112 = arith.constant 0 : index
    %c0_113 = arith.constant 0 : index
    %320 = vector.load %arg11[%c0_111, %c0_112, %c0_113] : memref<4x2x32xf32, #tpu.memory_space<vmem>>, vector<1x2x32xf32>
    %321 = vector.shape_cast %320 : vector<1x2x32xf32> to vector<2x32xf32>
    %322 = vector.shape_cast %319 : vector<2x32xf32> to vector<1x2x32xf32>
    tpu.vector_store %arg11[%c0_111, %c0_112, %c0_113], %322 {strides = array<i32>} : memref<4x2x32xf32, #tpu.memory_space<vmem>>, vector<1x2x32xf32>,
    %323 = vector.extract_strided_slice %301 {offsets = [2, 0], sizes = [2, 32], strides = [1, 1]} : vector<4x32xf32> to vector<2x32xf32>
    %c1_114 = arith.constant 1 : index
    %c0_115 = arith.constant 0 : index
    %c0_116 = arith.constant 0 : index
    %324 = vector.load %arg11[%c1_114, %c0_115, %c0_116] : memref<4x2x32xf32, #tpu.memory_space<vmem>>, vector<1x2x32xf32>
    %325 = vector.shape_cast %324 : vector<1x2x32xf32> to vector<2x32xf32>
    %326 = vector.shape_cast %323 : vector<2x32xf32> to vector<1x2x32xf32>
    tpu.vector_store %arg11[%c1_114, %c0_115, %c0_116], %326 {strides = array<i32>} : memref<4x2x32xf32, #tpu.memory_space<vmem>>, vector<1x2x32xf32>,
    %c0_117 = arith.constant 0 : index
    %c0_118 = arith.constant 0 : index
    %327 = vector.load %arg14[%c0_117, %c0_118] : memref<16x32xf32, #tpu.memory_space<vmem>>, vector<16x32xf32>
    %c0_119 = arith.constant 0 : index
    %c0_120 = arith.constant 0 : index
    %328 = vector.load %arg15[%c0_119, %c0_120] : memref<16x32xf32, #tpu.memory_space<vmem>>, vector<16x32xf32>
    %329 = tpu.concatenate %327, %328 in 1 : vector<16x32xf32>, vector<16x32xf32> -> vector<16x64xf32>
    %c0_121 = arith.constant 0 : index
    %c0_122 = arith.constant 0 : index
    %c0_123 = arith.constant 0 : index
    %330 = vector.load %arg4[%c0_121, %c0_122, %c0_123] : memref<2x64x128xf32, #tpu.memory_space<vmem>>, vector<1x64x128xf32>
    %331 = vector.shape_cast %330 : vector<1x64x128xf32> to vector<64x128xf32>
    %cst_124 = arith.constant dense<0.000000e+00> : vector<16x128xf32>
    %332 = tpu.matmul %329, %331, %cst_124 {dimension_numbers = #tpu.dot_dimension_numbers<[1], [0], [0], [1], [0, 0, 1, 1], [], []>} : vector<16x64xf32>, vector<64x128xf32>, vector<16x128xf32> -> vector<16x128xf32>
    %c0_125 = arith.constant 0 : index
    %c0_126 = arith.constant 0 : index
    %c0_127 = arith.constant 0 : index
    %333 = vector.load %arg6[%c0_125, %c0_126, %c0_127] : memref<2x1x128xf32, #tpu.memory_space<vmem>>, vector<1x1x128xf32>
    %334 = vector.shape_cast %333 : vector<1x1x128xf32> to vector<1x128xf32>
    %335 = vector.broadcast %334 : vector<1x128xf32> to vector<16x128xf32>
    %336 = arith.addf %332, %335 : vector<16x128xf32>
    %c0_128 = arith.constant 0 : index
    %c0_129 = arith.constant 0 : index
    %337 = vector.load %arg12[%c0_128, %c0_129] : memref<16x128xf32, #tpu.memory_space<vmem>>, vector<16x128xf32>
    tpu.vector_store %arg12[%c0_128, %c0_129], %336 {strides = array<i32>} : memref<16x128xf32, #tpu.memory_space<vmem>>, vector<16x128xf32>,
    %c1_130 = arith.constant 1 : index
    %c0_131 = arith.constant 0 : index
    %c0_132 = arith.constant 0 : index
    %338 = vector.load %arg4[%c1_130, %c0_131, %c0_132] : memref<2x64x128xf32, #tpu.memory_space<vmem>>, vector<1x64x128xf32>
    %339 = vector.shape_cast %338 : vector<1x64x128xf32> to vector<64x128xf32>
    %cst_133 = arith.constant dense<0.000000e+00> : vector<16x128xf32>
    %340 = tpu.matmul %329, %339, %cst_133 {dimension_numbers = #tpu.dot_dimension_numbers<[1], [0], [0], [1], [0, 0, 1, 1], [], []>} : vector<16x64xf32>, vector<64x128xf32>, vector<16x128xf32> -> vector<16x128xf32>
    %c1_134 = arith.constant 1 : index
    %c0_135 = arith.constant 0 : index
    %c0_136 = arith.constant 0 : index
    %341 = vector.load %arg6[%c1_134, %c0_135, %c0_136] : memref<2x1x128xf32, #tpu.memory_space<vmem>>, vector<1x1x128xf32>
    %342 = vector.shape_cast %341 : vector<1x1x128xf32> to vector<1x128xf32>
    %343 = vector.broadcast %342 : vector<1x128xf32> to vector<16x128xf32>
    %344 = arith.addf %340, %343 : vector<16x128xf32>
    %c0_137 = arith.constant 0 : index
    %c0_138 = arith.constant 0 : index
    %345 = vector.load %arg13[%c0_137, %c0_138] : memref<16x128xf32, #tpu.memory_space<vmem>>, vector<16x128xf32>
    tpu.vector_store %arg13[%c0_137, %c0_138], %344 {strides = array<i32>} : memref<16x128xf32, #tpu.memory_space<vmem>>, vector<16x128xf32>,
    %c0_139 = arith.constant 0 : index
    %c0_140 = arith.constant 0 : index
    %c0_141 = arith.constant 0 : index
    %346 = vector.load %arg5[%c0_139, %c0_140, %c0_141] : memref<2x32x128xf32, #tpu.memory_space<vmem>>, vector<1x32x128xf32>
    %347 = vector.shape_cast %346 : vector<1x32x128xf32> to vector<32x128xf32>
    %c1_142 = arith.constant 1 : index
    %c0_143 = arith.constant 0 : index
    %c0_144 = arith.constant 0 : index
    %348 = vector.load %arg5[%c1_142, %c0_143, %c0_144] : memref<2x32x128xf32, #tpu.memory_space<vmem>>, vector<1x32x128xf32>
    %349 = vector.shape_cast %348 : vector<1x32x128xf32> to vector<32x128xf32>
    %cst_145 = arith.constant 0.000000e+00 : f32
    %350 = vector.broadcast %cst_145 : f32 to vector<4x32xf32>
    %cst_146 = arith.constant 0.000000e+00 : f32
    %351 = vector.broadcast %cst_146 : f32 to vector<4x32xf32>
    %c0_i32_147 = arith.constant 0 : i32
    %c2_i32_148 = arith.constant 2 : i32
    %352 = arith.muli %c0_i32_147, %c2_i32_148 : i32
    %c7_i32_149 = arith.constant 7 : i32
    %353 = arith.subi %c7_i32_149, %c0_i32_147 : i32
    %c2_i32_150 = arith.constant 2 : i32
    %354 = arith.muli %353, %c2_i32_150 : i32
    %355 = arith.index_cast %352 : i32 to index
    %c0_151 = arith.constant 0 : index
    %356 = vector.load %arg12[%355, %c0_151] : memref<16x128xf32, #tpu.memory_space<vmem>>, vector<2x128xf32>
    %357 = vector.extract_strided_slice %350 {offsets = [0, 0], sizes = [2, 32], strides = [1, 1]} : vector<4x32xf32> to vector<2x32xf32>
    %cst_152 = arith.constant dense<0.000000e+00> : vector<2x128xf32>
    %358 = tpu.matmul %357, %347, %cst_152 {dimension_numbers = #tpu.dot_dimension_numbers<[1], [0], [0], [1], [0, 0, 1, 1], [], []>} : vector<2x32xf32>, vector<32x128xf32>, vector<2x128xf32> -> vector<2x128xf32>
    %359 = arith.addf %356, %358 : vector<2x128xf32>
    %360 = arith.index_cast %354 : i32 to index
    %c0_153 = arith.constant 0 : index
    %361 = vector.load %arg13[%360, %c0_153] : memref<16x128xf32, #tpu.memory_space<vmem>>, vector<2x128xf32>
    %362 = vector.extract_strided_slice %350 {offsets = [2, 0], sizes = [2, 32], strides = [1, 1]} : vector<4x32xf32> to vector<2x32xf32>
    %cst_154 = arith.constant dense<0.000000e+00> : vector<2x128xf32>
    %363 = tpu.matmul %362, %349, %cst_154 {dimension_numbers = #tpu.dot_dimension_numbers<[1], [0], [0], [1], [0, 0, 1, 1], [], []>} : vector<2x32xf32>, vector<32x128xf32>, vector<2x128xf32> -> vector<2x128xf32>
    %364 = arith.addf %361, %363 : vector<2x128xf32>
    %365 = tpu.concatenate %359, %364 in 0 : vector<2x128xf32>, vector<2x128xf32> -> vector<4x128xf32>
    %366 = vector.extract_strided_slice %365 {offsets = [0, 0], sizes = [4, 96], strides = [1, 1]} : vector<4x128xf32> to vector<4x96xf32>
    %367 = arith.negf %366 : vector<4x96xf32>
    %368 = math.exp %367 : vector<4x96xf32>
    %cst_155 = arith.constant 1.000000e+00 : f32
    %369 = vector.broadcast %cst_155 : f32 to vector<4x96xf32>
    %370 = arith.addf %369, %368 : vector<4x96xf32>
    %371 = arith.divf %369, %370 : vector<4x96xf32>
    %372 = vector.extract_strided_slice %365 {offsets = [0, 96], sizes = [4, 32], strides = [1, 1]} : vector<4x128xf32> to vector<4x32xf32>
    %373 = math.tanh %372 : vector<4x32xf32>
    %374 = vector.extract_strided_slice %371 {offsets = [0, 32], sizes = [4, 32], strides = [1, 1]} : vector<4x96xf32> to vector<4x32xf32>
    %375 = arith.mulf %374, %351 : vector<4x32xf32>
    %376 = vector.extract_strided_slice %371 {offsets = [0, 0], sizes = [4, 32], strides = [1, 1]} : vector<4x96xf32> to vector<4x32xf32>
    %377 = arith.mulf %376, %373 : vector<4x32xf32>
    %378 = arith.addf %375, %377 : vector<4x32xf32>
    %379 = vector.extract_strided_slice %371 {offsets = [0, 64], sizes = [4, 32], strides = [1, 1]} : vector<4x96xf32> to vector<4x32xf32>
    %380 = math.tanh %378 : vector<4x32xf32>
    %381 = arith.mulf %379, %380 : vector<4x32xf32>
    %382 = vector.extract_strided_slice %381 {offsets = [0, 0], sizes = [2, 32], strides = [1, 1]} : vector<4x32xf32> to vector<2x32xf32>
    %383 = arith.index_cast %352 : i32 to index
    %c0_156 = arith.constant 0 : index
    %384 = vector.load %arg14[%383, %c0_156] : memref<16x32xf32, #tpu.memory_space<vmem>>, vector<2x32xf32>
    tpu.vector_store %arg14[%383, %c0_156], %382 {strides = array<i32>} : memref<16x32xf32, #tpu.memory_space<vmem>>, vector<2x32xf32>,
    %385 = vector.extract_strided_slice %381 {offsets = [2, 0], sizes = [2, 32], strides = [1, 1]} : vector<4x32xf32> to vector<2x32xf32>
    %386 = arith.index_cast %354 : i32 to index
    %c0_157 = arith.constant 0 : index
    %387 = vector.load %arg15[%386, %c0_157] : memref<16x32xf32, #tpu.memory_space<vmem>>, vector<2x32xf32>
    tpu.vector_store %arg15[%386, %c0_157], %385 {strides = array<i32>} : memref<16x32xf32, #tpu.memory_space<vmem>>, vector<2x32xf32>,
    %c1_i32_158 = arith.constant 1 : i32
    %c2_i32_159 = arith.constant 2 : i32
    %388 = arith.muli %c1_i32_158, %c2_i32_159 : i32
    %c7_i32_160 = arith.constant 7 : i32
    %389 = arith.subi %c7_i32_160, %c1_i32_158 : i32
    %c2_i32_161 = arith.constant 2 : i32
    %390 = arith.muli %389, %c2_i32_161 : i32
    %391 = arith.index_cast %388 : i32 to index
    %c0_162 = arith.constant 0 : index
    %392 = vector.load %arg12[%391, %c0_162] : memref<16x128xf32, #tpu.memory_space<vmem>>, vector<2x128xf32>
    %393 = vector.extract_strided_slice %381 {offsets = [0, 0], sizes = [2, 32], strides = [1, 1]} : vector<4x32xf32> to vector<2x32xf32>
    %cst_163 = arith.constant dense<0.000000e+00> : vector<2x128xf32>
    %394 = tpu.matmul %393, %347, %cst_163 {dimension_numbers = #tpu.dot_dimension_numbers<[1], [0], [0], [1], [0, 0, 1, 1], [], []>} : vector<2x32xf32>, vector<32x128xf32>, vector<2x128xf32> -> vector<2x128xf32>
    %395 = arith.addf %392, %394 : vector<2x128xf32>
    %396 = arith.index_cast %390 : i32 to index
    %c0_164 = arith.constant 0 : index
    %397 = vector.load %arg13[%396, %c0_164] : memref<16x128xf32, #tpu.memory_space<vmem>>, vector<2x128xf32>
    %398 = vector.extract_strided_slice %381 {offsets = [2, 0], sizes = [2, 32], strides = [1, 1]} : vector<4x32xf32> to vector<2x32xf32>
    %cst_165 = arith.constant dense<0.000000e+00> : vector<2x128xf32>
    %399 = tpu.matmul %398, %349, %cst_165 {dimension_numbers = #tpu.dot_dimension_numbers<[1], [0], [0], [1], [0, 0, 1, 1], [], []>} : vector<2x32xf32>, vector<32x128xf32>, vector<2x128xf32> -> vector<2x128xf32>
    %400 = arith.addf %397, %399 : vector<2x128xf32>
    %401 = tpu.concatenate %395, %400 in 0 : vector<2x128xf32>, vector<2x128xf32> -> vector<4x128xf32>
    %402 = vector.extract_strided_slice %401 {offsets = [0, 0], sizes = [4, 96], strides = [1, 1]} : vector<4x128xf32> to vector<4x96xf32>
    %403 = arith.negf %402 : vector<4x96xf32>
    %404 = math.exp %403 : vector<4x96xf32>
    %cst_166 = arith.constant 1.000000e+00 : f32
    %405 = vector.broadcast %cst_166 : f32 to vector<4x96xf32>
    %406 = arith.addf %405, %404 : vector<4x96xf32>
    %407 = arith.divf %405, %406 : vector<4x96xf32>
    %408 = vector.extract_strided_slice %401 {offsets = [0, 96], sizes = [4, 32], strides = [1, 1]} : vector<4x128xf32> to vector<4x32xf32>
    %409 = math.tanh %408 : vector<4x32xf32>
    %410 = vector.extract_strided_slice %407 {offsets = [0, 32], sizes = [4, 32], strides = [1, 1]} : vector<4x96xf32> to vector<4x32xf32>
    %411 = arith.mulf %410, %378 : vector<4x32xf32>
    %412 = vector.extract_strided_slice %407 {offsets = [0, 0], sizes = [4, 32], strides = [1, 1]} : vector<4x96xf32> to vector<4x32xf32>
    %413 = arith.mulf %412, %409 : vector<4x32xf32>
    %414 = arith.addf %411, %413 : vector<4x32xf32>
    %415 = vector.extract_strided_slice %407 {offsets = [0, 64], sizes = [4, 32], strides = [1, 1]} : vector<4x96xf32> to vector<4x32xf32>
    %416 = math.tanh %414 : vector<4x32xf32>
    %417 = arith.mulf %415, %416 : vector<4x32xf32>
    %418 = vector.extract_strided_slice %417 {offsets = [0, 0], sizes = [2, 32], strides = [1, 1]} : vector<4x32xf32> to vector<2x32xf32>
    %419 = arith.index_cast %388 : i32 to index
    %c0_167 = arith.constant 0 : index
    %420 = vector.load %arg14[%419, %c0_167] : memref<16x32xf32, #tpu.memory_space<vmem>>, vector<2x32xf32>
    tpu.vector_store %arg14[%419, %c0_167], %418 {strides = array<i32>} : memref<16x32xf32, #tpu.memory_space<vmem>>, vector<2x32xf32>,
    %421 = vector.extract_strided_slice %417 {offsets = [2, 0], sizes = [2, 32], strides = [1, 1]} : vector<4x32xf32> to vector<2x32xf32>
    %422 = arith.index_cast %390 : i32 to index
    %c0_168 = arith.constant 0 : index
    %423 = vector.load %arg15[%422, %c0_168] : memref<16x32xf32, #tpu.memory_space<vmem>>, vector<2x32xf32>
    tpu.vector_store %arg15[%422, %c0_168], %421 {strides = array<i32>} : memref<16x32xf32, #tpu.memory_space<vmem>>, vector<2x32xf32>,
    %c2_i32_169 = arith.constant 2 : i32
    %c2_i32_170 = arith.constant 2 : i32
    %424 = arith.muli %c2_i32_169, %c2_i32_170 : i32
    %c7_i32_171 = arith.constant 7 : i32
    %425 = arith.subi %c7_i32_171, %c2_i32_169 : i32
    %c2_i32_172 = arith.constant 2 : i32
    %426 = arith.muli %425, %c2_i32_172 : i32
    %427 = arith.index_cast %424 : i32 to index
    %c0_173 = arith.constant 0 : index
    %428 = vector.load %arg12[%427, %c0_173] : memref<16x128xf32, #tpu.memory_space<vmem>>, vector<2x128xf32>
    %429 = vector.extract_strided_slice %417 {offsets = [0, 0], sizes = [2, 32], strides = [1, 1]} : vector<4x32xf32> to vector<2x32xf32>
    %cst_174 = arith.constant dense<0.000000e+00> : vector<2x128xf32>
    %430 = tpu.matmul %429, %347, %cst_174 {dimension_numbers = #tpu.dot_dimension_numbers<[1], [0], [0], [1], [0, 0, 1, 1], [], []>} : vector<2x32xf32>, vector<32x128xf32>, vector<2x128xf32> -> vector<2x128xf32>
    %431 = arith.addf %428, %430 : vector<2x128xf32>
    %432 = arith.index_cast %426 : i32 to index
    %c0_175 = arith.constant 0 : index
    %433 = vector.load %arg13[%432, %c0_175] : memref<16x128xf32, #tpu.memory_space<vmem>>, vector<2x128xf32>
    %434 = vector.extract_strided_slice %417 {offsets = [2, 0], sizes = [2, 32], strides = [1, 1]} : vector<4x32xf32> to vector<2x32xf32>
    %cst_176 = arith.constant dense<0.000000e+00> : vector<2x128xf32>
    %435 = tpu.matmul %434, %349, %cst_176 {dimension_numbers = #tpu.dot_dimension_numbers<[1], [0], [0], [1], [0, 0, 1, 1], [], []>} : vector<2x32xf32>, vector<32x128xf32>, vector<2x128xf32> -> vector<2x128xf32>
    %436 = arith.addf %433, %435 : vector<2x128xf32>
    %437 = tpu.concatenate %431, %436 in 0 : vector<2x128xf32>, vector<2x128xf32> -> vector<4x128xf32>
    %438 = vector.extract_strided_slice %437 {offsets = [0, 0], sizes = [4, 96], strides = [1, 1]} : vector<4x128xf32> to vector<4x96xf32>
    %439 = arith.negf %438 : vector<4x96xf32>
    %440 = math.exp %439 : vector<4x96xf32>
    %cst_177 = arith.constant 1.000000e+00 : f32
    %441 = vector.broadcast %cst_177 : f32 to vector<4x96xf32>
    %442 = arith.addf %441, %440 : vector<4x96xf32>
    %443 = arith.divf %441, %442 : vector<4x96xf32>
    %444 = vector.extract_strided_slice %437 {offsets = [0, 96], sizes = [4, 32], strides = [1, 1]} : vector<4x128xf32> to vector<4x32xf32>
    %445 = math.tanh %444 : vector<4x32xf32>
    %446 = vector.extract_strided_slice %443 {offsets = [0, 32], sizes = [4, 32], strides = [1, 1]} : vector<4x96xf32> to vector<4x32xf32>
    %447 = arith.mulf %446, %414 : vector<4x32xf32>
    %448 = vector.extract_strided_slice %443 {offsets = [0, 0], sizes = [4, 32], strides = [1, 1]} : vector<4x96xf32> to vector<4x32xf32>
    %449 = arith.mulf %448, %445 : vector<4x32xf32>
    %450 = arith.addf %447, %449 : vector<4x32xf32>
    %451 = vector.extract_strided_slice %443 {offsets = [0, 64], sizes = [4, 32], strides = [1, 1]} : vector<4x96xf32> to vector<4x32xf32>
    %452 = math.tanh %450 : vector<4x32xf32>
    %453 = arith.mulf %451, %452 : vector<4x32xf32>
    %454 = vector.extract_strided_slice %453 {offsets = [0, 0], sizes = [2, 32], strides = [1, 1]} : vector<4x32xf32> to vector<2x32xf32>
    %455 = arith.index_cast %424 : i32 to index
    %c0_178 = arith.constant 0 : index
    %456 = vector.load %arg14[%455, %c0_178] : memref<16x32xf32, #tpu.memory_space<vmem>>, vector<2x32xf32>
    tpu.vector_store %arg14[%455, %c0_178], %454 {strides = array<i32>} : memref<16x32xf32, #tpu.memory_space<vmem>>, vector<2x32xf32>,
    %457 = vector.extract_strided_slice %453 {offsets = [2, 0], sizes = [2, 32], strides = [1, 1]} : vector<4x32xf32> to vector<2x32xf32>
    %458 = arith.index_cast %426 : i32 to index
    %c0_179 = arith.constant 0 : index
    %459 = vector.load %arg15[%458, %c0_179] : memref<16x32xf32, #tpu.memory_space<vmem>>, vector<2x32xf32>
    tpu.vector_store %arg15[%458, %c0_179], %457 {strides = array<i32>} : memref<16x32xf32, #tpu.memory_space<vmem>>, vector<2x32xf32>,
    %c3_i32_180 = arith.constant 3 : i32
    %c2_i32_181 = arith.constant 2 : i32
    %460 = arith.muli %c3_i32_180, %c2_i32_181 : i32
    %c7_i32_182 = arith.constant 7 : i32
    %461 = arith.subi %c7_i32_182, %c3_i32_180 : i32
    %c2_i32_183 = arith.constant 2 : i32
    %462 = arith.muli %461, %c2_i32_183 : i32
    %463 = arith.index_cast %460 : i32 to index
    %c0_184 = arith.constant 0 : index
    %464 = vector.load %arg12[%463, %c0_184] : memref<16x128xf32, #tpu.memory_space<vmem>>, vector<2x128xf32>
    %465 = vector.extract_strided_slice %453 {offsets = [0, 0], sizes = [2, 32], strides = [1, 1]} : vector<4x32xf32> to vector<2x32xf32>
    %cst_185 = arith.constant dense<0.000000e+00> : vector<2x128xf32>
    %466 = tpu.matmul %465, %347, %cst_185 {dimension_numbers = #tpu.dot_dimension_numbers<[1], [0], [0], [1], [0, 0, 1, 1], [], []>} : vector<2x32xf32>, vector<32x128xf32>, vector<2x128xf32> -> vector<2x128xf32>
    %467 = arith.addf %464, %466 : vector<2x128xf32>
    %468 = arith.index_cast %462 : i32 to index
    %c0_186 = arith.constant 0 : index
    %469 = vector.load %arg13[%468, %c0_186] : memref<16x128xf32, #tpu.memory_space<vmem>>, vector<2x128xf32>
    %470 = vector.extract_strided_slice %453 {offsets = [2, 0], sizes = [2, 32], strides = [1, 1]} : vector<4x32xf32> to vector<2x32xf32>
    %cst_187 = arith.constant dense<0.000000e+00> : vector<2x128xf32>
    %471 = tpu.matmul %470, %349, %cst_187 {dimension_numbers = #tpu.dot_dimension_numbers<[1], [0], [0], [1], [0, 0, 1, 1], [], []>} : vector<2x32xf32>, vector<32x128xf32>, vector<2x128xf32> -> vector<2x128xf32>
    %472 = arith.addf %469, %471 : vector<2x128xf32>
    %473 = tpu.concatenate %467, %472 in 0 : vector<2x128xf32>, vector<2x128xf32> -> vector<4x128xf32>
    %474 = vector.extract_strided_slice %473 {offsets = [0, 0], sizes = [4, 96], strides = [1, 1]} : vector<4x128xf32> to vector<4x96xf32>
    %475 = arith.negf %474 : vector<4x96xf32>
    %476 = math.exp %475 : vector<4x96xf32>
    %cst_188 = arith.constant 1.000000e+00 : f32
    %477 = vector.broadcast %cst_188 : f32 to vector<4x96xf32>
    %478 = arith.addf %477, %476 : vector<4x96xf32>
    %479 = arith.divf %477, %478 : vector<4x96xf32>
    %480 = vector.extract_strided_slice %473 {offsets = [0, 96], sizes = [4, 32], strides = [1, 1]} : vector<4x128xf32> to vector<4x32xf32>
    %481 = math.tanh %480 : vector<4x32xf32>
    %482 = vector.extract_strided_slice %479 {offsets = [0, 32], sizes = [4, 32], strides = [1, 1]} : vector<4x96xf32> to vector<4x32xf32>
    %483 = arith.mulf %482, %450 : vector<4x32xf32>
    %484 = vector.extract_strided_slice %479 {offsets = [0, 0], sizes = [4, 32], strides = [1, 1]} : vector<4x96xf32> to vector<4x32xf32>
    %485 = arith.mulf %484, %481 : vector<4x32xf32>
    %486 = arith.addf %483, %485 : vector<4x32xf32>
    %487 = vector.extract_strided_slice %479 {offsets = [0, 64], sizes = [4, 32], strides = [1, 1]} : vector<4x96xf32> to vector<4x32xf32>
    %488 = math.tanh %486 : vector<4x32xf32>
    %489 = arith.mulf %487, %488 : vector<4x32xf32>
    %490 = vector.extract_strided_slice %489 {offsets = [0, 0], sizes = [2, 32], strides = [1, 1]} : vector<4x32xf32> to vector<2x32xf32>
    %491 = arith.index_cast %460 : i32 to index
    %c0_189 = arith.constant 0 : index
    %492 = vector.load %arg14[%491, %c0_189] : memref<16x32xf32, #tpu.memory_space<vmem>>, vector<2x32xf32>
    tpu.vector_store %arg14[%491, %c0_189], %490 {strides = array<i32>} : memref<16x32xf32, #tpu.memory_space<vmem>>, vector<2x32xf32>,
    %493 = vector.extract_strided_slice %489 {offsets = [2, 0], sizes = [2, 32], strides = [1, 1]} : vector<4x32xf32> to vector<2x32xf32>
    %494 = arith.index_cast %462 : i32 to index
    %c0_190 = arith.constant 0 : index
    %495 = vector.load %arg15[%494, %c0_190] : memref<16x32xf32, #tpu.memory_space<vmem>>, vector<2x32xf32>
    tpu.vector_store %arg15[%494, %c0_190], %493 {strides = array<i32>} : memref<16x32xf32, #tpu.memory_space<vmem>>, vector<2x32xf32>,
    %c4_i32_191 = arith.constant 4 : i32
    %c2_i32_192 = arith.constant 2 : i32
    %496 = arith.muli %c4_i32_191, %c2_i32_192 : i32
    %c7_i32_193 = arith.constant 7 : i32
    %497 = arith.subi %c7_i32_193, %c4_i32_191 : i32
    %c2_i32_194 = arith.constant 2 : i32
    %498 = arith.muli %497, %c2_i32_194 : i32
    %499 = arith.index_cast %496 : i32 to index
    %c0_195 = arith.constant 0 : index
    %500 = vector.load %arg12[%499, %c0_195] : memref<16x128xf32, #tpu.memory_space<vmem>>, vector<2x128xf32>
    %501 = vector.extract_strided_slice %489 {offsets = [0, 0], sizes = [2, 32], strides = [1, 1]} : vector<4x32xf32> to vector<2x32xf32>
    %cst_196 = arith.constant dense<0.000000e+00> : vector<2x128xf32>
    %502 = tpu.matmul %501, %347, %cst_196 {dimension_numbers = #tpu.dot_dimension_numbers<[1], [0], [0], [1], [0, 0, 1, 1], [], []>} : vector<2x32xf32>, vector<32x128xf32>, vector<2x128xf32> -> vector<2x128xf32>
    %503 = arith.addf %500, %502 : vector<2x128xf32>
    %504 = arith.index_cast %498 : i32 to index
    %c0_197 = arith.constant 0 : index
    %505 = vector.load %arg13[%504, %c0_197] : memref<16x128xf32, #tpu.memory_space<vmem>>, vector<2x128xf32>
    %506 = vector.extract_strided_slice %489 {offsets = [2, 0], sizes = [2, 32], strides = [1, 1]} : vector<4x32xf32> to vector<2x32xf32>
    %cst_198 = arith.constant dense<0.000000e+00> : vector<2x128xf32>
    %507 = tpu.matmul %506, %349, %cst_198 {dimension_numbers = #tpu.dot_dimension_numbers<[1], [0], [0], [1], [0, 0, 1, 1], [], []>} : vector<2x32xf32>, vector<32x128xf32>, vector<2x128xf32> -> vector<2x128xf32>
    %508 = arith.addf %505, %507 : vector<2x128xf32>
    %509 = tpu.concatenate %503, %508 in 0 : vector<2x128xf32>, vector<2x128xf32> -> vector<4x128xf32>
    %510 = vector.extract_strided_slice %509 {offsets = [0, 0], sizes = [4, 96], strides = [1, 1]} : vector<4x128xf32> to vector<4x96xf32>
    %511 = arith.negf %510 : vector<4x96xf32>
    %512 = math.exp %511 : vector<4x96xf32>
    %cst_199 = arith.constant 1.000000e+00 : f32
    %513 = vector.broadcast %cst_199 : f32 to vector<4x96xf32>
    %514 = arith.addf %513, %512 : vector<4x96xf32>
    %515 = arith.divf %513, %514 : vector<4x96xf32>
    %516 = vector.extract_strided_slice %509 {offsets = [0, 96], sizes = [4, 32], strides = [1, 1]} : vector<4x128xf32> to vector<4x32xf32>
    %517 = math.tanh %516 : vector<4x32xf32>
    %518 = vector.extract_strided_slice %515 {offsets = [0, 32], sizes = [4, 32], strides = [1, 1]} : vector<4x96xf32> to vector<4x32xf32>
    %519 = arith.mulf %518, %486 : vector<4x32xf32>
    %520 = vector.extract_strided_slice %515 {offsets = [0, 0], sizes = [4, 32], strides = [1, 1]} : vector<4x96xf32> to vector<4x32xf32>
    %521 = arith.mulf %520, %517 : vector<4x32xf32>
    %522 = arith.addf %519, %521 : vector<4x32xf32>
    %523 = vector.extract_strided_slice %515 {offsets = [0, 64], sizes = [4, 32], strides = [1, 1]} : vector<4x96xf32> to vector<4x32xf32>
    %524 = math.tanh %522 : vector<4x32xf32>
    %525 = arith.mulf %523, %524 : vector<4x32xf32>
    %526 = vector.extract_strided_slice %525 {offsets = [0, 0], sizes = [2, 32], strides = [1, 1]} : vector<4x32xf32> to vector<2x32xf32>
    %527 = arith.index_cast %496 : i32 to index
    %c0_200 = arith.constant 0 : index
    %528 = vector.load %arg14[%527, %c0_200] : memref<16x32xf32, #tpu.memory_space<vmem>>, vector<2x32xf32>
    tpu.vector_store %arg14[%527, %c0_200], %526 {strides = array<i32>} : memref<16x32xf32, #tpu.memory_space<vmem>>, vector<2x32xf32>,
    %529 = vector.extract_strided_slice %525 {offsets = [2, 0], sizes = [2, 32], strides = [1, 1]} : vector<4x32xf32> to vector<2x32xf32>
    %530 = arith.index_cast %498 : i32 to index
    %c0_201 = arith.constant 0 : index
    %531 = vector.load %arg15[%530, %c0_201] : memref<16x32xf32, #tpu.memory_space<vmem>>, vector<2x32xf32>
    tpu.vector_store %arg15[%530, %c0_201], %529 {strides = array<i32>} : memref<16x32xf32, #tpu.memory_space<vmem>>, vector<2x32xf32>,
    %c5_i32_202 = arith.constant 5 : i32
    %c2_i32_203 = arith.constant 2 : i32
    %532 = arith.muli %c5_i32_202, %c2_i32_203 : i32
    %c7_i32_204 = arith.constant 7 : i32
    %533 = arith.subi %c7_i32_204, %c5_i32_202 : i32
    %c2_i32_205 = arith.constant 2 : i32
    %534 = arith.muli %533, %c2_i32_205 : i32
    %535 = arith.index_cast %532 : i32 to index
    %c0_206 = arith.constant 0 : index
    %536 = vector.load %arg12[%535, %c0_206] : memref<16x128xf32, #tpu.memory_space<vmem>>, vector<2x128xf32>
    %537 = vector.extract_strided_slice %525 {offsets = [0, 0], sizes = [2, 32], strides = [1, 1]} : vector<4x32xf32> to vector<2x32xf32>
    %cst_207 = arith.constant dense<0.000000e+00> : vector<2x128xf32>
    %538 = tpu.matmul %537, %347, %cst_207 {dimension_numbers = #tpu.dot_dimension_numbers<[1], [0], [0], [1], [0, 0, 1, 1], [], []>} : vector<2x32xf32>, vector<32x128xf32>, vector<2x128xf32> -> vector<2x128xf32>
    %539 = arith.addf %536, %538 : vector<2x128xf32>
    %540 = arith.index_cast %534 : i32 to index
    %c0_208 = arith.constant 0 : index
    %541 = vector.load %arg13[%540, %c0_208] : memref<16x128xf32, #tpu.memory_space<vmem>>, vector<2x128xf32>
    %542 = vector.extract_strided_slice %525 {offsets = [2, 0], sizes = [2, 32], strides = [1, 1]} : vector<4x32xf32> to vector<2x32xf32>
    %cst_209 = arith.constant dense<0.000000e+00> : vector<2x128xf32>
    %543 = tpu.matmul %542, %349, %cst_209 {dimension_numbers = #tpu.dot_dimension_numbers<[1], [0], [0], [1], [0, 0, 1, 1], [], []>} : vector<2x32xf32>, vector<32x128xf32>, vector<2x128xf32> -> vector<2x128xf32>
    %544 = arith.addf %541, %543 : vector<2x128xf32>
    %545 = tpu.concatenate %539, %544 in 0 : vector<2x128xf32>, vector<2x128xf32> -> vector<4x128xf32>
    %546 = vector.extract_strided_slice %545 {offsets = [0, 0], sizes = [4, 96], strides = [1, 1]} : vector<4x128xf32> to vector<4x96xf32>
    %547 = arith.negf %546 : vector<4x96xf32>
    %548 = math.exp %547 : vector<4x96xf32>
    %cst_210 = arith.constant 1.000000e+00 : f32
    %549 = vector.broadcast %cst_210 : f32 to vector<4x96xf32>
    %550 = arith.addf %549, %548 : vector<4x96xf32>
    %551 = arith.divf %549, %550 : vector<4x96xf32>
    %552 = vector.extract_strided_slice %545 {offsets = [0, 96], sizes = [4, 32], strides = [1, 1]} : vector<4x128xf32> to vector<4x32xf32>
    %553 = math.tanh %552 : vector<4x32xf32>
    %554 = vector.extract_strided_slice %551 {offsets = [0, 32], sizes = [4, 32], strides = [1, 1]} : vector<4x96xf32> to vector<4x32xf32>
    %555 = arith.mulf %554, %522 : vector<4x32xf32>
    %556 = vector.extract_strided_slice %551 {offsets = [0, 0], sizes = [4, 32], strides = [1, 1]} : vector<4x96xf32> to vector<4x32xf32>
    %557 = arith.mulf %556, %553 : vector<4x32xf32>
    %558 = arith.addf %555, %557 : vector<4x32xf32>
    %559 = vector.extract_strided_slice %551 {offsets = [0, 64], sizes = [4, 32], strides = [1, 1]} : vector<4x96xf32> to vector<4x32xf32>
    %560 = math.tanh %558 : vector<4x32xf32>
    %561 = arith.mulf %559, %560 : vector<4x32xf32>
    %562 = vector.extract_strided_slice %561 {offsets = [0, 0], sizes = [2, 32], strides = [1, 1]} : vector<4x32xf32> to vector<2x32xf32>
    %563 = arith.index_cast %532 : i32 to index
    %c0_211 = arith.constant 0 : index
    %564 = vector.load %arg14[%563, %c0_211] : memref<16x32xf32, #tpu.memory_space<vmem>>, vector<2x32xf32>
    tpu.vector_store %arg14[%563, %c0_211], %562 {strides = array<i32>} : memref<16x32xf32, #tpu.memory_space<vmem>>, vector<2x32xf32>,
    %565 = vector.extract_strided_slice %561 {offsets = [2, 0], sizes = [2, 32], strides = [1, 1]} : vector<4x32xf32> to vector<2x32xf32>
    %566 = arith.index_cast %534 : i32 to index
    %c0_212 = arith.constant 0 : index
    %567 = vector.load %arg15[%566, %c0_212] : memref<16x32xf32, #tpu.memory_space<vmem>>, vector<2x32xf32>
    tpu.vector_store %arg15[%566, %c0_212], %565 {strides = array<i32>} : memref<16x32xf32, #tpu.memory_space<vmem>>, vector<2x32xf32>,
    %c6_i32_213 = arith.constant 6 : i32
    %c2_i32_214 = arith.constant 2 : i32
    %568 = arith.muli %c6_i32_213, %c2_i32_214 : i32
    %c7_i32_215 = arith.constant 7 : i32
    %569 = arith.subi %c7_i32_215, %c6_i32_213 : i32
    %c2_i32_216 = arith.constant 2 : i32
    %570 = arith.muli %569, %c2_i32_216 : i32
    %571 = arith.index_cast %568 : i32 to index
    %c0_217 = arith.constant 0 : index
    %572 = vector.load %arg12[%571, %c0_217] : memref<16x128xf32, #tpu.memory_space<vmem>>, vector<2x128xf32>
    %573 = vector.extract_strided_slice %561 {offsets = [0, 0], sizes = [2, 32], strides = [1, 1]} : vector<4x32xf32> to vector<2x32xf32>
    %cst_218 = arith.constant dense<0.000000e+00> : vector<2x128xf32>
    %574 = tpu.matmul %573, %347, %cst_218 {dimension_numbers = #tpu.dot_dimension_numbers<[1], [0], [0], [1], [0, 0, 1, 1], [], []>} : vector<2x32xf32>, vector<32x128xf32>, vector<2x128xf32> -> vector<2x128xf32>
    %575 = arith.addf %572, %574 : vector<2x128xf32>
    %576 = arith.index_cast %570 : i32 to index
    %c0_219 = arith.constant 0 : index
    %577 = vector.load %arg13[%576, %c0_219] : memref<16x128xf32, #tpu.memory_space<vmem>>, vector<2x128xf32>
    %578 = vector.extract_strided_slice %561 {offsets = [2, 0], sizes = [2, 32], strides = [1, 1]} : vector<4x32xf32> to vector<2x32xf32>
    %cst_220 = arith.constant dense<0.000000e+00> : vector<2x128xf32>
    %579 = tpu.matmul %578, %349, %cst_220 {dimension_numbers = #tpu.dot_dimension_numbers<[1], [0], [0], [1], [0, 0, 1, 1], [], []>} : vector<2x32xf32>, vector<32x128xf32>, vector<2x128xf32> -> vector<2x128xf32>
    %580 = arith.addf %577, %579 : vector<2x128xf32>
    %581 = tpu.concatenate %575, %580 in 0 : vector<2x128xf32>, vector<2x128xf32> -> vector<4x128xf32>
    %582 = vector.extract_strided_slice %581 {offsets = [0, 0], sizes = [4, 96], strides = [1, 1]} : vector<4x128xf32> to vector<4x96xf32>
    %583 = arith.negf %582 : vector<4x96xf32>
    %584 = math.exp %583 : vector<4x96xf32>
    %cst_221 = arith.constant 1.000000e+00 : f32
    %585 = vector.broadcast %cst_221 : f32 to vector<4x96xf32>
    %586 = arith.addf %585, %584 : vector<4x96xf32>
    %587 = arith.divf %585, %586 : vector<4x96xf32>
    %588 = vector.extract_strided_slice %581 {offsets = [0, 96], sizes = [4, 32], strides = [1, 1]} : vector<4x128xf32> to vector<4x32xf32>
    %589 = math.tanh %588 : vector<4x32xf32>
    %590 = vector.extract_strided_slice %587 {offsets = [0, 32], sizes = [4, 32], strides = [1, 1]} : vector<4x96xf32> to vector<4x32xf32>
    %591 = arith.mulf %590, %558 : vector<4x32xf32>
    %592 = vector.extract_strided_slice %587 {offsets = [0, 0], sizes = [4, 32], strides = [1, 1]} : vector<4x96xf32> to vector<4x32xf32>
    %593 = arith.mulf %592, %589 : vector<4x32xf32>
    %594 = arith.addf %591, %593 : vector<4x32xf32>
    %595 = vector.extract_strided_slice %587 {offsets = [0, 64], sizes = [4, 32], strides = [1, 1]} : vector<4x96xf32> to vector<4x32xf32>
    %596 = math.tanh %594 : vector<4x32xf32>
    %597 = arith.mulf %595, %596 : vector<4x32xf32>
    %598 = vector.extract_strided_slice %597 {offsets = [0, 0], sizes = [2, 32], strides = [1, 1]} : vector<4x32xf32> to vector<2x32xf32>
    %599 = arith.index_cast %568 : i32 to index
    %c0_222 = arith.constant 0 : index
    %600 = vector.load %arg14[%599, %c0_222] : memref<16x32xf32, #tpu.memory_space<vmem>>, vector<2x32xf32>
    tpu.vector_store %arg14[%599, %c0_222], %598 {strides = array<i32>} : memref<16x32xf32, #tpu.memory_space<vmem>>, vector<2x32xf32>,
    %601 = vector.extract_strided_slice %597 {offsets = [2, 0], sizes = [2, 32], strides = [1, 1]} : vector<4x32xf32> to vector<2x32xf32>
    %602 = arith.index_cast %570 : i32 to index
    %c0_223 = arith.constant 0 : index
    %603 = vector.load %arg15[%602, %c0_223] : memref<16x32xf32, #tpu.memory_space<vmem>>, vector<2x32xf32>
    tpu.vector_store %arg15[%602, %c0_223], %601 {strides = array<i32>} : memref<16x32xf32, #tpu.memory_space<vmem>>, vector<2x32xf32>,
    %c7_i32_224 = arith.constant 7 : i32
    %c2_i32_225 = arith.constant 2 : i32
    %604 = arith.muli %c7_i32_224, %c2_i32_225 : i32
    %c7_i32_226 = arith.constant 7 : i32
    %605 = arith.subi %c7_i32_226, %c7_i32_224 : i32
    %c2_i32_227 = arith.constant 2 : i32
    %606 = arith.muli %605, %c2_i32_227 : i32
    %607 = arith.index_cast %604 : i32 to index
    %c0_228 = arith.constant 0 : index
    %608 = vector.load %arg12[%607, %c0_228] : memref<16x128xf32, #tpu.memory_space<vmem>>, vector<2x128xf32>
    %609 = vector.extract_strided_slice %597 {offsets = [0, 0], sizes = [2, 32], strides = [1, 1]} : vector<4x32xf32> to vector<2x32xf32>
    %cst_229 = arith.constant dense<0.000000e+00> : vector<2x128xf32>
    %610 = tpu.matmul %609, %347, %cst_229 {dimension_numbers = #tpu.dot_dimension_numbers<[1], [0], [0], [1], [0, 0, 1, 1], [], []>} : vector<2x32xf32>, vector<32x128xf32>, vector<2x128xf32> -> vector<2x128xf32>
    %611 = arith.addf %608, %610 : vector<2x128xf32>
    %612 = arith.index_cast %606 : i32 to index
    %c0_230 = arith.constant 0 : index
    %613 = vector.load %arg13[%612, %c0_230] : memref<16x128xf32, #tpu.memory_space<vmem>>, vector<2x128xf32>
    %614 = vector.extract_strided_slice %597 {offsets = [2, 0], sizes = [2, 32], strides = [1, 1]} : vector<4x32xf32> to vector<2x32xf32>
    %cst_231 = arith.constant dense<0.000000e+00> : vector<2x128xf32>
    %615 = tpu.matmul %614, %349, %cst_231 {dimension_numbers = #tpu.dot_dimension_numbers<[1], [0], [0], [1], [0, 0, 1, 1], [], []>} : vector<2x32xf32>, vector<32x128xf32>, vector<2x128xf32> -> vector<2x128xf32>
    %616 = arith.addf %613, %615 : vector<2x128xf32>
    %617 = tpu.concatenate %611, %616 in 0 : vector<2x128xf32>, vector<2x128xf32> -> vector<4x128xf32>
    %618 = vector.extract_strided_slice %617 {offsets = [0, 0], sizes = [4, 96], strides = [1, 1]} : vector<4x128xf32> to vector<4x96xf32>
    %619 = arith.negf %618 : vector<4x96xf32>
    %620 = math.exp %619 : vector<4x96xf32>
    %cst_232 = arith.constant 1.000000e+00 : f32
    %621 = vector.broadcast %cst_232 : f32 to vector<4x96xf32>
    %622 = arith.addf %621, %620 : vector<4x96xf32>
    %623 = arith.divf %621, %622 : vector<4x96xf32>
    %624 = vector.extract_strided_slice %617 {offsets = [0, 96], sizes = [4, 32], strides = [1, 1]} : vector<4x128xf32> to vector<4x32xf32>
    %625 = math.tanh %624 : vector<4x32xf32>
    %626 = vector.extract_strided_slice %623 {offsets = [0, 32], sizes = [4, 32], strides = [1, 1]} : vector<4x96xf32> to vector<4x32xf32>
    %627 = arith.mulf %626, %594 : vector<4x32xf32>
    %628 = vector.extract_strided_slice %623 {offsets = [0, 0], sizes = [4, 32], strides = [1, 1]} : vector<4x96xf32> to vector<4x32xf32>
    %629 = arith.mulf %628, %625 : vector<4x32xf32>
    %630 = arith.addf %627, %629 : vector<4x32xf32>
    %631 = vector.extract_strided_slice %623 {offsets = [0, 64], sizes = [4, 32], strides = [1, 1]} : vector<4x96xf32> to vector<4x32xf32>
    %632 = math.tanh %630 : vector<4x32xf32>
    %633 = arith.mulf %631, %632 : vector<4x32xf32>
    %634 = vector.extract_strided_slice %633 {offsets = [0, 0], sizes = [2, 32], strides = [1, 1]} : vector<4x32xf32> to vector<2x32xf32>
    %635 = arith.index_cast %604 : i32 to index
    %c0_233 = arith.constant 0 : index
    %636 = vector.load %arg14[%635, %c0_233] : memref<16x32xf32, #tpu.memory_space<vmem>>, vector<2x32xf32>
    tpu.vector_store %arg14[%635, %c0_233], %634 {strides = array<i32>} : memref<16x32xf32, #tpu.memory_space<vmem>>, vector<2x32xf32>,
    %637 = vector.extract_strided_slice %633 {offsets = [2, 0], sizes = [2, 32], strides = [1, 1]} : vector<4x32xf32> to vector<2x32xf32>
    %638 = arith.index_cast %606 : i32 to index
    %c0_234 = arith.constant 0 : index
    %639 = vector.load %arg15[%638, %c0_234] : memref<16x32xf32, #tpu.memory_space<vmem>>, vector<2x32xf32>
    tpu.vector_store %arg15[%638, %c0_234], %637 {strides = array<i32>} : memref<16x32xf32, #tpu.memory_space<vmem>>, vector<2x32xf32>,
    %c8_i32_235 = arith.constant 8 : i32
    %640 = vector.extract_strided_slice %633 {offsets = [0, 0], sizes = [2, 32], strides = [1, 1]} : vector<4x32xf32> to vector<2x32xf32>
    %c2 = arith.constant 2 : index
    %c0_236 = arith.constant 0 : index
    %c0_237 = arith.constant 0 : index
    %641 = vector.load %arg10[%c2, %c0_236, %c0_237] : memref<4x2x32xf32, #tpu.memory_space<vmem>>, vector<1x2x32xf32>
    %642 = vector.shape_cast %641 : vector<1x2x32xf32> to vector<2x32xf32>
    %643 = vector.shape_cast %640 : vector<2x32xf32> to vector<1x2x32xf32>
    tpu.vector_store %arg10[%c2, %c0_236, %c0_237], %643 {strides = array<i32>} : memref<4x2x32xf32, #tpu.memory_space<vmem>>, vector<1x2x32xf32>,
    %644 = vector.extract_strided_slice %633 {offsets = [2, 0], sizes = [2, 32], strides = [1, 1]} : vector<4x32xf32> to vector<2x32xf32>
    %c3 = arith.constant 3 : index
    %c0_238 = arith.constant 0 : index
    %c0_239 = arith.constant 0 : index
    %645 = vector.load %arg10[%c3, %c0_238, %c0_239] : memref<4x2x32xf32, #tpu.memory_space<vmem>>, vector<1x2x32xf32>
    %646 = vector.shape_cast %645 : vector<1x2x32xf32> to vector<2x32xf32>
    %647 = vector.shape_cast %644 : vector<2x32xf32> to vector<1x2x32xf32>
    tpu.vector_store %arg10[%c3, %c0_238, %c0_239], %647 {strides = array<i32>} : memref<4x2x32xf32, #tpu.memory_space<vmem>>, vector<1x2x32xf32>,
    %648 = vector.extract_strided_slice %630 {offsets = [0, 0], sizes = [2, 32], strides = [1, 1]} : vector<4x32xf32> to vector<2x32xf32>
    %c2_240 = arith.constant 2 : index
    %c0_241 = arith.constant 0 : index
    %c0_242 = arith.constant 0 : index
    %649 = vector.load %arg11[%c2_240, %c0_241, %c0_242] : memref<4x2x32xf32, #tpu.memory_space<vmem>>, vector<1x2x32xf32>
    %650 = vector.shape_cast %649 : vector<1x2x32xf32> to vector<2x32xf32>
    %651 = vector.shape_cast %648 : vector<2x32xf32> to vector<1x2x32xf32>
    tpu.vector_store %arg11[%c2_240, %c0_241, %c0_242], %651 {strides = array<i32>} : memref<4x2x32xf32, #tpu.memory_space<vmem>>, vector<1x2x32xf32>,
    %652 = vector.extract_strided_slice %630 {offsets = [2, 0], sizes = [2, 32], strides = [1, 1]} : vector<4x32xf32> to vector<2x32xf32>
    %c3_243 = arith.constant 3 : index
    %c0_244 = arith.constant 0 : index
    %c0_245 = arith.constant 0 : index
    %653 = vector.load %arg11[%c3_243, %c0_244, %c0_245] : memref<4x2x32xf32, #tpu.memory_space<vmem>>, vector<1x2x32xf32>
    %654 = vector.shape_cast %653 : vector<1x2x32xf32> to vector<2x32xf32>
    %655 = vector.shape_cast %652 : vector<2x32xf32> to vector<1x2x32xf32>
    tpu.vector_store %arg11[%c3_243, %c0_244, %c0_245], %655 {strides = array<i32>} : memref<4x2x32xf32, #tpu.memory_space<vmem>>, vector<1x2x32xf32>,
    %c0_246 = arith.constant 0 : index
    %c0_247 = arith.constant 0 : index
    %656 = vector.load %arg14[%c0_246, %c0_247] : memref<16x32xf32, #tpu.memory_space<vmem>>, vector<16x32xf32>
    %c0_248 = arith.constant 0 : index
    %c0_249 = arith.constant 0 : index
    %657 = vector.load %arg15[%c0_248, %c0_249] : memref<16x32xf32, #tpu.memory_space<vmem>>, vector<16x32xf32>
    %658 = tpu.concatenate %656, %657 in 1 : vector<16x32xf32>, vector<16x32xf32> -> vector<16x64xf32>
    %c0_250 = arith.constant 0 : index
    %c0_251 = arith.constant 0 : index
    %659 = vector.load %arg7[%c0_250, %c0_251] : memref<64x128xf32, #tpu.memory_space<vmem>>, vector<64x128xf32>
    %cst_252 = arith.constant dense<0.000000e+00> : vector<16x128xf32>
    %660 = tpu.matmul %658, %659, %cst_252 {dimension_numbers = #tpu.dot_dimension_numbers<[1], [0], [0], [1], [0, 0, 1, 1], [], []>} : vector<16x64xf32>, vector<64x128xf32>, vector<16x128xf32> -> vector<16x128xf32>
    %c0_253 = arith.constant 0 : index
    %c0_254 = arith.constant 0 : index
    %661 = vector.load %arg8[%c0_253, %c0_254] : memref<1x128xf32, #tpu.memory_space<vmem>>, vector<1x128xf32>
    %662 = vector.broadcast %661 : vector<1x128xf32> to vector<16x128xf32>
    %663 = arith.addf %660, %662 : vector<16x128xf32>
    %c0_255 = arith.constant 0 : index
    %c0_256 = arith.constant 0 : index
    %664 = vector.load %arg9[%c0_255, %c0_256] : memref<16x128xf32, #tpu.memory_space<vmem>>, vector<16x128xf32>
    tpu.vector_store %arg9[%c0_255, %c0_256], %663 {strides = array<i32>} : memref<16x128xf32, #tpu.memory_space<vmem>>, vector<16x128xf32>,
    return
  }
}

</mosaic_0001>

<bundles_post_ra>
// kernel: truecaser_forward.1
= control target key start
LH: loop header
LB: loop body
LE: loop exit
PB: predicated region body
PF: predicated region fallthrough
CT: control target
= control target key end

     0   :  { %17 = vsyncpa [#allocation7], 0  ;;  %s5542_s0 = inlined_call_operand.vmem [shape: f32[16,32], index: 0, kind: input, shape index: {}]   ;;  %s5543_s1 = inlined_call_operand.vmem [shape: f32[2,32,128], index: 1, kind: input, shape index: {}]   ;;  %s5544_s2 = inlined_call_operand.vmem [shape: f32[2,32,128], index: 2, kind: input, shape index: {}]   ;;  %s5545_s3 = inlined_call_operand.vmem [shape: f32[2,1,128], index: 3, kind: input, shape index: {}]   ;;  %s5546_s4 = inlined_call_operand.vmem [shape: f32[2,64,128], index: 4, kind: input, shape index: {}]   ;;  %s5547_s5 = inlined_call_operand.hbm [shape: f32[2,32,128], index: 5, kind: input, shape index: {}]   ;;  %s5548_s6 = inlined_call_operand.hbm [shape: f32[2,1,128], index: 6, kind: input, shape index: {}]   ;;  %s5549_s7 = inlined_call_operand.hbm [shape: f32[64,128], index: 7, kind: input, shape index: {}]   ;;  %s5550_s8 = inlined_call_operand.hbm [shape: f32[1,128], index: 8, kind: input, shape index: {}]   ;;  %s5551_s9 = inlined_call_operand.vmem [shape: f32[16,128], index: 9, kind: output, shape index: {0}]   ;;  %s5552_s10 = inlined_call_operand.hbm [shape: f32[4,2,32], index: 10, kind: output, shape index: {1}]   ;;  %s5553_s11 = inlined_call_operand.hbm [shape: f32[4,2,32], index: 11, kind: output, shape index: {2}]  }
   0x1   :  { %18 = vsyncpa [#allocation10], 0 }
   0x2   :  { %19 = vsyncpa [#allocation13], 0 }
   0x3   :  { %20 = vsyncpa [#allocation8], 0 }
   0x4   :  { %21 = vsyncpa [#allocation16], 0  ;;  %s4879_s17 = smov [#allocation9]   ;;  %s4737_s21 = scalar_lea.hbm %s5548_s6, 32 }
   0x5   :  { %s49_s18 = sshll.u32 %s4879_s17, 4  ;;  %p4738_p0 = scmp.ne.s32.totalorder %s5548_s6, %s4737_s21  ;;  %s50_s18 = int_to_ptr.vmem [resolvable:$true] %s49_s18 }
   0x6   :  { %p4741_p1 = scmp.lt.u32.totalorder %s4737_s21, %s5548_s6 }
   0x8   :  { %p4743_p2 = pnand %p4741_p1, %p4738_p0 }
   0xa   :  { %4746 = shalt.err (!%p4743_p2)
}
   0xb   :  { %s4747_s26 = scalar_lea.vmem %s50_s18, 32  ;;  %p4752_p4 = scmp.lt.s32.totalorder %s50_s18, %s50_s18 }
   0xc   :  { %p4748_p3 = scmp.ne.s32.totalorder %s50_s18, %s4747_s26  ;;  %p4753_p5 = scmp.lt.s32.totalorder %s4747_s26, %s4747_s26 }
   0xe   :  { %p4754_p6 = por %p4753_p5, %p4752_p4 }
  0x10   :  { %p4755_p7 = pnand %p4754_p6, %p4748_p3 }
  0x12   :  { %4758 = shalt.err (!%p4755_p7)
}
  0x13   :  { %s4880_s27 = smov 16   ;;  %s4881_s28 = smov 1  }
  0x14   :  { %55 = dma.hbm_to_vmem [thread:$0]  %s5548_s6, 32, %s50_s18, [#allocation10], %s4880_s27, %s4880_s27, %s4881_s28  }
  0x15   :  { %s4882_s12 = smov [#allocation6]   ;;  %s4759_s16 = scalar_lea.hbm %s5547_s5, 1024 }
  0x16   :  { %s37_s13 = sshll.u32 %s4882_s12, 4  ;;  %p4760_p8 = scmp.ne.s32.totalorder %s5547_s5, %s4759_s16  ;;  %s38_s13 = int_to_ptr.vmem [resolvable:$true] %s37_s13 }
  0x17   :  { %p4763_p9 = scmp.lt.u32.totalorder %s4759_s16, %s5547_s5 }
  0x19   :  { %p4765_p10 = pnand %p4763_p9, %p4760_p8 }
  0x1b   :  { %4768 = shalt.err (!%p4765_p10)
}
  0x1c   :  { %s4769_s22 = scalar_lea.vmem %s38_s13, 1024  ;;  %p4774_p12 = scmp.lt.s32.totalorder %s38_s13, %s38_s13 }
  0x1d   :  { %p4770_p11 = scmp.ne.s32.totalorder %s38_s13, %s4769_s22  ;;  %p4775_p13 = scmp.lt.s32.totalorder %s4769_s22, %s4769_s22 }
  0x1f   :  { %p4776_p0 = por %p4775_p13, %p4774_p12 }
  0x21   :  { %p4777_p1 = pnand %p4776_p0, %p4770_p11 }
  0x23   :  { %4780 = shalt.err (!%p4777_p1)
}
  0x24   :  { %s4883_s6 = smov 128   ;;  %s4884_s18 = smov 8  }
  0x25   :  { %43 = dma.hbm_to_vmem [thread:$0]  %s5547_s5, 1024, %s38_s13, [#allocation7], %s4883_s6, %s4883_s6, %s4884_s18  }
  0x26   :  { %s4885_s25 = smov [#allocation11]   ;;  %s4886_s27 = smov [#allocation12]  }
  0x27   :  { %s61_s26 = sshll.u32 %s4885_s25, 4  ;;  %s74_s28 = sshll.u32 %s4886_s27, 4  ;;  %s62_s26 = int_to_ptr.vmem [resolvable:$true] %s61_s26  ;;  %s75_s28 = int_to_ptr.vmem [resolvable:$true] %s74_s28 }
  0x28   :  { %s4781_s12 = scalar_lea.hbm %s5549_s7, 1024 }
  0x29   :  { %p4782_p2 = scmp.ne.s32.totalorder %s5549_s7, %s4781_s12  ;;  %p4785_p3 = scmp.lt.u32.totalorder %s4781_s12, %s5549_s7 }
  0x2b   :  { %p4787_p4 = pnand %p4785_p3, %p4782_p2 }
  0x2d   :  { %4790 = shalt.err (!%p4787_p4)
}
  0x2e   :  { %s4791_s5 = scalar_lea.vmem %s62_s26, 1024  ;;  %p4796_p6 = scmp.lt.s32.totalorder %s62_s26, %s62_s26 }
  0x2f   :  { %p4792_p5 = scmp.ne.s32.totalorder %s62_s26, %s4791_s5  ;;  %p4797_p7 = scmp.lt.s32.totalorder %s4791_s5, %s4791_s5 }
  0x31   :  { %p4798_p8 = por %p4797_p7, %p4796_p6 }
  0x33   :  { %p4799_p9 = pnand %p4798_p8, %p4792_p5 }
  0x35   :  { %4802 = shalt.err (!%p4799_p9)
}
  0x36   :  { %67 = dma.hbm_to_vmem [thread:$0]  %s5549_s7, 1024, %s62_s26, [#allocation10], %s4883_s6, %s4883_s6, %s4884_s18  }
  0x37   :  { %s4803_s22 = scalar_lea.hbm %s5550_s8, 16 }
  0x38   :  { %p4804_p10 = scmp.ne.s32.totalorder %s5550_s8, %s4803_s22  ;;  %p4807_p11 = scmp.lt.u32.totalorder %s4803_s22, %s5550_s8 }
  0x3a   :  { %p4809_p12 = pnand %p4807_p11, %p4804_p10 }
  0x3c   :  { %4812 = shalt.err (!%p4809_p12)
}
  0x3d   :  { %s4813_s29 = scalar_lea.vmem %s75_s28, 16  ;;  %s4817_s30 = scalar_lea.vmem %s75_s28, 32 }
  0x3e   :  { %p4814_p13 = scmp.ne.s32.totalorder %s75_s28, %s4813_s29  ;;  %p4818_p0 = scmp.lt.s32.totalorder %s75_s28, %s75_s28 }
  0x3f   :  { %p4819_p1 = scmp.lt.s32.totalorder %s4817_s30, %s4813_s29 }
  0x41   :  { %p4820_p2 = por %p4819_p1, %p4818_p0 }
  0x43   :  { %p4821_p3 = pnand %p4820_p2, %p4814_p13 }
  0x45   :  { %4824 = shalt.err (!%p4821_p3)
}
  0x46   :  { %77 = dma.hbm_to_vmem [thread:$0]  %s5550_s8, 16, %s75_s28, [#allocation13]  }
  0x47   :  { %4869 = dma.done.wait [#allocation7], 1024  }
  0x48   :  { %4870 = vsyncadd [#allocation7], 4294966272 }
  0x49   :  { %4871 = dma.done.wait [#allocation10], 1056  }
  0x4a   :  { %4872 = vsyncadd [#allocation10], 4294966240 }
  0x4b   :  { %4873 = dma.done.wait [#allocation13], 16  }
  0x4c   :  { %4874 = vsyncadd [#allocation13], 4294967280  ;;  %v4887_v0 = vmov 0.0|0.0   ;;  %vm4888_vm0 = vmmov 0   ;;  %v4889_v1 = vmov 0.0   ;;  %vm103_vm1 = vcmask 261120  }
  0x4d   :  { %4352 = vmatprep.subr.bf16.mxu0 %v4887_v0  ;;  %3935 = vmatprep.mubr.msk.f32.mxu0 %vm4888_vm0, %v4889_v1  ;;  %v92_v2 = vld [vmem:[%s5543_s1] sm:$0xff]  ;;  %v93_v3 = vld [vmem:[%s5543_s1 + $0x8] sm:$0xff]  ;;  %v94_v4 = vld [vmem:[%s5543_s1 + $0x10] sm:$0xff]  ;;  %vm436_vm2 = vcmask 1041408   ;;  %s4890_s22 = smov 32   ;;  %vm466_vm3 = vcmask 254976  }
  0x4e   :  { %v4336_v5 = vpack.c.bf16 %v93_v3, %v92_v2  ;;  %v95_v6 = vld [vmem:[%s5543_s1 + $0x18] sm:$0xff]  ;;  %v90_v7 = vld [vmem:[%s5542_s0] sm:$0xff]  ;;  %v3631_v10 = vld [vmem:[%s5543_s1 + $0x28] sm:$0xff]  ;;  %vm468_vm4 = vcmask 257026   ;;  %vm1804_vm5 = vcmask 523264   ;;  %s4894_s18 = smov [#allocation15]  }
  0x4f   :  { %v4340_v8 = vpack.c.bf16 %v95_v6, %v94_v4  ;;  %3913 = vmatprep.mubr.msk.f32.mxu1 %vm103_vm1, %v90_v7  ;;  %v3630_v9 = vld [vmem:[%s5543_s1 + $0x20] sm:$0xff]  ;;  %v278_v12 = vld [vmem:[%s5544_s2 + $0x8] sm:$0xff]  ;;  %v279_v14 = vld [vmem:[%s5544_s2 + $0x10] sm:$0xff]  ;;  %s3607_s26 = sshll.u32 %s4894_s18, 4  ;;  %s3608_s26 = int_to_ptr.vmem [resolvable:$true] %s3607_s26 }
  0x50   :  { %4337 = vmatprep.subr.bf16.mxu1 %v4336_v5  ;;  %v277_v11 = vld [vmem:[%s5544_s2] sm:$0xff]  ;;  %v280_v15 = vld [vmem:[%s5544_s2 + $0x18] sm:$0xff]  ;;  %v4344_v16 = vpack.c.bf16 %v3631_v10, %v3630_v9  ;;  %v3632_v17 = vld [vmem:[%s5543_s1 + $0x30] sm:$0xff] }
  0x51   :  { %4339 = vmatpush3.bf16.msra.mxu1 %v4336_v5  ;;  %v5035_v13 = vpack.c.bf16 %v278_v12, %v277_v11  ;;  %v3633_v18 = vld [vmem:[%s5543_s1 + $0x38] sm:$0xff]  ;;  %v5050_v19 = vpack.c.bf16 %v280_v15, %v279_v14  ;;  %v91_v20 = vld [vmem:[%s5542_s0 + $0x8] sm:$0xff]  ;;  %v3638_v22 = vld [vmem:[%s5544_s2 + $0x20] sm:$0xff] }
  0x52   :  { %4341 = vmatprep.subr.bf16.mxu1 %v4340_v8  ;;  %v4348_v21 = vpack.c.bf16 %v3633_v18, %v3632_v17  ;;  %v3639_v23 = vld [vmem:[%s5544_s2 + $0x28] sm:$0xff]  ;;  %v3640_v25 = vld [vmem:[%s5544_s2 + $0x30] sm:$0xff]  ;;  %v3641_v26 = vld [vmem:[%s5544_s2 + $0x38] sm:$0xff] }
  0x53   :  { %4354 = vmatpush3.bf16.msra.mxu0 %v5035_v13  ;;  %v5071_v24 = vpack.c.bf16 %v3639_v23, %v3638_v22  ;;  %v5084_v27 = vpack.c.bf16 %v3641_v26, %v3640_v25  ;;  %v3627_v28 = vld [vmem:[%s5545_s3] ss:$0 sm:$0xff]  ;;  %v3635_v35 = vld [vmem:[%s5545_s3 + $0x1] ss:$0 sm:$0xff]  ;;  %s4891_s3 = smov 64  }
  0x54   :  { %4355 = vmatprep.subr.bf16.mxu0 %v4887_v0 }
  0x55   :  { %4343 = vmatpush3.bf16.msra.mxu1 %v4340_v8 }
  0x56   :  { %4345 = vmatprep.subr.bf16.mxu1 %v4344_v16 }
  0x57   :  { %4357 = vmatpush3.bf16.msra.mxu0 %v5050_v19 }
  0x58   :  { %3914 = vmatmul.mubr.msk.f32.vlgmr.msra.gmra.mrb[0].mxu1 %vm103_vm1, %v91_v20  ;;  %4364 = vmatprep.subr.bf16.mxu0 %v4887_v0 }
  0x59   :  { %4347 = vmatpush3.bf16.msra.mxu1 %v4344_v16  ;;  %3924 = vmatprep.mubr.msk.f32.mxu1 %vm103_vm1, %v90_v7 }
  0x5a   :  { %4349 = vmatprep.subr.bf16.mxu1 %v4348_v21  ;;  %3936 = vmatmul.mubr.f32.vlgmr.msra.gmra.mrb[0].mxu0 %v4889_v1 }
  0x5b   :  { %4366 = vmatpush3.bf16.msra.mxu0 %v5035_v13  ;;  %3957 = vmatprep.mubr.msk.f32.mxu0 %vm4888_vm0, %v4889_v1 }
  0x5c   :  { %4367 = vmatprep.subr.bf16.mxu0 %v4887_v0 }
  0x5d   :  { %4351 = vmatpush3.bf16.msra.mxu1 %v4348_v21 }
  0x5e   :  { %4358 = vmatprep.subr.bf16.mxu1 %v4887_v0 }
  0x5f   :  { %4369 = vmatpush3.bf16.msra.mxu0 %v5050_v19 }
  0x60   :  { %3925 = vmatmul.mubr.msk.f32.vlgmr.msra.gmra.mrb[2].mxu1 %vm103_vm1, %v91_v20  ;;  %4376 = vmatprep.subr.bf16.mxu0 %v4887_v0 }
  0x61   :  { %4360 = vmatpush3.bf16.msra.mxu1 %v5071_v24  ;;  %3946 = vmatprep.mubr.msk.f32.mxu1 %vm4888_vm0, %v4889_v1 }
  0x62   :  { %4361 = vmatprep.subr.bf16.mxu1 %v4887_v0 }
  0x65   :  { %4363 = vmatpush3.bf16.msra.mxu1 %v5084_v27 }
  0x66   :  { %4370 = vmatprep.subr.bf16.mxu1 %v4887_v0 }
  0x68   :  { %3947 = vmatmul.mubr.f32.vlgmr.msra.gmra.mrb[4].mxu1 %v4889_v1 }
  0x69   :  { %4372 = vmatpush3.bf16.msra.mxu1 %v5071_v24  ;;  %3968 = vmatprep.mubr.msk.f32.mxu1 %vm4888_vm0, %v4889_v1 }
  0x6a   :  { %4373 = vmatprep.subr.bf16.mxu1 %v4887_v0 }
  0x6d   :  { %4375 = vmatpush3.bf16.msra.mxu1 %v5084_v27 }
  0x6e   :  { %4382 = vmatprep.subr.bf16.mxu1 %v4887_v0 }
 0x12b   :  { %v3915_v29 = vpop.f32.mrb[0].mxu1 }
 0x12c   :  { %v182_v30 = vadd.f32 %v3915_v29, %v3627_v28  ;;  %v176_v31 = vpop.f32.mrb[1].mxu1 }
 0x12d   :  { %v177_v32 = vadd.f32 %v3627_v28, %v176_v31  ;;  %v356_v33 = vpop.f32.mrb[0].mxu0 }
 0x12e   :  { %186 = vst [vmem:[#allocation2 + $0x8] sm:$0xff] %v182_v30  ;;  %v3937_v34 = vpop.f32.mrb[1].mxu0 }
 0x12f   :  { %185 = vst [vmem:[#allocation2] sm:$0xff] %v177_v32 }
 0x133   :  { %v3926_v36 = vpop.f32.mrb[2].mxu1 }
 0x134   :  { %v272_v37 = vadd.f32 %v3926_v36, %v3635_v35  ;;  %v266_v38 = vpop.f32.mrb[3].mxu1 }
 0x135   :  { %v267_v39 = vadd.f32 %v3635_v35, %v266_v38 }
 0x136   :  { %276 = vst [vmem:[#allocation3 + $0x8] sm:$0xff] %v272_v37  ;;  %v286_v42 = vld [vmem:[#allocation2] sm:$0x3]  ;;  %v470_v8 = vld [vmem:[#allocation2 + $0x2] sm:$0x3] }
 0x137   :  { %275 = vst [vmem:[#allocation3] sm:$0xff] %v267_v39  ;;  %v360_v45 = vadd.f32 %v356_v33, %v286_v42  ;;  %v655_v38 = vld [vmem:[#allocation2 + $0x4] sm:$0x3] }
 0x13b   :  { %v428_v40 = vpop.f32.mrb[4].mxu1 }
 0x13c   :  { %v3948_v41 = vpop.f32.mrb[5].mxu1 }
 0x13d   :  { %v361_v43 = vld [vmem:[#allocation3 + $0xe] sm:$0x3]  ;;  %v544_v4 = vld [vmem:[#allocation3 + $0xc] sm:$0x3]  ;;  %v729_v34 = vld [vmem:[#allocation3 + $0xa] sm:$0x3] }
 0x13e   :  { %v432_v44 = vadd.f32 %v428_v40, %v361_v43 }
 0x140   :  { %v434_v46 = vrot.slane %v432_v44, 6 }
 0x142   :  { %v437_v47 = vsel %vm436_vm2, %v360_v45, %v434_v46 }
 0x143   :  { %4609 = vtanh.f32 %v437_v47  ;;  %v3642_v49 = vmul.f32 -1.442695, %v437_v47 }
 0x145   :  { %4611 = vpow2.f32 %v3642_v49 }
 0x14d   :  { %v4610_v48 = vpop.eup %4609 }
 0x14e   :  { %447 = vrot.lane.b32.xlu0 %v4610_v48, %s4890_s22 }
 0x14f   :  { %v4612_v50 = vpop.eup %4611 }
 0x150   :  { %v441_v51 = vadd.f32 1.0, %v4612_v50 }
 0x152   :  { %4613 = vrcp.f32 %v441_v51 }
 0x15c   :  { %v4614_v52 = vpop.eup %4613 }
 0x15d   :  { %v445_v55 = vmul.f32 0.0, %v4614_v52 }
 0x1c0   :  { %v448_v53 = vpop.permute.xlu0 %447 }
 0x1c1   :  { %v450_v54 = vmul.f32 %v4614_v52, %v448_v53 }
 0x1c3   :  { %452 = vrot.lane.b32.xlu0 %v450_v54, %s4890_s22 }
 0x235   :  { %v453_v56 = vpop.permute.xlu0 %452 }
 0x236   :  { %v455_v57 = vadd.f32 %v453_v56, %v445_v55 }
 0x238   :  { %4615 = vtanh.f32 %v455_v57 }
 0x242   :  { %v4616_v58 = vpop.eup %4615 }
 0x243   :  { %458 = vrot.lane.b32.xlu1 %v4616_v58, %s4890_s22 }
 0x2b5   :  { %v459_v59 = vpop.permute.xlu1 %458 }
 0x2b6   :  { %v461_v60 = vmul.f32 %v4614_v52, %v459_v59 }
 0x2b8   :  { %v545_v61 = vrot.slane %v461_v60, 2  ;;  %463 = vrot.lane.b32.xlu0 %v461_v60, %s4891_s3  ;;  %v914_v60 = vld [vmem:[#allocation3 + $0x8] sm:$0x3] }
 0x2ba   :  { %546 = vrot.lane.b32.xlu1 %v545_v61, %s4891_s3 }
 0x32a   :  { %v464_v62 = vpop.permute.xlu0 %463 }
 0x32b   :  { %467 = vst.msk [vmem:[#allocation4] sm:$0x3] %vm466_vm3, %v464_v62  ;;  %3958 = vmatmul.mubr.msk.f32.vlgmr.msra.gmra.mrb[2].mxu0 %vm103_vm1, %v464_v62 }
 0x32c   :  { %469 = vst.msk [vmem:[#allocation5 + $0xc] sm:$0xc] %vm468_vm4, %v464_v62  ;;  %v547_v63 = vpop.permute.xlu1 %546  ;;  %4378 = vmatpush3.bf16.msra.mxu0 %v5035_v13  ;;  %3979 = vmatprep.mubr.msk.f32.mxu0 %vm4888_vm0, %v4889_v1 }
 0x32d   :  { %3969 = vmatmul.mubr.msk.f32.vlgmr.msra.gmra.mrb[6].mxu1 %vm103_vm1, %v547_v63  ;;  %4379 = vmatprep.subr.bf16.mxu0 %v4887_v0 }
 0x32e   :  { %4384 = vmatpush3.bf16.msra.mxu1 %v5071_v24  ;;  %3990 = vmatprep.mubr.msk.f32.mxu1 %vm4888_vm0, %v4889_v1 }
 0x32f   :  { %4385 = vmatprep.subr.bf16.mxu1 %v4887_v0 }
 0x330   :  { %4381 = vmatpush3.bf16.msra.mxu0 %v5050_v19 }
 0x331   :  { %4388 = vmatprep.subr.bf16.mxu0 %v4887_v0 }
 0x332   :  { %4387 = vmatpush3.bf16.msra.mxu1 %v5084_v27 }
 0x333   :  { %4394 = vmatprep.subr.bf16.mxu1 %v4887_v0 }
 0x3fe   :  { %v539_v2 = vpop.f32.mrb[2].mxu0 }
 0x3ff   :  { %v3959_v3 = vpop.f32.mrb[3].mxu0  ;;  %v543_v9 = vadd.f32 %v539_v2, %v470_v8  ;;  %v840_v2 = vld [vmem:[#allocation2 + $0x6] sm:$0x3] }
 0x400   :  { %v616_v5 = vpop.f32.mrb[6].mxu1 }
 0x401   :  { %v620_v6 = vadd.f32 %v616_v5, %v544_v4  ;;  %v3970_v7 = vpop.f32.mrb[7].mxu1 }
 0x403   :  { %v622_v10 = vrot.slane %v620_v6, 6 }
 0x405   :  { %v624_v11 = vsel %vm436_vm2, %v543_v9, %v622_v10 }
 0x406   :  { %4617 = vtanh.f32 %v624_v11  ;;  %v3645_v14 = vmul.f32 -1.442695, %v624_v11 }
 0x408   :  { %4619 = vpow2.f32 %v3645_v14 }
 0x410   :  { %v4618_v12 = vpop.eup %4617 }
 0x411   :  { %634 = vrot.lane.b32.xlu1 %v4618_v12, %s4890_s22 }
 0x412   :  { %v4620_v15 = vpop.eup %4619 }
 0x413   :  { %v628_v16 = vadd.f32 1.0, %v4620_v15 }
 0x415   :  { %4621 = vrcp.f32 %v628_v16 }
 0x41f   :  { %v4622_v17 = vpop.eup %4621 }
 0x420   :  { %v632_v21 = vmul.f32 %v4622_v17, %v455_v57 }
 0x483   :  { %v635_v18 = vpop.permute.xlu1 %634 }
 0x484   :  { %v637_v20 = vmul.f32 %v4622_v17, %v635_v18 }
 0x486   :  { %639 = vrot.lane.b32.xlu0 %v637_v20, %s4890_s22 }
 0x4f8   :  { %v640_v22 = vpop.permute.xlu0 %639 }
 0x4f9   :  { %v642_v23 = vadd.f32 %v640_v22, %v632_v21 }
 0x4fb   :  { %4623 = vtanh.f32 %v642_v23 }
 0x505   :  { %v4624_v25 = vpop.eup %4623 }
 0x506   :  { %645 = vrot.lane.b32.xlu1 %v4624_v25, %s4890_s22 }
 0x578   :  { %v646_v26 = vpop.permute.xlu1 %645 }
 0x579   :  { %v648_v28 = vmul.f32 %v4622_v17, %v646_v26 }
 0x57b   :  { %v730_v29 = vrot.slane %v648_v28, 2  ;;  %650 = vrot.lane.b32.xlu1 %v648_v28, %s4891_s3  ;;  %v1099_v28 = vld [vmem:[#allocation3 + $0x6] sm:$0x3] }
 0x57d   :  { %731 = vrot.lane.b32.xlu0 %v730_v29, %s4891_s3 }
 0x5ed   :  { %v651_v30 = vpop.permute.xlu1 %650 }
 0x5ee   :  { %653 = vst.msk [vmem:[#allocation4 + $0x2] sm:$0x3] %vm466_vm3, %v651_v30  ;;  %3980 = vmatmul.mubr.msk.f32.vlgmr.msra.gmra.mrb[4].mxu0 %vm103_vm1, %v651_v30 }
 0x5ef   :  { %654 = vst.msk [vmem:[#allocation5 + $0xa] sm:$0xc] %vm468_vm4, %v651_v30  ;;  %v732_v31 = vpop.permute.xlu0 %731  ;;  %4390 = vmatpush3.bf16.msra.mxu0 %v5035_v13  ;;  %4001 = vmatprep.mubr.msk.f32.mxu0 %vm4888_vm0, %v4889_v1 }
 0x5f0   :  { %3991 = vmatmul.mubr.msk.f32.vlgmr.msra.gmra.mrb[8].mxu1 %vm103_vm1, %v732_v31  ;;  %4391 = vmatprep.subr.bf16.mxu0 %v4887_v0 }
 0x5f1   :  { %4396 = vmatpush3.bf16.msra.mxu1 %v5071_v24  ;;  %4012 = vmatprep.mubr.msk.f32.mxu1 %vm4888_vm0, %v4889_v1 }
 0x5f2   :  { %4397 = vmatprep.subr.bf16.mxu1 %v4887_v0 }
 0x5f3   :  { %4393 = vmatpush3.bf16.msra.mxu0 %v5050_v19 }
 0x5f4   :  { %4400 = vmatprep.subr.bf16.mxu0 %v4887_v0 }
 0x5f5   :  { %4399 = vmatpush3.bf16.msra.mxu1 %v5084_v27 }
 0x5f6   :  { %4406 = vmatprep.subr.bf16.mxu1 %v4887_v0 }
 0x6c1   :  { %v724_v32 = vpop.f32.mrb[4].mxu0 }
 0x6c2   :  { %v3981_v33 = vpop.f32.mrb[5].mxu0  ;;  %v728_v39 = vadd.f32 %v724_v32, %v655_v38  ;;  %v1025_v32 = vld [vmem:[#allocation2 + $0x8] sm:$0x3] }
 0x6c3   :  { %v801_v35 = vpop.f32.mrb[8].mxu1 }
 0x6c4   :  { %v805_v36 = vadd.f32 %v801_v35, %v729_v34  ;;  %v3992_v37 = vpop.f32.mrb[9].mxu1 }
 0x6c6   :  { %v807_v40 = vrot.slane %v805_v36, 6 }
 0x6c8   :  { %v809_v41 = vsel %vm436_vm2, %v728_v39, %v807_v40 }
 0x6c9   :  { %4625 = vtanh.f32 %v809_v41  ;;  %v3648_v43 = vmul.f32 -1.442695, %v809_v41 }
 0x6cb   :  { %4627 = vpow2.f32 %v3648_v43 }
 0x6d3   :  { %v4626_v42 = vpop.eup %4625 }
 0x6d4   :  { %819 = vrot.lane.b32.xlu0 %v4626_v42, %s4890_s22 }
 0x6d5   :  { %v4628_v44 = vpop.eup %4627 }
 0x6d6   :  { %v813_v45 = vadd.f32 1.0, %v4628_v44 }
 0x6d8   :  { %4629 = vrcp.f32 %v813_v45 }
 0x6e2   :  { %v4630_v46 = vpop.eup %4629 }
 0x6e3   :  { %v817_v49 = vmul.f32 %v4630_v46, %v642_v23 }
 0x746   :  { %v820_v47 = vpop.permute.xlu0 %819 }
 0x747   :  { %v822_v48 = vmul.f32 %v4630_v46, %v820_v47 }
 0x749   :  { %824 = vrot.lane.b32.xlu1 %v822_v48, %s4890_s22 }
 0x7bb   :  { %v825_v50 = vpop.permute.xlu1 %824 }
 0x7bc   :  { %v827_v51 = vadd.f32 %v825_v50, %v817_v49 }
 0x7be   :  { %4631 = vtanh.f32 %v827_v51 }
 0x7c8   :  { %v4632_v52 = vpop.eup %4631 }
 0x7c9   :  { %830 = vrot.lane.b32.xlu0 %v4632_v52, %s4890_s22 }
 0x83b   :  { %v831_v53 = vpop.permute.xlu0 %830 }
 0x83c   :  { %v833_v54 = vmul.f32 %v4630_v46, %v831_v53 }
 0x83e   :  { %v915_v55 = vrot.slane %v833_v54, 2  ;;  %835 = vrot.lane.b32.xlu0 %v833_v54, %s4891_s3  ;;  %v1284_v54 = vld [vmem:[#allocation3 + $0x4] sm:$0x3] }
 0x840   :  { %916 = vrot.lane.b32.xlu1 %v915_v55, %s4891_s3 }
 0x8b0   :  { %v836_v56 = vpop.permute.xlu0 %835 }
 0x8b1   :  { %838 = vst.msk [vmem:[#allocation4 + $0x4] sm:$0x3] %vm466_vm3, %v836_v56  ;;  %4002 = vmatmul.mubr.msk.f32.vlgmr.msra.gmra.mrb[6].mxu0 %vm103_vm1, %v836_v56 }
 0x8b2   :  { %839 = vst.msk [vmem:[#allocation5 + $0x8] sm:$0xc] %vm468_vm4, %v836_v56  ;;  %v917_v57 = vpop.permute.xlu1 %916  ;;  %4402 = vmatpush3.bf16.msra.mxu0 %v5035_v13  ;;  %4023 = vmatprep.mubr.msk.f32.mxu0 %vm4888_vm0, %v4889_v1 }
 0x8b3   :  { %4013 = vmatmul.mubr.msk.f32.vlgmr.msra.gmra.mrb[10].mxu1 %vm103_vm1, %v917_v57  ;;  %4403 = vmatprep.subr.bf16.mxu0 %v4887_v0 }
 0x8b4   :  { %4408 = vmatpush3.bf16.msra.mxu1 %v5071_v24  ;;  %4034 = vmatprep.mubr.msk.f32.mxu1 %vm4888_vm0, %v4889_v1 }
 0x8b5   :  { %4409 = vmatprep.subr.bf16.mxu1 %v4887_v0 }
 0x8b6   :  { %4405 = vmatpush3.bf16.msra.mxu0 %v5050_v19 }
 0x8b7   :  { %4412 = vmatprep.subr.bf16.mxu0 %v4887_v0 }
 0x8b8   :  { %4411 = vmatpush3.bf16.msra.mxu1 %v5084_v27 }
 0x8b9   :  { %4418 = vmatprep.subr.bf16.mxu1 %v4887_v0 }
 0x984   :  { %v909_v58 = vpop.f32.mrb[6].mxu0 }
 0x985   :  { %v4003_v59 = vpop.f32.mrb[7].mxu0  ;;  %v913_v3 = vadd.f32 %v909_v58, %v840_v2  ;;  %v1210_v58 = vld [vmem:[#allocation2 + $0xa] sm:$0x3] }
 0x986   :  { %v986_v61 = vpop.f32.mrb[10].mxu1 }
 0x987   :  { %v990_v62 = vadd.f32 %v986_v61, %v914_v60  ;;  %v4014_v63 = vpop.f32.mrb[11].mxu1 }
 0x989   :  { %v992_v4 = vrot.slane %v990_v62, 6 }
 0x98b   :  { %v994_v5 = vsel %vm436_vm2, %v913_v3, %v992_v4 }
 0x98c   :  { %4633 = vtanh.f32 %v994_v5  ;;  %v3651_v7 = vmul.f32 -1.442695, %v994_v5 }
 0x98e   :  { %4635 = vpow2.f32 %v3651_v7 }
 0x996   :  { %v4634_v6 = vpop.eup %4633 }
 0x997   :  { %1004 = vrot.lane.b32.xlu1 %v4634_v6, %s4890_s22 }
 0x998   :  { %v4636_v8 = vpop.eup %4635 }
 0x999   :  { %v998_v9 = vadd.f32 1.0, %v4636_v8 }
 0x99b   :  { %4637 = vrcp.f32 %v998_v9 }
 0x9a5   :  { %v4638_v10 = vpop.eup %4637 }
 0x9a6   :  { %v1002_v14 = vmul.f32 %v4638_v10, %v827_v51 }
 0xa09   :  { %v1005_v11 = vpop.permute.xlu1 %1004 }
 0xa0a   :  { %v1007_v12 = vmul.f32 %v4638_v10, %v1005_v11 }
 0xa0c   :  { %1009 = vrot.lane.b32.xlu0 %v1007_v12, %s4890_s22 }
 0xa7e   :  { %v1010_v15 = vpop.permute.xlu0 %1009 }
 0xa7f   :  { %v1012_v16 = vadd.f32 %v1010_v15, %v1002_v14 }
 0xa81   :  { %4639 = vtanh.f32 %v1012_v16 }
 0xa8b   :  { %v4640_v17 = vpop.eup %4639 }
 0xa8c   :  { %1015 = vrot.lane.b32.xlu1 %v4640_v17, %s4890_s22 }
 0xafe   :  { %v1016_v18 = vpop.permute.xlu1 %1015 }
 0xaff   :  { %v1018_v20 = vmul.f32 %v4638_v10, %v1016_v18  ;;  %v1469_v18 = vld [vmem:[#allocation3 + $0x2] sm:$0x3] }
 0xb01   :  { %v1100_v21 = vrot.slane %v1018_v20, 2  ;;  %1020 = vrot.lane.b32.xlu1 %v1018_v20, %s4891_s3 }
 0xb03   :  { %1101 = vrot.lane.b32.xlu0 %v1100_v21, %s4891_s3 }
 0xb73   :  { %v1021_v22 = vpop.permute.xlu1 %1020 }
 0xb74   :  { %1023 = vst.msk [vmem:[#allocation4 + $0x6] sm:$0x3] %vm466_vm3, %v1021_v22  ;;  %4024 = vmatmul.mubr.msk.f32.vlgmr.msra.gmra.mrb[8].mxu0 %vm103_vm1, %v1021_v22 }
 0xb75   :  { %1024 = vst.msk [vmem:[#allocation5 + $0x6] sm:$0xc] %vm468_vm4, %v1021_v22  ;;  %v1102_v23 = vpop.permute.xlu0 %1101  ;;  %4414 = vmatpush3.bf16.msra.mxu0 %v5035_v13  ;;  %4045 = vmatprep.mubr.msk.f32.mxu0 %vm4888_vm0, %v4889_v1 }
 0xb76   :  { %4035 = vmatmul.mubr.msk.f32.vlgmr.msra.gmra.mrb[12].mxu1 %vm103_vm1, %v1102_v23  ;;  %4415 = vmatprep.subr.bf16.mxu0 %v4887_v0  ;;  %v1395_v23 = vld [vmem:[#allocation2 + $0xc] sm:$0x3] }
 0xb77   :  { %4420 = vmatpush3.bf16.msra.mxu1 %v5071_v24  ;;  %4056 = vmatprep.mubr.msk.f32.mxu1 %vm4888_vm0, %v4889_v1 }
 0xb78   :  { %4421 = vmatprep.subr.bf16.mxu1 %v4887_v0 }
 0xb79   :  { %4417 = vmatpush3.bf16.msra.mxu0 %v5050_v19 }
 0xb7a   :  { %4424 = vmatprep.subr.bf16.mxu0 %v4887_v0 }
 0xb7b   :  { %4423 = vmatpush3.bf16.msra.mxu1 %v5084_v27 }
 0xb7c   :  { %4430 = vmatprep.subr.bf16.mxu1 %v4887_v0 }
 0xc47   :  { %v1094_v25 = vpop.f32.mrb[8].mxu0 }
 0xc48   :  { %v4025_v26 = vpop.f32.mrb[9].mxu0  ;;  %v1098_v33 = vadd.f32 %v1094_v25, %v1025_v32 }
 0xc49   :  { %v1171_v29 = vpop.f32.mrb[12].mxu1 }
 0xc4a   :  { %v1175_v30 = vadd.f32 %v1171_v29, %v1099_v28  ;;  %v4036_v31 = vpop.f32.mrb[13].mxu1 }
 0xc4c   :  { %v1177_v34 = vrot.slane %v1175_v30, 6 }
 0xc4e   :  { %v1179_v35 = vsel %vm436_vm2, %v1098_v33, %v1177_v34 }
 0xc4f   :  { %4641 = vtanh.f32 %v1179_v35  ;;  %v3654_v37 = vmul.f32 -1.442695, %v1179_v35 }
 0xc51   :  { %4643 = vpow2.f32 %v3654_v37 }
 0xc59   :  { %v4642_v36 = vpop.eup %4641 }
 0xc5a   :  { %1189 = vrot.lane.b32.xlu0 %v4642_v36, %s4890_s22 }
 0xc5b   :  { %v4644_v38 = vpop.eup %4643 }
 0xc5c   :  { %v1183_v39 = vadd.f32 1.0, %v4644_v38 }
 0xc5e   :  { %4645 = vrcp.f32 %v1183_v39 }
 0xc68   :  { %v4646_v40 = vpop.eup %4645 }
 0xc69   :  { %v1187_v43 = vmul.f32 %v4646_v40, %v1012_v16 }
 0xccc   :  { %v1190_v41 = vpop.permute.xlu0 %1189 }
 0xccd   :  { %v1192_v42 = vmul.f32 %v4646_v40, %v1190_v41 }
 0xccf   :  { %1194 = vrot.lane.b32.xlu1 %v1192_v42, %s4890_s22 }
 0xd41   :  { %v1195_v44 = vpop.permute.xlu1 %1194 }
 0xd42   :  { %v1197_v45 = vadd.f32 %v1195_v44, %v1187_v43  ;;  %v1654_v44 = vld [vmem:[#allocation3] sm:$0x3] }
 0xd44   :  { %4647 = vtanh.f32 %v1197_v45 }
 0xd4e   :  { %v4648_v46 = vpop.eup %4647 }
 0xd4f   :  { %1200 = vrot.lane.b32.xlu0 %v4648_v46, %s4890_s22 }
 0xdc1   :  { %v1201_v47 = vpop.permute.xlu0 %1200 }
 0xdc2   :  { %v1203_v48 = vmul.f32 %v4646_v40, %v1201_v47 }
 0xdc4   :  { %v1285_v49 = vrot.slane %v1203_v48, 2  ;;  %1205 = vrot.lane.b32.xlu0 %v1203_v48, %s4891_s3  ;;  %v1580_v48 = vld [vmem:[#allocation2 + $0xe] sm:$0x3] }
 0xdc6   :  { %1286 = vrot.lane.b32.xlu1 %v1285_v49, %s4891_s3 }
 0xe36   :  { %v1206_v50 = vpop.permute.xlu0 %1205 }
 0xe37   :  { %1208 = vst.msk [vmem:[#allocation4 + $0x8] sm:$0x3] %vm466_vm3, %v1206_v50  ;;  %4046 = vmatmul.mubr.msk.f32.vlgmr.msra.gmra.mrb[10].mxu0 %vm103_vm1, %v1206_v50 }
 0xe38   :  { %1209 = vst.msk [vmem:[#allocation5 + $0x4] sm:$0xc] %vm468_vm4, %v1206_v50  ;;  %v1287_v51 = vpop.permute.xlu1 %1286  ;;  %4426 = vmatpush3.bf16.msra.mxu0 %v5035_v13  ;;  %4067 = vmatprep.mubr.msk.f32.mxu0 %vm4888_vm0, %v4889_v1 }
 0xe39   :  { %4057 = vmatmul.mubr.msk.f32.vlgmr.msra.gmra.mrb[14].mxu1 %vm103_vm1, %v1287_v51  ;;  %4427 = vmatprep.subr.bf16.mxu0 %v4887_v0 }
 0xe3a   :  { %4432 = vmatpush3.bf16.msra.mxu1 %v5071_v24  ;;  %4078 = vmatprep.mubr.msk.f32.mxu1 %vm4888_vm0, %v4889_v1 }
 0xe3b   :  { %4433 = vmatprep.subr.bf16.mxu1 %v4887_v0 }
 0xe3c   :  { %4429 = vmatpush3.bf16.msra.mxu0 %v5050_v19 }
 0xe3d   :  { %4436 = vmatprep.subr.bf16.mxu0 %v4887_v0 }
 0xe3e   :  { %4435 = vmatpush3.bf16.msra.mxu1 %v5084_v27 }
 0xe3f   :  { %4442 = vmatprep.subr.bf16.mxu1 %v4887_v0 }
 0xf0a   :  { %v1279_v52 = vpop.f32.mrb[10].mxu0 }
 0xf0b   :  { %v4047_v53 = vpop.f32.mrb[11].mxu0  ;;  %v1283_v59 = vadd.f32 %v1279_v52, %v1210_v58 }
 0xf0c   :  { %v1356_v55 = vpop.f32.mrb[14].mxu1 }
 0xf0d   :  { %v1360_v56 = vadd.f32 %v1356_v55, %v1284_v54  ;;  %v4058_v57 = vpop.f32.mrb[15].mxu1 }
 0xf0f   :  { %v1362_v60 = vrot.slane %v1360_v56, 6 }
 0xf11   :  { %v1364_v61 = vsel %vm436_vm2, %v1283_v59, %v1362_v60 }
 0xf12   :  { %4649 = vtanh.f32 %v1364_v61  ;;  %v3657_v63 = vmul.f32 -1.442695, %v1364_v61 }
 0xf14   :  { %4651 = vpow2.f32 %v3657_v63  ;;  %v1789_v63 = vld [vmem:[%s5546_s4] sm:$0xff] }
 0xf1c   :  { %v4650_v62 = vpop.eup %4649 }
 0xf1d   :  { %1374 = vrot.lane.b32.xlu1 %v4650_v62, %s4890_s22 }
 0xf1e   :  { %v4652_v2 = vpop.eup %4651 }
 0xf1f   :  { %v1368_v3 = vadd.f32 1.0, %v4652_v2  ;;  %v1790_v2 = vld [vmem:[%s5546_s4 + $0x8] sm:$0xff] }
 0xf21   :  { %4653 = vrcp.f32 %v1368_v3  ;;  %v3667_v3 = vld [vmem:[%s5546_s4 + $0x40] sm:$0xff] }
 0xf2b   :  { %v4654_v4 = vpop.eup %4653 }
 0xf2c   :  { %v1372_v7 = vmul.f32 %v4654_v4, %v1197_v45 }
 0xf8f   :  { %v1375_v5 = vpop.permute.xlu1 %1374 }
 0xf90   :  { %v1377_v6 = vmul.f32 %v4654_v4, %v1375_v5  ;;  %v3668_v5 = vld [vmem:[%s5546_s4 + $0x48] sm:$0xff] }
 0xf92   :  { %1379 = vrot.lane.b32.xlu0 %v1377_v6, %s4890_s22  ;;  %v1791_v6 = vld [vmem:[%s5546_s4 + $0x10] sm:$0xff] }
0x1004   :  { %v1380_v8 = vpop.permute.xlu0 %1379 }
0x1005   :  { %v1382_v9 = vadd.f32 %v1380_v8, %v1372_v7  ;;  %v1792_v7 = vld [vmem:[%s5546_s4 + $0x18] sm:$0xff] }
0x1007   :  { %4655 = vtanh.f32 %v1382_v9 }
0x1011   :  { %v4656_v10 = vpop.eup %4655 }
0x1012   :  { %1385 = vrot.lane.b32.xlu1 %v4656_v10, %s4890_s22  ;;  %v4452_v10 = vpack.c.bf16 %v1792_v7, %v1791_v6 }
0x1084   :  { %v1386_v11 = vpop.permute.xlu1 %1385 }
0x1085   :  { %v1388_v12 = vmul.f32 %v4654_v4, %v1386_v11  ;;  %v4448_v4 = vpack.c.bf16 %v1790_v2, %v1789_v63  ;;  %v3669_v11 = vld [vmem:[%s5546_s4 + $0x50] sm:$0xff] }
0x1087   :  { %v1470_v14 = vrot.slane %v1388_v12, 2  ;;  %1390 = vrot.lane.b32.xlu1 %v1388_v12, %s4891_s3  ;;  %v3670_v12 = vld [vmem:[%s5546_s4 + $0x58] sm:$0xff] }
0x1089   :  { %1471 = vrot.lane.b32.xlu0 %v1470_v14, %s4891_s3  ;;  %v1793_v14 = vld [vmem:[%s5546_s4 + $0x20] sm:$0xff] }
0x10f9   :  { %v1391_v15 = vpop.permute.xlu1 %1390 }
0x10fa   :  { %1393 = vst.msk [vmem:[#allocation4 + $0xa] sm:$0x3] %vm466_vm3, %v1391_v15  ;;  %4068 = vmatmul.mubr.msk.f32.vlgmr.msra.gmra.mrb[12].mxu0 %vm103_vm1, %v1391_v15 }
0x10fb   :  { %1394 = vst.msk [vmem:[#allocation5 + $0x2] sm:$0xc] %vm468_vm4, %v1391_v15  ;;  %v1472_v16 = vpop.permute.xlu0 %1471  ;;  %4438 = vmatpush3.bf16.msra.mxu0 %v5035_v13  ;;  %4089 = vmatprep.mubr.msk.f32.mxu0 %vm4888_vm0, %v4889_v1 }
0x10fc   :  { %4079 = vmatmul.mubr.msk.f32.vlgmr.msra.gmra.mrb[16].mxu1 %vm103_vm1, %v1472_v16  ;;  %4439 = vmatprep.subr.bf16.mxu0 %v4887_v0  ;;  %v4468_v16 = vpack.c.bf16 %v3670_v12, %v3669_v11 }
0x10fd   :  { %4444 = vmatpush3.bf16.msra.mxu1 %v5071_v24  ;;  %4100 = vmatprep.mubr.msk.f32.mxu1 %vm4888_vm0, %v4889_v1 }
0x10fe   :  { %4445 = vmatprep.subr.bf16.mxu1 %v4887_v0 }
0x10ff   :  { %4441 = vmatpush3.bf16.msra.mxu0 %v5050_v19 }
0x1100   :  { %4449 = vmatprep.subr.bf16.mxu0 %v4448_v4 }
0x1101   :  { %4447 = vmatpush3.bf16.msra.mxu1 %v5084_v27 }
0x11cd   :  { %v1464_v17 = vpop.f32.mrb[12].mxu0 }
0x11ce   :  { %v4069_v13 = vpop.f32.mrb[13].mxu0  ;;  %v1468_v25 = vadd.f32 %v1464_v17, %v1395_v23  ;;  %v1794_v17 = vld [vmem:[%s5546_s4 + $0x28] sm:$0xff]  ;;  %v1796_v23 = vld [vmem:[%s5546_s4 + $0x38] sm:$0xff] }
0x11cf   :  { %v1541_v20 = vpop.f32.mrb[16].mxu1  ;;  %v3671_v13 = vld [vmem:[%s5546_s4 + $0x60] sm:$0xff] }
0x11d0   :  { %v1545_v21 = vadd.f32 %v1541_v20, %v1469_v18  ;;  %v4080_v22 = vpop.f32.mrb[17].mxu1  ;;  %v3672_v18 = vld [vmem:[%s5546_s4 + $0x68] sm:$0xff]  ;;  %v4456_v20 = vpack.c.bf16 %v1794_v17, %v1793_v14 }
0x11d1   :  { %v1795_v22 = vld [vmem:[%s5546_s4 + $0x30] sm:$0xff] }
0x11d2   :  { %v1547_v26 = vrot.slane %v1545_v21, 6  ;;  %v4472_v21 = vpack.c.bf16 %v3672_v18, %v3671_v13 }
0x11d4   :  { %v1549_v24 = vsel %vm436_vm2, %v1468_v25, %v1547_v26  ;;  %v3673_v25 = vld [vmem:[%s5546_s4 + $0x70] sm:$0xff]  ;;  %v3674_v26 = vld [vmem:[%s5546_s4 + $0x78] sm:$0xff]  ;;  %s4892_s4 = smov 96  }
0x11d5   :  { %4657 = vtanh.f32 %v1549_v24  ;;  %v3660_v29 = vmul.f32 -1.442695, %v1549_v24  ;;  %v1778_v24 = vld [vmem:[#allocation5 + $0x8] sm:$0xff] }
0x11d7   :  { %4659 = vpow2.f32 %v3660_v29  ;;  %v4476_v29 = vpack.c.bf16 %v3674_v26, %v3673_v25 }
0x11df   :  { %v4658_v28 = vpop.eup %4657 }
0x11e0   :  { %1559 = vrot.lane.b32.xlu0 %v4658_v28, %s4890_s22  ;;  %v4460_v28 = vpack.c.bf16 %v1796_v23, %v1795_v22 }
0x11e1   :  { %v4660_v19 = vpop.eup %4659 }
0x11e2   :  { %v1553_v30 = vadd.f32 1.0, %v4660_v19 }
0x11e4   :  { %4661 = vrcp.f32 %v1553_v30 }
0x11ee   :  { %v4662_v27 = vpop.eup %4661 }
0x11ef   :  { %v1557_v33 = vmul.f32 %v4662_v27, %v1382_v9  ;;  %v4464_v9 = vpack.c.bf16 %v3668_v5, %v3667_v3 }
0x11f1   :  { %4465 = vmatprep.subr.bf16.mxu1 %v4464_v9 }
0x1252   :  { %v1560_v31 = vpop.permute.xlu0 %1559 }
0x1253   :  { %v1562_v32 = vmul.f32 %v4662_v27, %v1560_v31  ;;  %v1988_v31 = vld [vmem:[#allocation6 + $0x28] sm:$0xff] }
0x1255   :  { %1564 = vrot.lane.b32.xlu1 %v1562_v32, %s4890_s22  ;;  %v1982_v32 = vld [vmem:[#allocation6] sm:$0xff] }
0x12c7   :  { %v1565_v34 = vpop.permute.xlu1 %1564 }
0x12c8   :  { %v1567_v35 = vadd.f32 %v1565_v34, %v1557_v33  ;;  %v1983_v33 = vld [vmem:[#allocation6 + $0x8] sm:$0xff] }
0x12ca   :  { %4663 = vtanh.f32 %v1567_v35 }
0x12d4   :  { %v4664_v36 = vpop.eup %4663 }
0x12d5   :  { %1570 = vrot.lane.b32.xlu0 %v4664_v36, %s4890_s22 }
0x1347   :  { %v1571_v37 = vpop.permute.xlu0 %1570 }
0x1348   :  { %v1573_v38 = vmul.f32 %v4662_v27, %v1571_v37  ;;  %v1987_v27 = vld [vmem:[#allocation6 + $0x20] sm:$0xff] }
0x1349   :  { %v5308_v37 = vpack.c.bf16 %v1988_v31, %v1987_v27 }
0x134a   :  { %v1655_v39 = vrot.slane %v1573_v38, 2  ;;  %1575 = vrot.lane.b32.xlu0 %v1573_v38, %s4891_s3  ;;  %v5310_v38 = vpack.c.bf16 %v1983_v33, %v1982_v32 }
0x134c   :  { %1656 = vrot.lane.b32.xlu1 %v1655_v39, %s4891_s3  ;;  %v1989_v39 = vld [vmem:[#allocation6 + $0x30] sm:$0xff] }
0x13bc   :  { %v1576_v40 = vpop.permute.xlu0 %1575 }
0x13bd   :  { %1578 = vst.msk [vmem:[#allocation4 + $0xc] sm:$0x3] %vm466_vm3, %v1576_v40  ;;  %4090 = vmatmul.mubr.msk.f32.vlgmr.msra.gmra.mrb[14].mxu0 %vm103_vm1, %v1576_v40 }
0x13be   :  { %1579 = vst.msk [vmem:[#allocation5] sm:$0xc] %vm468_vm4, %v1576_v40  ;;  %v1657_v41 = vpop.permute.xlu1 %1656  ;;  %4451 = vmatpush3.bf16.msra.mxu0 %v4448_v4 }
0x13bf   :  { %4101 = vmatmul.mubr.msk.f32.vlgmr.msra.gmra.mrb[18].mxu1 %vm103_vm1, %v1657_v41  ;;  %4453 = vmatprep.subr.bf16.mxu0 %v4452_v10 }
0x13c0   :  { %4467 = vmatpush3.bf16.msra.mxu1 %v4464_v9 }
0x13c1   :  { %4469 = vmatprep.subr.bf16.mxu1 %v4468_v16 }
0x13c2   :  { %4455 = vmatpush3.bf16.msra.mxu0 %v4452_v10 }
0x13c3   :  { %4457 = vmatprep.subr.bf16.mxu0 %v4456_v20 }
0x13c4   :  { %4471 = vmatpush3.bf16.msra.mxu1 %v4468_v16 }
0x13c5   :  { %4473 = vmatprep.subr.bf16.mxu1 %v4472_v21 }
0x13c6   :  { %4459 = vmatpush3.bf16.msra.mxu0 %v4456_v20 }
0x13c7   :  { %4461 = vmatprep.subr.bf16.mxu0 %v4460_v28 }
0x13c8   :  { %4475 = vmatpush3.bf16.msra.mxu1 %v4472_v21 }
0x13c9   :  { %4477 = vmatprep.subr.bf16.mxu1 %v4476_v29 }
0x13ca   :  { %4463 = vmatpush3.bf16.msra.mxu0 %v4460_v28 }
0x13cb   :  { %4480 = vmatprep.subr.bf16.mxu0 %v4887_v0 }
0x13cc   :  { %4479 = vmatpush3.bf16.msra.mxu1 %v4476_v29 }
0x13cd   :  { %4486 = vmatprep.subr.bf16.mxu1 %v4887_v0 }
0x1490   :  { %v1649_v42 = vpop.f32.mrb[14].mxu0 }
0x1491   :  { %v4091_v43 = vpop.f32.mrb[15].mxu0  ;;  %v1653_v49 = vadd.f32 %v1649_v42, %v1580_v48  ;;  %v1990_v42 = vld [vmem:[#allocation6 + $0x38] sm:$0xff]  ;;  %v3664_v48 = vld [vmem:[#allocation9] ss:$0 sm:$0xff] }
0x1492   :  { %v1726_v45 = vpop.f32.mrb[18].mxu1  ;;  %v1984_v43 = vld [vmem:[#allocation6 + $0x10] sm:$0xff] }
0x1493   :  { %v1730_v46 = vadd.f32 %v1726_v45, %v1654_v44  ;;  %v4102_v47 = vpop.f32.mrb[19].mxu1  ;;  %v1985_v44 = vld [vmem:[#allocation6 + $0x18] sm:$0xff] }
0x1494   :  { %v5322_v47 = vpack.c.bf16 %v1985_v44, %v1984_v43 }
0x1495   :  { %v1732_v50 = vrot.slane %v1730_v46, 6  ;;  %v5320_v46 = vpack.c.bf16 %v1990_v42, %v1989_v39 }
0x1497   :  { %v1734_v51 = vsel %vm436_vm2, %v1653_v49, %v1732_v50  ;;  %v3675_v49 = vld [vmem:[#allocation9 + $0x1] ss:$0 sm:$0xff] }
0x1498   :  { %4665 = vtanh.f32 %v1734_v51  ;;  %v3663_v53 = vmul.f32 -1.442695, %v1734_v51 }
0x149a   :  { %4667 = vpow2.f32 %v3663_v53 }
0x14a2   :  { %v4666_v52 = vpop.eup %4665 }
0x14a3   :  { %1744 = vrot.lane.b32.xlu1 %v4666_v52, %s4890_s22 }
0x14a4   :  { %v4668_v54 = vpop.eup %4667 }
0x14a5   :  { %v1738_v55 = vadd.f32 1.0, %v4668_v54 }
0x14a7   :  { %4669 = vrcp.f32 %v1738_v55 }
0x14b1   :  { %v4670_v56 = vpop.eup %4669 }
0x14b2   :  { %v1742_v59 = vmul.f32 %v4670_v56, %v1567_v35  ;;  %v1775_v35 = vld [vmem:[#allocation4] sm:$0xff] }
0x1515   :  { %v1745_v57 = vpop.permute.xlu1 %1744 }
0x1516   :  { %v1747_v58 = vmul.f32 %v4670_v56, %v1745_v57 }
0x1518   :  { %1749 = vrot.lane.b32.xlu0 %v1747_v58, %s4890_s22 }
0x158a   :  { %v1750_v60 = vpop.permute.xlu0 %1749 }
0x158b   :  { %v5247_v61 = vadd.f32 %v1750_v60, %v1742_v59 }
0x158d   :  { %4671 = vtanh.f32 %v5247_v61 }
0x1597   :  { %v4672_v62 = vpop.eup %4671 }
0x1598   :  { %1755 = vrot.lane.b32.xlu1 %v4672_v62, %s4890_s22 }
0x160a   :  { %v1756_v8 = vpop.permute.xlu1 %1755 }
0x160b   :  { %v1758_v15 = vmul.f32 %v4670_v56, %v1756_v8 }
0x160d   :  { %1760 = vrot.lane.b32.xlu0 %v1758_v15, %s4891_s3 }
0x1611   :  { %1783 = vrot.lane.b32.xlu0 %v1778_v24, %s4890_s22 }
0x167f   :  { %v1761_v19 = vpop.permute.xlu0 %1760 }
0x1680   :  { %1763 = vst.msk [vmem:[#allocation4 + $0xe] sm:$0x3] %vm466_vm3, %v1761_v19  ;;  %1765 = vst.msk [vmem:[#allocation14] sm:$0x3] %vm466_vm3, %v1761_v19 }
0x1681   :  { %1764 = vst.msk [vmem:[#allocation5 - $0x2] sm:$0xc] %vm468_vm4, %v1761_v19  ;;  %1767 = vst.msk [vmem:[#allocation14] sm:$0xc] %vm468_vm4, %v1761_v19 }
0x1683   :  { %v1784_v40 = vpop.permute.xlu0 %1783 }
0x1687   :  { %v1776_v34 = vld [vmem:[#allocation4 + $0x8] sm:$0xff] }
0x1688   :  { %v1777_v30 = vld [vmem:[#allocation5] sm:$0xff]  ;;  %v1788_v45 = vsel %vm103_vm1, %v1776_v34, %v1784_v40 }
0x1689   :  { %1781 = vrot.lane.b32.xlu1 %v1777_v30, %s4890_s22 }
0x16fb   :  { %v1782_v36 = vpop.permute.xlu1 %1781 }
0x16fc   :  { %v1787_v41 = vsel %vm103_vm1, %v1775_v35, %v1782_v36 }
0x16fd   :  { %4119 = vmatprep.mubr.msk.f32.mxu0 %vm1804_vm5, %v1787_v41  ;;  %4138 = vmatprep.mubr.msk.f32.mxu1 %vm1804_vm5, %v1787_v41 }
0x16fe   :  { %4120 = vmatmul.mubr.msk.f32.vlgmr.msra.gmra.mrb[16].mxu0 %vm1804_vm5, %v1788_v45  ;;  %4139 = vmatmul.mubr.msk.f32.vlgmr.msra.gmra.mrb[20].mxu1 %vm1804_vm5, %v1788_v45 }
0x16ff   :  { %4488 = vmatpush3.bf16.msra.mxu1 %v5308_v37  ;;  %4482 = vmatpush3.bf16.msra.mxu0 %v5310_v38 }
0x1700   :  { %4489 = vmatprep.subr.bf16.mxu1 %v4887_v0  ;;  %4483 = vmatprep.subr.bf16.mxu0 %v4887_v0 }
0x1701   :  { %4160 = vmatprep.mubr.msk.f32.mxu1 %vm4888_vm0, %v4889_v1  ;;  %4149 = vmatprep.mubr.msk.f32.mxu0 %vm4888_vm0, %v4889_v1 }
0x1703   :  { %4491 = vmatpush3.bf16.msra.mxu1 %v5320_v46  ;;  %4485 = vmatpush3.bf16.msra.mxu0 %v5322_v47 }
0x1704   :  { %4492 = vmatprep.subr.bf16.mxu0 %v4887_v0  ;;  %4498 = vmatprep.subr.bf16.mxu1 %v4887_v0 }
0x1706   :  { %4161 = vmatmul.mubr.f32.vlgmr.msra.gmra.mrb[22].mxu1 %v4889_v1  ;;  %4150 = vmatmul.mubr.f32.vlgmr.msra.gmra.mrb[18].mxu0 %v4889_v1 }
0x1707   :  { %4494 = vmatpush3.bf16.msra.mxu0 %v5310_v38  ;;  %4500 = vmatpush3.bf16.msra.mxu1 %v5308_v37 }
0x1708   :  { %4495 = vmatprep.subr.bf16.mxu0 %v4887_v0  ;;  %4501 = vmatprep.subr.bf16.mxu1 %v4887_v0 }
0x1709   :  { %4171 = vmatprep.mubr.msk.f32.mxu0 %vm4888_vm0, %v4889_v1  ;;  %4182 = vmatprep.mubr.msk.f32.mxu1 %vm4888_vm0, %v4889_v1 }
0x170b   :  { %4497 = vmatpush3.bf16.msra.mxu0 %v5322_v47  ;;  %4503 = vmatpush3.bf16.msra.mxu1 %v5320_v46 }
0x170c   :  { %4504 = vmatprep.subr.bf16.mxu0 %v4887_v0  ;;  %4510 = vmatprep.subr.bf16.mxu1 %v4887_v0 }
0x17d1   :  { %v4121_v50 = vpop.f32.mrb[16].mxu0  ;;  %v4140_v51 = vpop.f32.mrb[20].mxu1 }
0x17d2   :  { %v1883_v52 = vadd.f32 %v4121_v50, %v3664_v48  ;;  %v1977_v53 = vadd.f32 %v4140_v51, %v3675_v49  ;;  %v1877_v54 = vpop.f32.mrb[17].mxu0  ;;  %v1971_v55 = vpop.f32.mrb[21].mxu1 }
0x17d3   :  { %v1878_v56 = vadd.f32 %v3664_v48, %v1877_v54  ;;  %v1972_v57 = vadd.f32 %v3675_v49, %v1971_v55 }
0x17d4   :  { %1887 = vst [vmem:[#allocation2 + $0x8] sm:$0xff] %v1883_v52  ;;  %1981 = vst [vmem:[#allocation3 + $0x8] sm:$0xff] %v1977_v53 }
0x17d5   :  { %1886 = vst [vmem:[#allocation2] sm:$0xff] %v1878_v56  ;;  %1980 = vst [vmem:[#allocation3] sm:$0xff] %v1972_v57 }
0x17d9   :  { %v2130_v58 = vpop.f32.mrb[22].mxu1  ;;  %v2058_v59 = vpop.f32.mrb[18].mxu0 }
0x17da   :  { %v4162_v60 = vpop.f32.mrb[23].mxu1  ;;  %v4151_v62 = vpop.f32.mrb[19].mxu0 }
0x17db   :  { %v2063_v63 = vld [vmem:[#allocation3 + $0xe] sm:$0x3]  ;;  %v2243_v24 = vld [vmem:[#allocation3 + $0xc] sm:$0x3]  ;;  %v2428_v55 = vld [vmem:[#allocation3 + $0xa] sm:$0x3] }
0x17dc   :  { %v2134_v2 = vadd.f32 %v2130_v58, %v2063_v63  ;;  %v1991_v3 = vld [vmem:[#allocation2] sm:$0x3]  ;;  %v2169_v30 = vld [vmem:[#allocation2 + $0x2] sm:$0x3] }
0x17dd   :  { %v2062_v4 = vadd.f32 %v2058_v59, %v1991_v3  ;;  %v2354_v59 = vld [vmem:[#allocation2 + $0x4] sm:$0x3] }
0x17de   :  { %v2136_v5 = vrot.slane %v2134_v2, 6 }
0x17e0   :  { %v2138_v6 = vsel %vm436_vm2, %v2062_v4, %v2136_v5 }
0x17e1   :  { %4673 = vtanh.f32 %v2138_v6  ;;  %v3678_v8 = vmul.f32 -1.442695, %v2138_v6 }
0x17e3   :  { %4675 = vpow2.f32 %v3678_v8 }
0x17eb   :  { %v4674_v7 = vpop.eup %4673 }
0x17ec   :  { %2148 = vrot.lane.b32.xlu1 %v4674_v7, %s4890_s22 }
0x17ed   :  { %v4676_v9 = vpop.eup %4675 }
0x17ee   :  { %v2142_v10 = vadd.f32 1.0, %v4676_v9 }
0x17f0   :  { %4677 = vrcp.f32 %v2142_v10 }
0x17fa   :  { %v4678_v11 = vpop.eup %4677 }
0x17fb   :  { %v2146_v15 = vmul.f32 0.0, %v4678_v11 }
0x185e   :  { %v2149_v12 = vpop.permute.xlu1 %2148 }
0x185f   :  { %v2151_v14 = vmul.f32 %v4678_v11, %v2149_v12 }
0x1861   :  { %2153 = vrot.lane.b32.xlu0 %v2151_v14, %s4890_s22 }
0x18d3   :  { %v2154_v16 = vpop.permute.xlu0 %2153 }
0x18d4   :  { %v2156_v17 = vadd.f32 %v2154_v16, %v2146_v15 }
0x18d6   :  { %4679 = vtanh.f32 %v2156_v17 }
0x18e0   :  { %v4680_v13 = vpop.eup %4679 }
0x18e1   :  { %2159 = vrot.lane.b32.xlu1 %v4680_v13, %s4890_s22 }
0x1953   :  { %v2160_v18 = vpop.permute.xlu1 %2159 }
0x1954   :  { %v2162_v20 = vmul.f32 %v4678_v11, %v2160_v18 }
0x1956   :  { %v2244_v21 = vrot.slane %v2162_v20, 2  ;;  %2164 = vrot.lane.b32.xlu1 %v2162_v20, %s4891_s3 }
0x1958   :  { %2245 = vrot.lane.b32.xlu0 %v2244_v21, %s4891_s3  ;;  %v2613_v21 = vld [vmem:[#allocation3 + $0x8] sm:$0x3] }
0x19c8   :  { %v2165_v22 = vpop.permute.xlu1 %2164 }
0x19c9   :  { %2167 = vst.msk [vmem:[#allocation4] sm:$0x3] %vm466_vm3, %v2165_v22  ;;  %4172 = vmatmul.mubr.msk.f32.vlgmr.msra.gmra.mrb[20].mxu0 %vm103_vm1, %v2165_v22 }
0x19ca   :  { %2168 = vst.msk [vmem:[#allocation5 + $0xc] sm:$0xc] %vm468_vm4, %v2165_v22  ;;  %v2246_v23 = vpop.permute.xlu0 %2245  ;;  %4506 = vmatpush3.bf16.msra.mxu0 %v5310_v38  ;;  %4193 = vmatprep.mubr.msk.f32.mxu0 %vm4888_vm0, %v4889_v1 }
0x19cb   :  { %4183 = vmatmul.mubr.msk.f32.vlgmr.msra.gmra.mrb[24].mxu1 %vm103_vm1, %v2246_v23  ;;  %4507 = vmatprep.subr.bf16.mxu0 %v4887_v0 }
0x19cc   :  { %4512 = vmatpush3.bf16.msra.mxu1 %v5308_v37  ;;  %4204 = vmatprep.mubr.msk.f32.mxu1 %vm4888_vm0, %v4889_v1 }
0x19cd   :  { %4513 = vmatprep.subr.bf16.mxu1 %v4887_v0 }
0x19ce   :  { %4509 = vmatpush3.bf16.msra.mxu0 %v5322_v47 }
0x19cf   :  { %4516 = vmatprep.subr.bf16.mxu0 %v4887_v0 }
0x19d0   :  { %4515 = vmatpush3.bf16.msra.mxu1 %v5320_v46 }
0x19d1   :  { %4522 = vmatprep.subr.bf16.mxu1 %v4887_v0 }
0x1a9c   :  { %v2238_v25 = vpop.f32.mrb[20].mxu0 }
0x1a9d   :  { %v4173_v26 = vpop.f32.mrb[21].mxu0  ;;  %v2242_v27 = vadd.f32 %v2238_v25, %v2169_v30 }
0x1a9e   :  { %v2315_v28 = vpop.f32.mrb[24].mxu1  ;;  %v2539_v26 = vld [vmem:[#allocation2 + $0x6] sm:$0x3] }
0x1a9f   :  { %v2319_v29 = vadd.f32 %v2315_v28, %v2243_v24  ;;  %v4184_v19 = vpop.f32.mrb[25].mxu1 }
0x1aa1   :  { %v2321_v31 = vrot.slane %v2319_v29, 6 }
0x1aa3   :  { %v2323_v32 = vsel %vm436_vm2, %v2242_v27, %v2321_v31 }
0x1aa4   :  { %4681 = vtanh.f32 %v2323_v32  ;;  %v3681_v34 = vmul.f32 -1.442695, %v2323_v32 }
0x1aa6   :  { %4683 = vpow2.f32 %v3681_v34 }
0x1aae   :  { %v4682_v33 = vpop.eup %4681 }
0x1aaf   :  { %2333 = vrot.lane.b32.xlu0 %v4682_v33, %s4890_s22 }
0x1ab0   :  { %v4684_v35 = vpop.eup %4683 }
0x1ab1   :  { %v2327_v36 = vadd.f32 1.0, %v4684_v35 }
0x1ab3   :  { %4685 = vrcp.f32 %v2327_v36 }
0x1abd   :  { %v4686_v39 = vpop.eup %4685 }
0x1abe   :  { %v2331_v42 = vmul.f32 %v4686_v39, %v2156_v17 }
0x1b21   :  { %v2334_v40 = vpop.permute.xlu0 %2333 }
0x1b22   :  { %v2336_v41 = vmul.f32 %v4686_v39, %v2334_v40 }
0x1b24   :  { %2338 = vrot.lane.b32.xlu1 %v2336_v41, %s4890_s22 }
0x1b96   :  { %v2339_v43 = vpop.permute.xlu1 %2338 }
0x1b97   :  { %v2341_v44 = vadd.f32 %v2339_v43, %v2331_v42 }
0x1b99   :  { %4687 = vtanh.f32 %v2341_v44 }
0x1ba3   :  { %v4688_v45 = vpop.eup %4687 }
0x1ba4   :  { %2344 = vrot.lane.b32.xlu0 %v4688_v45, %s4890_s22 }
0x1c16   :  { %v2345_v48 = vpop.permute.xlu0 %2344 }
0x1c17   :  { %v2347_v49 = vmul.f32 %v4686_v39, %v2345_v48 }
0x1c19   :  { %v2429_v50 = vrot.slane %v2347_v49, 2  ;;  %2349 = vrot.lane.b32.xlu0 %v2347_v49, %s4891_s3 }
0x1c1b   :  { %2430 = vrot.lane.b32.xlu1 %v2429_v50, %s4891_s3  ;;  %v2798_v50 = vld [vmem:[#allocation3 + $0x6] sm:$0x3] }
0x1c8b   :  { %v2350_v51 = vpop.permute.xlu0 %2349 }
0x1c8c   :  { %2352 = vst.msk [vmem:[#allocation4 + $0x2] sm:$0x3] %vm466_vm3, %v2350_v51  ;;  %4194 = vmatmul.mubr.msk.f32.vlgmr.msra.gmra.mrb[22].mxu0 %vm103_vm1, %v2350_v51 }
0x1c8d   :  { %2353 = vst.msk [vmem:[#allocation5 + $0xa] sm:$0xc] %vm468_vm4, %v2350_v51  ;;  %v2431_v52 = vpop.permute.xlu1 %2430  ;;  %4518 = vmatpush3.bf16.msra.mxu0 %v5310_v38  ;;  %4215 = vmatprep.mubr.msk.f32.mxu0 %vm4888_vm0, %v4889_v1 }
0x1c8e   :  { %4205 = vmatmul.mubr.msk.f32.vlgmr.msra.gmra.mrb[26].mxu1 %vm103_vm1, %v2431_v52  ;;  %4519 = vmatprep.subr.bf16.mxu0 %v4887_v0 }
0x1c8f   :  { %4524 = vmatpush3.bf16.msra.mxu1 %v5308_v37  ;;  %4226 = vmatprep.mubr.msk.f32.mxu1 %vm4888_vm0, %v4889_v1 }
0x1c90   :  { %4525 = vmatprep.subr.bf16.mxu1 %v4887_v0 }
0x1c91   :  { %4521 = vmatpush3.bf16.msra.mxu0 %v5322_v47 }
0x1c92   :  { %4528 = vmatprep.subr.bf16.mxu0 %v4887_v0 }
0x1c93   :  { %4527 = vmatpush3.bf16.msra.mxu1 %v5320_v46 }
0x1c94   :  { %4534 = vmatprep.subr.bf16.mxu1 %v4887_v0 }
0x1d5f   :  { %v2423_v53 = vpop.f32.mrb[22].mxu0 }
0x1d60   :  { %v4195_v54 = vpop.f32.mrb[23].mxu0  ;;  %v2427_v60 = vadd.f32 %v2423_v53, %v2354_v59 }
0x1d61   :  { %v2500_v56 = vpop.f32.mrb[26].mxu1  ;;  %v2724_v54 = vld [vmem:[#allocation2 + $0x8] sm:$0x3] }
0x1d62   :  { %v2504_v57 = vadd.f32 %v2500_v56, %v2428_v55  ;;  %v4206_v58 = vpop.f32.mrb[27].mxu1 }
0x1d64   :  { %v2506_v62 = vrot.slane %v2504_v57, 6 }
0x1d66   :  { %v2508_v63 = vsel %vm436_vm2, %v2427_v60, %v2506_v62 }
0x1d67   :  { %4689 = vtanh.f32 %v2508_v63  ;;  %v3684_v3 = vmul.f32 -1.442695, %v2508_v63 }
0x1d69   :  { %4691 = vpow2.f32 %v3684_v3 }
0x1d71   :  { %v4690_v2 = vpop.eup %4689 }
0x1d72   :  { %2518 = vrot.lane.b32.xlu1 %v4690_v2, %s4890_s22 }
0x1d73   :  { %v4692_v4 = vpop.eup %4691 }
0x1d74   :  { %v2512_v5 = vadd.f32 1.0, %v4692_v4 }
0x1d76   :  { %4693 = vrcp.f32 %v2512_v5 }
0x1d80   :  { %v4694_v6 = vpop.eup %4693 }
0x1d81   :  { %v2516_v9 = vmul.f32 %v4694_v6, %v2341_v44 }
0x1de4   :  { %v2519_v7 = vpop.permute.xlu1 %2518 }
0x1de5   :  { %v2521_v8 = vmul.f32 %v4694_v6, %v2519_v7 }
0x1de7   :  { %2523 = vrot.lane.b32.xlu0 %v2521_v8, %s4890_s22 }
0x1e59   :  { %v2524_v10 = vpop.permute.xlu0 %2523 }
0x1e5a   :  { %v2526_v11 = vadd.f32 %v2524_v10, %v2516_v9 }
0x1e5c   :  { %4695 = vtanh.f32 %v2526_v11 }
0x1e66   :  { %v4696_v12 = vpop.eup %4695 }
0x1e67   :  { %2529 = vrot.lane.b32.xlu1 %v4696_v12, %s4890_s22 }
0x1ed9   :  { %v2530_v14 = vpop.permute.xlu1 %2529 }
0x1eda   :  { %v2532_v15 = vmul.f32 %v4694_v6, %v2530_v14 }
0x1edc   :  { %v2614_v16 = vrot.slane %v2532_v15, 2  ;;  %2534 = vrot.lane.b32.xlu1 %v2532_v15, %s4891_s3 }
0x1ede   :  { %2615 = vrot.lane.b32.xlu0 %v2614_v16, %s4891_s3  ;;  %v2983_v16 = vld [vmem:[#allocation3 + $0x4] sm:$0x3] }
0x1f4e   :  { %v2535_v17 = vpop.permute.xlu1 %2534 }
0x1f4f   :  { %2537 = vst.msk [vmem:[#allocation4 + $0x4] sm:$0x3] %vm466_vm3, %v2535_v17  ;;  %4216 = vmatmul.mubr.msk.f32.vlgmr.msra.gmra.mrb[24].mxu0 %vm103_vm1, %v2535_v17 }
0x1f50   :  { %2538 = vst.msk [vmem:[#allocation5 + $0x8] sm:$0xc] %vm468_vm4, %v2535_v17  ;;  %v2616_v13 = vpop.permute.xlu0 %2615  ;;  %4530 = vmatpush3.bf16.msra.mxu0 %v5310_v38  ;;  %4237 = vmatprep.mubr.msk.f32.mxu0 %vm4888_vm0, %v4889_v1 }
0x1f51   :  { %4227 = vmatmul.mubr.msk.f32.vlgmr.msra.gmra.mrb[28].mxu1 %vm103_vm1, %v2616_v13  ;;  %4531 = vmatprep.subr.bf16.mxu0 %v4887_v0 }
0x1f52   :  { %4536 = vmatpush3.bf16.msra.mxu1 %v5308_v37  ;;  %4248 = vmatprep.mubr.msk.f32.mxu1 %vm4888_vm0, %v4889_v1 }
0x1f53   :  { %4537 = vmatprep.subr.bf16.mxu1 %v4887_v0 }
0x1f54   :  { %4533 = vmatpush3.bf16.msra.mxu0 %v5322_v47 }
0x1f55   :  { %4540 = vmatprep.subr.bf16.mxu0 %v4887_v0 }
0x1f56   :  { %4539 = vmatpush3.bf16.msra.mxu1 %v5320_v46 }
0x1f57   :  { %4546 = vmatprep.subr.bf16.mxu1 %v4887_v0 }
0x2022   :  { %v2608_v18 = vpop.f32.mrb[24].mxu0 }
0x2023   :  { %v4217_v20 = vpop.f32.mrb[25].mxu0  ;;  %v2612_v24 = vadd.f32 %v2608_v18, %v2539_v26 }
0x2024   :  { %v2685_v22 = vpop.f32.mrb[28].mxu1  ;;  %v2909_v20 = vld [vmem:[#allocation2 + $0xa] sm:$0x3] }
0x2025   :  { %v2689_v23 = vadd.f32 %v2685_v22, %v2613_v21  ;;  %v4228_v25 = vpop.f32.mrb[29].mxu1 }
0x2027   :  { %v2691_v28 = vrot.slane %v2689_v23, 6 }
0x2029   :  { %v2693_v29 = vsel %vm436_vm2, %v2612_v24, %v2691_v28 }
0x202a   :  { %4697 = vtanh.f32 %v2693_v29  ;;  %v3687_v30 = vmul.f32 -1.442695, %v2693_v29 }
0x202c   :  { %4699 = vpow2.f32 %v3687_v30 }
0x2034   :  { %v4698_v19 = vpop.eup %4697 }
0x2035   :  { %2703 = vrot.lane.b32.xlu0 %v4698_v19, %s4890_s22 }
0x2036   :  { %v4700_v27 = vpop.eup %4699 }
0x2037   :  { %v2697_v31 = vadd.f32 1.0, %v4700_v27 }
0x2039   :  { %4701 = vrcp.f32 %v2697_v31 }
0x2043   :  { %v4702_v32 = vpop.eup %4701 }
0x2044   :  { %v2701_v35 = vmul.f32 %v4702_v32, %v2526_v11 }
0x20a7   :  { %v2704_v33 = vpop.permute.xlu0 %2703 }
0x20a8   :  { %v2706_v34 = vmul.f32 %v4702_v32, %v2704_v33 }
0x20aa   :  { %2708 = vrot.lane.b32.xlu1 %v2706_v34, %s4890_s22 }
0x211c   :  { %v2709_v36 = vpop.permute.xlu1 %2708 }
0x211d   :  { %v2711_v39 = vadd.f32 %v2709_v36, %v2701_v35 }
0x211f   :  { %4703 = vtanh.f32 %v2711_v39 }
0x2129   :  { %v4704_v40 = vpop.eup %4703 }
0x212a   :  { %2714 = vrot.lane.b32.xlu0 %v4704_v40, %s4890_s22 }
0x219c   :  { %v2715_v41 = vpop.permute.xlu0 %2714 }
0x219d   :  { %v2717_v42 = vmul.f32 %v4702_v32, %v2715_v41 }
0x219f   :  { %v2799_v43 = vrot.slane %v2717_v42, 2  ;;  %2719 = vrot.lane.b32.xlu0 %v2717_v42, %s4891_s3  ;;  %v3168_v42 = vld [vmem:[#allocation3 + $0x2] sm:$0x3] }
0x21a1   :  { %2800 = vrot.lane.b32.xlu1 %v2799_v43, %s4891_s3 }
0x2211   :  { %v2720_v44 = vpop.permute.xlu0 %2719 }
0x2212   :  { %2722 = vst.msk [vmem:[#allocation4 + $0x6] sm:$0x3] %vm466_vm3, %v2720_v44  ;;  %4238 = vmatmul.mubr.msk.f32.vlgmr.msra.gmra.mrb[26].mxu0 %vm103_vm1, %v2720_v44 }
0x2213   :  { %2723 = vst.msk [vmem:[#allocation5 + $0x6] sm:$0xc] %vm468_vm4, %v2720_v44  ;;  %v2801_v45 = vpop.permute.xlu1 %2800  ;;  %4542 = vmatpush3.bf16.msra.mxu0 %v5310_v38  ;;  %4259 = vmatprep.mubr.msk.f32.mxu0 %vm4888_vm0, %v4889_v1 }
0x2214   :  { %4249 = vmatmul.mubr.msk.f32.vlgmr.msra.gmra.mrb[30].mxu1 %vm103_vm1, %v2801_v45  ;;  %4543 = vmatprep.subr.bf16.mxu0 %v4887_v0 }
0x2215   :  { %4548 = vmatpush3.bf16.msra.mxu1 %v5308_v37  ;;  %4270 = vmatprep.mubr.msk.f32.mxu1 %vm4888_vm0, %v4889_v1 }
0x2216   :  { %4549 = vmatprep.subr.bf16.mxu1 %v4887_v0 }
0x2217   :  { %4545 = vmatpush3.bf16.msra.mxu0 %v5322_v47 }
0x2218   :  { %4552 = vmatprep.subr.bf16.mxu0 %v4887_v0 }
0x2219   :  { %4551 = vmatpush3.bf16.msra.mxu1 %v5320_v46 }
0x221a   :  { %4558 = vmatprep.subr.bf16.mxu1 %v4887_v0 }
0x22e5   :  { %v2793_v48 = vpop.f32.mrb[26].mxu0 }
0x22e6   :  { %v4239_v49 = vpop.f32.mrb[27].mxu0  ;;  %v2797_v55 = vadd.f32 %v2793_v48, %v2724_v54  ;;  %v3094_v48 = vld [vmem:[#allocation2 + $0xc] sm:$0x3] }
0x22e7   :  { %v2870_v51 = vpop.f32.mrb[30].mxu1 }
0x22e8   :  { %v2874_v52 = vadd.f32 %v2870_v51, %v2798_v50  ;;  %v4250_v53 = vpop.f32.mrb[31].mxu1 }
0x22ea   :  { %v2876_v56 = vrot.slane %v2874_v52, 6 }
0x22ec   :  { %v2878_v57 = vsel %vm436_vm2, %v2797_v55, %v2876_v56 }
0x22ed   :  { %4705 = vtanh.f32 %v2878_v57  ;;  %v3690_v59 = vmul.f32 -1.442695, %v2878_v57 }
0x22ef   :  { %4707 = vpow2.f32 %v3690_v59 }
0x22f7   :  { %v4706_v58 = vpop.eup %4705 }
0x22f8   :  { %2888 = vrot.lane.b32.xlu1 %v4706_v58, %s4890_s22 }
0x22f9   :  { %v4708_v60 = vpop.eup %4707 }
0x22fa   :  { %v2882_v62 = vadd.f32 1.0, %v4708_v60 }
0x22fc   :  { %4709 = vrcp.f32 %v2882_v62 }
0x2306   :  { %v4710_v63 = vpop.eup %4709 }
0x2307   :  { %v2886_v4 = vmul.f32 %v4710_v63, %v2711_v39 }
0x236a   :  { %v2889_v2 = vpop.permute.xlu1 %2888 }
0x236b   :  { %v2891_v3 = vmul.f32 %v4710_v63, %v2889_v2 }
0x236d   :  { %2893 = vrot.lane.b32.xlu0 %v2891_v3, %s4890_s22 }
0x23df   :  { %v2894_v5 = vpop.permute.xlu0 %2893 }
0x23e0   :  { %v2896_v6 = vadd.f32 %v2894_v5, %v2886_v4  ;;  %v3353_v4 = vld [vmem:[#allocation3] sm:$0x3] }
0x23e2   :  { %4711 = vtanh.f32 %v2896_v6 }
0x23ec   :  { %v4712_v7 = vpop.eup %4711 }
0x23ed   :  { %2899 = vrot.lane.b32.xlu1 %v4712_v7, %s4890_s22 }
0x245f   :  { %v2900_v8 = vpop.permute.xlu1 %2899 }
0x2460   :  { %v2902_v9 = vmul.f32 %v4710_v63, %v2900_v8  ;;  %v3279_v8 = vld [vmem:[#allocation2 + $0xe] sm:$0x3] }
0x2462   :  { %v2984_v10 = vrot.slane %v2902_v9, 2  ;;  %2904 = vrot.lane.b32.xlu1 %v2902_v9, %s4891_s3 }
0x2464   :  { %2985 = vrot.lane.b32.xlu0 %v2984_v10, %s4891_s3 }
0x24d4   :  { %v2905_v11 = vpop.permute.xlu1 %2904 }
0x24d5   :  { %2907 = vst.msk [vmem:[#allocation4 + $0x8] sm:$0x3] %vm466_vm3, %v2905_v11  ;;  %4260 = vmatmul.mubr.msk.f32.vlgmr.msra.gmra.mrb[28].mxu0 %vm103_vm1, %v2905_v11 }
0x24d6   :  { %2908 = vst.msk [vmem:[#allocation5 + $0x4] sm:$0xc] %vm468_vm4, %v2905_v11  ;;  %v2986_v12 = vpop.permute.xlu0 %2985  ;;  %4554 = vmatpush3.bf16.msra.mxu0 %v5310_v38  ;;  %4281 = vmatprep.mubr.msk.f32.mxu0 %vm4888_vm0, %v4889_v1 }
0x24d7   :  { %4271 = vmatmul.mubr.msk.f32.vlgmr.msra.gmra.mrb[32].mxu1 %vm103_vm1, %v2986_v12  ;;  %4555 = vmatprep.subr.bf16.mxu0 %v4887_v0 }
0x24d8   :  { %4560 = vmatpush3.bf16.msra.mxu1 %v5308_v37  ;;  %4292 = vmatprep.mubr.msk.f32.mxu1 %vm4888_vm0, %v4889_v1 }
0x24d9   :  { %4561 = vmatprep.subr.bf16.mxu1 %v4887_v0 }
0x24da   :  { %4557 = vmatpush3.bf16.msra.mxu0 %v5322_v47 }
0x24db   :  { %4564 = vmatprep.subr.bf16.mxu0 %v4887_v0 }
0x24dc   :  { %4563 = vmatpush3.bf16.msra.mxu1 %v5320_v46 }
0x24dd   :  { %4570 = vmatprep.subr.bf16.mxu1 %v4887_v0 }
0x25a8   :  { %v2978_v14 = vpop.f32.mrb[28].mxu0 }
0x25a9   :  { %v4261_v15 = vpop.f32.mrb[29].mxu0  ;;  %v2982_v21 = vadd.f32 %v2978_v14, %v2909_v20 }
0x25aa   :  { %v3055_v17 = vpop.f32.mrb[32].mxu1 }
0x25ab   :  { %v3059_v13 = vadd.f32 %v3055_v17, %v2983_v16  ;;  %v4272_v18 = vpop.f32.mrb[33].mxu1 }
0x25ad   :  { %v3061_v22 = vrot.slane %v3059_v13, 6 }
0x25af   :  { %v3063_v23 = vsel %vm436_vm2, %v2982_v21, %v3061_v22 }
0x25b0   :  { %4713 = vtanh.f32 %v3063_v23  ;;  %v3693_v26 = vmul.f32 -1.442695, %v3063_v23 }
0x25b2   :  { %4715 = vpow2.f32 %v3693_v26 }
0x25ba   :  { %v4714_v25 = vpop.eup %4713 }
0x25bb   :  { %3073 = vrot.lane.b32.xlu0 %v4714_v25, %s4890_s22 }
0x25bc   :  { %v4716_v24 = vpop.eup %4715 }
0x25bd   :  { %v3067_v28 = vadd.f32 1.0, %v4716_v24  ;;  %v3490_v24 = vld [vmem:[#allocation11] sm:$0xff] }
0x25bf   :  { %4717 = vrcp.f32 %v3067_v28  ;;  %v3491_v28 = vld [vmem:[#allocation11 + $0x8] sm:$0xff] }
0x25c9   :  { %v4718_v29 = vpop.eup %4717 }
0x25ca   :  { %v3071_v27 = vmul.f32 %v4718_v29, %v2896_v6 }
0x262d   :  { %v3074_v19 = vpop.permute.xlu0 %3073 }
0x262e   :  { %v3076_v30 = vmul.f32 %v4718_v29, %v3074_v19  ;;  %v4576_v19 = vpack.c.bf16 %v3491_v28, %v3490_v24 }
0x2630   :  { %3078 = vrot.lane.b32.xlu1 %v3076_v30, %s4890_s22  ;;  %v3493_v30 = vld [vmem:[#allocation11 + $0x18] sm:$0xff] }
0x26a2   :  { %v3079_v31 = vpop.permute.xlu1 %3078 }
0x26a3   :  { %v3081_v32 = vadd.f32 %v3079_v31, %v3071_v27  ;;  %v3494_v31 = vld [vmem:[#allocation11 + $0x20] sm:$0xff] }
0x26a5   :  { %4719 = vtanh.f32 %v3081_v32 }
0x26af   :  { %v4720_v33 = vpop.eup %4719 }
0x26b0   :  { %3084 = vrot.lane.b32.xlu0 %v4720_v33, %s4890_s22  ;;  %v3479_v33 = vld [vmem:[#allocation5 + $0x8] sm:$0xff] }
0x2722   :  { %v3085_v34 = vpop.permute.xlu0 %3084 }
0x2723   :  { %v3087_v35 = vmul.f32 %v4718_v29, %v3085_v34  ;;  %v3492_v29 = vld [vmem:[#allocation11 + $0x10] sm:$0xff] }
0x2724   :  { %v4580_v27 = vpack.c.bf16 %v3493_v30, %v3492_v29 }
0x2725   :  { %v3169_v36 = vrot.slane %v3087_v35, 2  ;;  %3089 = vrot.lane.b32.xlu0 %v3087_v35, %s4891_s3  ;;  %v3496_v35 = vld [vmem:[#allocation11 + $0x30] sm:$0xff] }
0x2727   :  { %3170 = vrot.lane.b32.xlu1 %v3169_v36, %s4891_s3  ;;  %v3497_v36 = vld [vmem:[#allocation11 + $0x38] sm:$0xff] }
0x2797   :  { %v3090_v39 = vpop.permute.xlu0 %3089 }
0x2798   :  { %3092 = vst.msk [vmem:[#allocation4 + $0xa] sm:$0x3] %vm466_vm3, %v3090_v39  ;;  %4282 = vmatmul.mubr.msk.f32.vlgmr.msra.gmra.mrb[30].mxu0 %vm103_vm1, %v3090_v39 }
0x2799   :  { %3093 = vst.msk [vmem:[#allocation5 + $0x2] sm:$0xc] %vm468_vm4, %v3090_v39  ;;  %v3171_v40 = vpop.permute.xlu1 %3170  ;;  %4566 = vmatpush3.bf16.msra.mxu0 %v5310_v38  ;;  %4303 = vmatprep.mubr.msk.f32.mxu0 %vm4888_vm0, %v4889_v1  ;;  %v4588_v39 = vpack.c.bf16 %v3497_v36, %v3496_v35 }
0x279a   :  { %4293 = vmatmul.mubr.msk.f32.vlgmr.msra.gmra.mrb[34].mxu1 %vm103_vm1, %v3171_v40  ;;  %4567 = vmatprep.subr.bf16.mxu0 %v4887_v0 }
0x279b   :  { %4572 = vmatpush3.bf16.msra.mxu1 %v5308_v37  ;;  %4314 = vmatprep.mubr.msk.f32.mxu1 %vm4888_vm0, %v4889_v1 }
0x279c   :  { %4573 = vmatprep.subr.bf16.mxu1 %v4887_v0 }
0x279d   :  { %4569 = vmatpush3.bf16.msra.mxu0 %v5322_v47 }
0x279e   :  { %4577 = vmatprep.subr.bf16.mxu0 %v4576_v19 }
0x279f   :  { %4575 = vmatpush3.bf16.msra.mxu1 %v5320_v46 }
0x286b   :  { %v3163_v41 = vpop.f32.mrb[30].mxu0 }
0x286c   :  { %v4283_v38 = vpop.f32.mrb[31].mxu0  ;;  %v3167_v49 = vadd.f32 %v3163_v41, %v3094_v48 }
0x286d   :  { %v3240_v43 = vpop.f32.mrb[34].mxu1 }
0x286e   :  { %v3244_v44 = vadd.f32 %v3240_v43, %v3168_v42  ;;  %v4294_v45 = vpop.f32.mrb[35].mxu1 }
0x2870   :  { %v3246_v50 = vrot.slane %v3244_v44, 6  ;;  %v3476_v44 = vld [vmem:[#allocation4] sm:$0xff] }
0x2872   :  { %v3248_v37 = vsel %vm436_vm2, %v3167_v49, %v3246_v50 }
0x2873   :  { %4721 = vtanh.f32 %v3248_v37  ;;  %v3696_v0 = vmul.f32 -1.442695, %v3248_v37 }
0x2875   :  { %4723 = vpow2.f32 %v3696_v0 }
0x287d   :  { %v4722_v51 = vpop.eup %4721 }
0x287e   :  { %3258 = vrot.lane.b32.xlu1 %v4722_v51, %s4890_s22 }
0x287f   :  { %v4724_v1 = vpop.eup %4723 }
0x2880   :  { %v3252_v47 = vadd.f32 1.0, %v4724_v1 }
0x2882   :  { %4725 = vrcp.f32 %v3252_v47 }
0x288c   :  { %v4726_v46 = vpop.eup %4725 }
0x288d   :  { %v3256_v54 = vmul.f32 %v4726_v46, %v3081_v32  ;;  %v3495_v32 = vld [vmem:[#allocation11 + $0x28] sm:$0xff] }
0x288e   :  { %v4584_v34 = vpack.c.bf16 %v3495_v32, %v3494_v31 }
0x28f0   :  { %v3259_v52 = vpop.permute.xlu1 %3258 }
0x28f1   :  { %v3261_v53 = vmul.f32 %v4726_v46, %v3259_v52 }
0x28f3   :  { %3263 = vrot.lane.b32.xlu0 %v3261_v53, %s4890_s22 }
0x2965   :  { %v3264_v55 = vpop.permute.xlu0 %3263 }
0x2966   :  { %v3266_v56 = vadd.f32 %v3264_v55, %v3256_v54 }
0x2968   :  { %4727 = vtanh.f32 %v3266_v56 }
0x2972   :  { %v4728_v57 = vpop.eup %4727 }
0x2973   :  { %3269 = vrot.lane.b32.xlu1 %v4728_v57, %s4890_s22 }
0x29e5   :  { %v3270_v58 = vpop.permute.xlu1 %3269 }
0x29e6   :  { %v3272_v59 = vmul.f32 %v4726_v46, %v3270_v58 }
0x29e8   :  { %v3354_v60 = vrot.slane %v3272_v59, 2  ;;  %3274 = vrot.lane.b32.xlu1 %v3272_v59, %s4891_s3 }
0x29ea   :  { %3355 = vrot.lane.b32.xlu0 %v3354_v60, %s4891_s3 }
0x2a5a   :  { %v3275_v62 = vpop.permute.xlu1 %3274 }
0x2a5b   :  { %3277 = vst.msk [vmem:[#allocation4 + $0xc] sm:$0x3] %vm466_vm3, %v3275_v62  ;;  %4304 = vmatmul.mubr.msk.f32.vlgmr.msra.gmra.mrb[32].mxu0 %vm103_vm1, %v3275_v62 }
0x2a5c   :  { %3278 = vst.msk [vmem:[#allocation5] sm:$0xc] %vm468_vm4, %v3275_v62  ;;  %v3356_v63 = vpop.permute.xlu0 %3355  ;;  %4579 = vmatpush3.bf16.msra.mxu0 %v4576_v19 }
0x2a5d   :  { %4315 = vmatmul.mubr.msk.f32.vlgmr.msra.gmra.mrb[36].mxu1 %vm103_vm1, %v3356_v63  ;;  %4581 = vmatprep.subr.bf16.mxu0 %v4580_v27 }
0x2a60   :  { %4583 = vmatpush3.bf16.msra.mxu0 %v4580_v27 }
0x2a61   :  { %4585 = vmatprep.subr.bf16.mxu0 %v4584_v34 }
0x2a64   :  { %4587 = vmatpush3.bf16.msra.mxu0 %v4584_v34 }
0x2a65   :  { %4589 = vmatprep.subr.bf16.mxu0 %v4588_v39 }
0x2a68   :  { %4591 = vmatpush3.bf16.msra.mxu0 %v4588_v39 }
0x2b2e   :  { %v3348_v2 = vpop.f32.mrb[32].mxu0 }
0x2b2f   :  { %v4305_v3 = vpop.f32.mrb[33].mxu0  ;;  %v3352_v9 = vadd.f32 %v3348_v2, %v3279_v8 }
0x2b30   :  { %v3425_v5 = vpop.f32.mrb[36].mxu1 }
0x2b31   :  { %v3429_v6 = vadd.f32 %v3425_v5, %v3353_v4  ;;  %v4316_v7 = vpop.f32.mrb[37].mxu1 }
0x2b33   :  { %v3431_v10 = vrot.slane %v3429_v6, 6 }
0x2b35   :  { %v3433_v11 = vsel %vm436_vm2, %v3352_v9, %v3431_v10 }
0x2b36   :  { %4729 = vtanh.f32 %v3433_v11  ;;  %v3699_v14 = vmul.f32 -1.442695, %v3433_v11 }
0x2b38   :  { %4731 = vpow2.f32 %v3699_v14 }
0x2b40   :  { %v4730_v12 = vpop.eup %4729 }
0x2b41   :  { %3443 = vrot.lane.b32.xlu0 %v4730_v12, %s4890_s22 }
0x2b42   :  { %v4732_v15 = vpop.eup %4731 }
0x2b43   :  { %v3437_v16 = vadd.f32 1.0, %v4732_v15 }
0x2b45   :  { %4733 = vrcp.f32 %v3437_v16 }
0x2b4f   :  { %v4734_v17 = vpop.eup %4733 }
0x2b50   :  { %v3441_v20 = vmul.f32 %v4734_v17, %v3266_v56 }
0x2bb3   :  { %v3444_v13 = vpop.permute.xlu0 %3443 }
0x2bb4   :  { %v3446_v18 = vmul.f32 %v4734_v17, %v3444_v13 }
0x2bb6   :  { %3448 = vrot.lane.b32.xlu1 %v3446_v18, %s4890_s22 }
0x2c28   :  { %v3449_v21 = vpop.permute.xlu1 %3448 }
0x2c29   :  { %v3451_v22 = vadd.f32 %v3449_v21, %v3441_v20 }
0x2c2b   :  { %4735 = vtanh.f32 %v3451_v22 }
0x2c35   :  { %v4736_v23 = vpop.eup %4735 }
0x2c36   :  { %3454 = vrot.lane.b32.xlu0 %v4736_v23, %s4890_s22 }
0x2ca8   :  { %v3455_v25 = vpop.permute.xlu0 %3454 }
0x2ca9   :  { %v3457_v26 = vmul.f32 %v4734_v17, %v3455_v25 }
0x2cab   :  { %3459 = vrot.lane.b32.xlu1 %v3457_v26, %s4891_s3  ;;  %s4893_s3 = smov [#allocation14]  }
0x2cac   :  { %s3595_s6 = sshll.u32 %s4893_s3, 4  ;;  %s3596_s6 = int_to_ptr.vmem [resolvable:$true] %s3595_s6 }
0x2cad   :  { %s4825_s8 = scalar_lea.vmem %s3596_s6, 128  ;;  %p4830_p5 = scmp.lt.s32.totalorder %s3596_s6, %s3596_s6 }
0x2cae   :  { %p4826_p4 = scmp.ne.s32.totalorder %s3596_s6, %s4825_s8  ;;  %p4831_p6 = scmp.lt.s32.totalorder %s4825_s8, %s4825_s8 }
0x2caf   :  { %3484 = vrot.lane.b32.xlu1 %v3479_v33, %s4890_s22 }
0x2cb0   :  { %p4832_p7 = por %p4831_p6, %p4830_p5 }
0x2cb2   :  { %p4833_p8 = pnand %p4832_p7, %p4826_p4 }
0x2cb3   :  { %3469 = vrot.lane.b32.xlu1 %v3451_v22, %s4892_s4 }
0x2d1d   :  { %v3460_v40 = vpop.permute.xlu1 %3459 }
0x2d1e   :  { %3462 = vst.msk [vmem:[#allocation4 + $0xe] sm:$0x3] %vm466_vm3, %v3460_v40  ;;  %3465 = vst.msk [vmem:[#allocation14 + $0x4] sm:$0x3] %vm466_vm3, %v3460_v40 }
0x2d1f   :  { %3463 = vst.msk [vmem:[#allocation5 - $0x2] sm:$0xc] %vm468_vm4, %v3460_v40  ;;  %3467 = vst.msk [vmem:[#allocation14 + $0x4] sm:$0xc] %vm468_vm4, %v3460_v40 }
0x2d21   :  { %v3485_v41 = vpop.permute.xlu1 %3484 }
0x2d25   :  { %v3470_v38 = vpop.permute.xlu1 %3469  ;;  %v3477_v43 = vld [vmem:[#allocation4 + $0x8] sm:$0xff] }
0x2d26   :  { %v3478_v42 = vld [vmem:[#allocation5] sm:$0xff]  ;;  %3473 = vst.msk [vmem:[#allocation15 + $0x4] sm:$0x3] %vm466_vm3, %v3470_v38  ;;  %v3489_v49 = vsel %vm103_vm1, %v3477_v43, %v3485_v41 }
0x2d27   :  { %3475 = vst.msk [vmem:[#allocation15 + $0x4] sm:$0xc] %vm468_vm4, %v3470_v38  ;;  %3482 = vrot.lane.b32.xlu0 %v3478_v42, %s4890_s22 }
0x2d2b   :  { %1769 = vrot.lane.b32.xlu0 %v5247_v61, %s4892_s4 }
0x2d99   :  { %v3483_v45 = vpop.permute.xlu0 %3482 }
0x2d9a   :  { %v3488_v48 = vsel %vm103_vm1, %v3476_v44, %v3483_v45 }
0x2d9b   :  { %4333 = vmatprep.mubr.msk.f32.mxu0 %vm1804_vm5, %v3488_v48 }
0x2d9c   :  { %4334 = vmatmul.mubr.msk.f32.vlgmr.msra.gmra.mrb[34].mxu0 %vm1804_vm5, %v3489_v49 }
0x2d9d   :  { %v1770_v50 = vpop.permute.xlu0 %1769 }
0x2d9e   :  { %1772 = vst.msk [vmem:[#allocation15] sm:$0x3] %vm466_vm3, %v1770_v50 }
0x2d9f   :  { %1774 = vst.msk [vmem:[#allocation15] sm:$0xc] %vm468_vm4, %v1770_v50 }
0x2da0   :  { %4836 = shalt.err (!%p4833_p8)
}
0x2da1   :  { %s4837_s1 = scalar_lea.hbm %s5552_s10, 128 }
0x2da2   :  { %p4838_p9 = scmp.ne.s32.totalorder %s5552_s10, %s4837_s1  ;;  %p4841_p10 = scmp.lt.u32.totalorder %s4837_s1, %s5552_s10 }
0x2da4   :  { %p4843_p11 = pnand %p4841_p10, %p4838_p9 }
0x2da6   :  { %4846 = shalt.err (!%p4843_p11)
}
0x2da7   :  { %s4895_s17 = smov 2   ;;  %s4847_s2 = scalar_lea.vmem %s3608_s26, 128 }
0x2da8   :  { %3601 = dma.vmem_to_hbm [thread:$0]  %s3596_s6, 128, %s5552_s10, [#allocation8], %s4890_s22, %s4890_s22, %s4895_s17  }
0x2da9   :  { %p4848_p12 = scmp.ne.s32.totalorder %s3608_s26, %s4847_s2  ;;  %p4852_p13 = scmp.lt.s32.totalorder %s3608_s26, %s3608_s26 }
0x2daa   :  { %p4853_p0 = scmp.lt.s32.totalorder %s4847_s2, %s4847_s2 }
0x2dac   :  { %p4854_p1 = por %p4853_p0, %p4852_p13 }
0x2dae   :  { %p4855_p2 = pnand %p4854_p1, %p4848_p12 }
0x2db0   :  { %4858 = shalt.err (!%p4855_p2)
}
0x2db1   :  { %s4859_s21 = scalar_lea.hbm %s5553_s11, 128 }
0x2db2   :  { %p4860_p3 = scmp.ne.s32.totalorder %s5553_s11, %s4859_s21  ;;  %p4863_p4 = scmp.lt.u32.totalorder %s4859_s21, %s5553_s11 }
0x2db4   :  { %p4865_p5 = pnand %p4863_p4, %p4860_p3 }
0x2db6   :  { %4868 = shalt.err (!%p4865_p5)
}
0x2db7   :  { %3613 = dma.vmem_to_hbm [thread:$0]  %s3608_s26, 128, %s5553_s11, [#allocation16], %s4890_s22, %s4890_s22, %s4895_s17   ;;  %v3700_v61 = vld [vmem:[#allocation12] ss:$0 sm:$0xff] }
0x2e6f   :  { %v4335_v37 = vpop.f32.mrb[34].mxu0 }
0x2e70   :  { %v3583_v51 = vadd.f32 %v4335_v37, %v3700_v61  ;;  %v3577_v0 = vpop.f32.mrb[35].mxu0 }
0x2e71   :  { %v3578_v1 = vadd.f32 %v3700_v61, %v3577_v0 }
0x2e72   :  { %3587 = vst [vmem:[%s5551_s9 + $0x8] sm:$0xff] %v3583_v51 }
0x2e73   :  { %3586 = vst [vmem:[%s5551_s9] sm:$0xff] %v3578_v1 }
0x2e74   :  { %4875 = dma.done.wait [#allocation8], 128  }
0x2e75   :  { %4876 = vsyncadd [#allocation8], 4294967168 }
0x2e76   :  { %4877 = dma.done.wait [#allocation16], 128  }
0x2e77   :  { %4878 = vsyncadd [#allocation16], 4294967168 }
0x2e78   :  { %3622 = vsyncpa [#allocation7], 1 }
0x2e79   :  { %3623 = vsyncpa [#allocation10], 1 }
0x2e7a   :  { %3624 = vsyncpa [#allocation13], 1 }
0x2e7b   :  { %3625 = vsyncpa [#allocation8], 1 }
0x2e7c   :  { %3626 = vsyncpa [#allocation16], 1 }

</bundles_post_ra>
